<compile_context>
chip_gen: v6e
topology: v6e:2x2x1
jax: 0.10.0
libtpu: 0.0.40
codegen_flags: <defaults>
</compile_context>

<pallas_src>
import functools

import jax
import jax.numpy as jnp
from jax.experimental import pallas as pl
from jax.experimental.pallas import tpu as pltpu


HIDDEN1 = 2300
HIDDEN2 = 1150


def _round_up(x, m):
    return (x + m - 1) // m * m


# ----------------------------------------------------------------------------
# Fused, pipelined 3-layer MLP kernel (Linear+ReLU, Linear+ReLU, Linear)
# Grid axis j chunks W2 columns / W3 rows (reduction over layer-2 features).
# ----------------------------------------------------------------------------
def _predictor_kernel(x_ref, w1_ref, b1_ref, w2_ref, b2_ref, w3_ref, b3_ref,
                      o_ref, h1_ref, acc_ref):
    # x : (M, K1p)   bf16  resident      w1: (K1p, N1p) bf16  resident
    # b1: (1, N1p)   f32   resident
    # w2: (N1p, tn2) bf16  pipelined     b2: (1, tn2)   f32   pipelined
    # w3: (tn2, N3p) bf16  pipelined     b3: (1, N3p)   f32   resident
    # o : (M, N3p)   f32   resident (accumulator pattern)
    # h1_ref : VMEM (M, N1p) bf16 scratch
    # acc_ref: VMEM (M, N3p) f32  scratch
    j = pl.program_id(0)

    @pl.when(j == 0)
    def _():
        h1 = jnp.dot(x_ref[...], w1_ref[...], preferred_element_type=jnp.float32)
        # Dropout = identity (eval).  Store bf16 straight to scratch (no long
        # f32 live range / spills).
        h1_ref[...] = jnp.maximum(h1 + b1_ref[...], 0.0).astype(jnp.bfloat16)
        # Initialize the output accumulator with the broadcast final bias.
        acc_ref[...] = jnp.broadcast_to(b3_ref[...], acc_ref.shape)

    # Layer 2 chunk: relu(h1 @ W2[:, chunk] + b2[chunk])  (Dropout = identity)
    h2 = jnp.dot(h1_ref[...], w2_ref[...], preferred_element_type=jnp.float32)
    h2 = jnp.maximum(h2 + b2_ref[...], 0.0).astype(jnp.bfloat16)

    # Layer 3 partial: accumulate h2_chunk @ W3[chunk, :]
    acc_ref[...] += jnp.dot(h2, w3_ref[...], preferred_element_type=jnp.float32)

    @pl.when(j == pl.num_programs(0) - 1)
    def _():
        o_ref[...] = acc_ref[...]


def _pick_tn2(n2p):
    # n2p is always 1152 (= 9*128) for this module; 384 -> 3 grid steps.
    for cand in (384, 256, 128):
        if n2p % cand == 0:
            return cand
    return n2p


def _fused_forward(x_pad, w1, b1, w2, b2, w3, b3):
    m_pad, k1p = x_pad.shape
    n1p = w1.shape[1]
    n2p = w2.shape[1]
    n3p = w3.shape[1]
    tn2 = _pick_tn2(n2p)
    num_chunks = n2p // tn2

    return pl.pallas_call(
        _predictor_kernel,
        out_shape=jax.ShapeDtypeStruct((m_pad, n3p), jnp.float32),
        grid_spec=pltpu.PrefetchScalarGridSpec(
            num_scalar_prefetch=0,
            grid=(num_chunks,),
            in_specs=[
                pl.BlockSpec((m_pad, k1p), lambda j: (0, 0)),  # x   (resident)
                pl.BlockSpec((k1p, n1p), lambda j: (0, 0)),    # W1  (resident)
                pl.BlockSpec((1, n1p), lambda j: (0, 0)),      # b1  (resident)
                pl.BlockSpec((n1p, tn2), lambda j: (0, j)),    # W2 chunk (pipelined)
                pl.BlockSpec((1, tn2), lambda j: (0, j)),      # b2 chunk (pipelined)
                pl.BlockSpec((tn2, n3p), lambda j: (j, 0)),    # W3 chunk (pipelined)
                pl.BlockSpec((1, n3p), lambda j: (0, 0)),      # b3  (resident)
            ],
            out_specs=pl.BlockSpec((m_pad, n3p), lambda j: (0, 0)),
            scratch_shapes=[
                pltpu.VMEM((m_pad, n1p), jnp.bfloat16),        # h1
                pltpu.VMEM((m_pad, n3p), jnp.float32),         # output accumulator
            ],
        ),
        compiler_params=pltpu.CompilerParams(
            dimension_semantics=("arbitrary",),
            vmem_limit_bytes=16 * 1024 * 1024,
        ),
    )(x_pad, w1, b1, w2, b2, w3, b3)


# ----------------------------------------------------------------------------
# Parameter init (PyTorch-style) and one-time padding / bf16 cast
# ----------------------------------------------------------------------------
def init_predictor_params(key, in_features, out_features):
    """Deterministic init mimicking nn.Linear default U[-1/sqrt(fan_in), +...]."""
    dims = [(in_features, HIDDEN1), (HIDDEN1, HIDDEN2), (HIDDEN2, out_features)]
    params = []
    for (fan_in, fan_out) in dims:
        key, kw, kb = jax.random.split(key, 3)
        bound = 1.0 / jnp.sqrt(jnp.float32(fan_in))
        # PyTorch weight is (out, in); stored transposed so forward is x @ W.
        w = jax.random.uniform(kw, (fan_in, fan_out), jnp.float32, -bound, bound)
        b = jax.random.uniform(kb, (fan_out,), jnp.float32, -bound, bound)
        params.append((w, b))
    return params


def prepare_predictor_params(params):
    """One-time: zero-pad dims and cast weights to bf16 (hoisted out of forward).

    K1 is padded only to a multiple of 16 (bf16 sublane); hidden/output dims to
    multiples of 128 (lane-dense).  Zero padding is mathematically inert.
    """
    (w1, b1), (w2, b2), (w3, b3) = params
    k1, n1 = w1.shape
    n2 = w2.shape[1]
    n3 = w3.shape[1]
    k1p = _round_up(k1, 16)        # sublane pad only — no 128 pad on K1
    n1p = _round_up(n1, 128)
    n2p = _round_up(n2, 128)
    n3p = _round_up(n3, 128)

    def pad_w(w, kp, np_):
        k, n = w.shape
        return jnp.zeros((kp, np_), jnp.bfloat16).at[:k, :n].set(w.astype(jnp.bfloat16))

    def pad_b(b, np_):
        return jnp.zeros((1, np_), jnp.float32).at[0, : b.shape[0]].set(b)

    prepared = (
        pad_w(w1, k1p, n1p), pad_b(b1, n1p),
        pad_w(w2, n1p, n2p), pad_b(b2, n2p),
        pad_w(w3, n2p, n3p), pad_b(b3, n3p),
    )
    return jax.tree_util.tree_map(jax.device_put, prepared)


# ----------------------------------------------------------------------------
# Forward
# ----------------------------------------------------------------------------
@functools.partial(jax.jit, static_argnames=("in_features", "out_features"))
def predictor_forward(prepared, obs, in_features, out_features):
    """obs: (B, C, H, W) float32 -> (B, out_features) float32."""
    w1, b1, w2, b2, w3, b3 = prepared
    batch = obs.shape[0]
    x = obs.reshape(batch, -1)                               # nn.Flatten()
    assert x.shape[1] == in_features, (
        f"flattened feature size {x.shape[1]} != in_features {in_features}")
    x = x.astype(jnp.bfloat16)

    k_pad = w1.shape[0]
    m_pad = _round_up(max(batch, 16), 16)                    # bf16 sublane packing
    x_pad = jnp.zeros((m_pad, k_pad), jnp.bfloat16).at[:batch, :in_features].set(x)

    out = _fused_forward(x_pad, w1, b1, w2, b2, w3, b3)
    return out[:batch, :out_features]


# ----------------------------------------------------------------------------
# References for sanity checks
# ----------------------------------------------------------------------------
def predictor_reference_f32(params, obs):
    x = obs.reshape(obs.shape[0], -1)
    (w1, b1), (w2, b2), (w3, b3) = params
    h = jnp.maximum(x @ w1 + b1, 0.0)
    h = jnp.maximum(h @ w2 + b2, 0.0)
    return h @ w3 + b3


def predictor_reference_bf16(prepared, obs, out_features):
    """Pure-JAX replica of the kernel's bf16 math (f32 accumulation)."""
    w1, b1, w2, b2, w3, b3 = prepared
    batch = obs.shape[0]
    x = obs.reshape(batch, -1).astype(jnp.bfloat16)
    x = jnp.zeros((batch, w1.shape[0]), jnp.bfloat16).at[:, : x.shape[1]].set(x)
    h = jnp.maximum(jnp.dot(x, w1, preferred_element_type=jnp.float32) + b1, 0.0)
    h = h.astype(jnp.bfloat16)
    h = jnp.maximum(jnp.dot(h, w2, preferred_element_type=jnp.float32) + b2, 0.0)
    h = h.astype(jnp.bfloat16)
    out = jnp.dot(h, w3, preferred_element_type=jnp.float32) + b3
    return out[:, :out_features]


if __name__ == "__main__":
    key = jax.random.PRNGKey(0)
    k_obs, k_params = jax.random.split(key)

    # Small, module-consistent shapes: obs (B=2, C=4, H=4, W=4) -> in_features=64.
    batch, C, H, W = 2, 4, 4, 4
    in_features = C * H * W
    out_features = 10

    obs = jax.random.normal(k_obs, (batch, C, H, W), jnp.float32)
    params = init_predictor_params(k_params, in_features, out_features)

    # One-time parameter preparation (hoisted out of the forward pass).
    prepared = prepare_predictor_params(params)

    out = predictor_forward(prepared, obs, in_features, out_features)
    out = jax.block_until_ready(out)
    assert out.shape == (batch, out_features), out.shape

    # Tight check vs a pure-JAX replica of the same bf16 math.
    ref_bf16 = predictor_reference_bf16(prepared, obs, out_features)
    assert jnp.allclose(out, ref_bf16, atol=2e-3, rtol=2e-2), (
        float(jnp.max(jnp.abs(out - ref_bf16)))
    )

    # Loose sanity vs the original f32 module semantics (bf16 weights => ~1e-2 rel err).
    ref_f32 = predictor_reference_f32(params, obs)
    assert jnp.allclose(out, ref_f32, atol=5e-2, rtol=5e-2), (
        float(jnp.max(jnp.abs(out - ref_f32)))
    )

    print("KERNEL_OK")
</pallas_src>

<mosaic_0001>
module attributes {stable_mosaic.version = 11 : i64} {
  func.func @_predictor_kernel(%arg0: i32, %arg1: memref<16x64xbf16, #tpu.memory_space<vmem>>, %arg2: memref<64x2304xbf16, #tpu.memory_space<vmem>>, %arg3: memref<1x2304xf32, #tpu.memory_space<vmem>>, %arg4: memref<2304x384xbf16, #tpu.memory_space<vmem>>, %arg5: memref<1x384xf32, #tpu.memory_space<vmem>>, %arg6: memref<384x128xbf16, #tpu.memory_space<vmem>>, %arg7: memref<1x128xf32, #tpu.memory_space<vmem>>, %arg8: memref<16x128xf32, #tpu.memory_space<vmem>>, %arg9: memref<16x2304xbf16, #tpu.memory_space<vmem>>, %arg10: memref<16x128xf32, #tpu.memory_space<vmem>>) attributes {dimension_semantics = [#tpu.dimension_semantics<arbitrary>], iteration_bounds = array<i64: 3>, scalar_prefetch = 0 : i64, scratch_operands = 2 : i64, tpu.core_type = #tpu.core_type<tc>, window_params = [{pipeline_mode = #tpu.pipeline_mode<synchronous>, transform_indices = @transform_0, window_bounds = array<i64: 16, 64>}, {pipeline_mode = #tpu.pipeline_mode<synchronous>, transform_indices = @transform_1, window_bounds = array<i64: 64, 2304>}, {pipeline_mode = #tpu.pipeline_mode<synchronous>, transform_indices = @transform_2, window_bounds = array<i64: 1, 2304>}, {transform_indices = @transform_3, window_bounds = array<i64: 2304, 384>}, {transform_indices = @transform_4, window_bounds = array<i64: 1, 384>}, {transform_indices = @transform_5, window_bounds = array<i64: 384, 128>}, {pipeline_mode = #tpu.pipeline_mode<synchronous>, transform_indices = @transform_6, window_bounds = array<i64: 1, 128>}, {pipeline_mode = #tpu.pipeline_mode<synchronous>, transform_indices = @transform_7, window_bounds = array<i64: 16, 128>}]} {
    %c0_i32 = arith.constant 0 : i32
    %0 = arith.cmpi eq, %arg0, %c0_i32 : i32
    %1 = arith.extui %0 : i1 to i32
    %c0_i32_0 = arith.constant 0 : i32
    %2 = arith.cmpi ne, %1, %c0_i32_0 : i32
    scf.if %2 {
      %c0_15 = arith.constant 0 : index
      %c0_16 = arith.constant 0 : index
      %20 = vector.load %arg1[%c0_15, %c0_16] : memref<16x64xbf16, #tpu.memory_space<vmem>>, vector<16x64xbf16>
      %c0_17 = arith.constant 0 : index
      %c0_18 = arith.constant 0 : index
      %21 = vector.load %arg2[%c0_17, %c0_18] : memref<64x2304xbf16, #tpu.memory_space<vmem>>, vector<64x2304xbf16>
      %cst_19 = arith.constant dense<0.000000e+00> : vector<16x2304xf32>
      %22 = tpu.matmul %20, %21, %cst_19 {dimension_numbers = #tpu.dot_dimension_numbers<[1], [0], [0], [1], [0, 0, 1, 1], [], []>} : vector<16x64xbf16>, vector<64x2304xbf16>, vector<16x2304xf32> -> vector<16x2304xf32>
      %c0_20 = arith.constant 0 : index
      %c0_21 = arith.constant 0 : index
      %23 = vector.load %arg3[%c0_20, %c0_21] : memref<1x2304xf32, #tpu.memory_space<vmem>>, vector<1x2304xf32>
      %24 = vector.broadcast %23 : vector<1x2304xf32> to vector<16x2304xf32>
      %25 = arith.addf %22, %24 : vector<16x2304xf32>
      %cst_22 = arith.constant 0.000000e+00 : f32
      %26 = vector.broadcast %cst_22 : f32 to vector<16x2304xf32>
      %27 = arith.maximumf %25, %26 : vector<16x2304xf32>
      %28 = arith.truncf %27 : vector<16x2304xf32> to vector<16x2304xbf16>
      %c0_23 = arith.constant 0 : index
      %c0_24 = arith.constant 0 : index
      %29 = vector.load %arg9[%c0_23, %c0_24] : memref<16x2304xbf16, #tpu.memory_space<vmem>>, vector<16x2304xbf16>
      tpu.vector_store %arg9[%c0_23, %c0_24], %28 {strides = array<i32>} : memref<16x2304xbf16, #tpu.memory_space<vmem>>, vector<16x2304xbf16>,
      %c0_25 = arith.constant 0 : index
      %c0_26 = arith.constant 0 : index
      %30 = vector.load %arg7[%c0_25, %c0_26] : memref<1x128xf32, #tpu.memory_space<vmem>>, vector<1x128xf32>
      %31 = vector.shape_cast %30 : vector<1x128xf32> to vector<1x128xf32>
      %32 = vector.broadcast %31 : vector<1x128xf32> to vector<16x128xf32>
      %c0_27 = arith.constant 0 : index
      %c0_28 = arith.constant 0 : index
      %33 = vector.load %arg10[%c0_27, %c0_28] : memref<16x128xf32, #tpu.memory_space<vmem>>, vector<16x128xf32>
      tpu.vector_store %arg10[%c0_27, %c0_28], %32 {strides = array<i32>} : memref<16x128xf32, #tpu.memory_space<vmem>>, vector<16x128xf32>,
    } else {
    }
    %c0 = arith.constant 0 : index
    %c0_1 = arith.constant 0 : index
    %3 = vector.load %arg9[%c0, %c0_1] : memref<16x2304xbf16, #tpu.memory_space<vmem>>, vector<16x2304xbf16>
    %c0_2 = arith.constant 0 : index
    %c0_3 = arith.constant 0 : index
    %4 = vector.load %arg4[%c0_2, %c0_3] : memref<2304x384xbf16, #tpu.memory_space<vmem>>, vector<2304x384xbf16>
    %cst = arith.constant dense<0.000000e+00> : vector<16x384xf32>
    %5 = tpu.matmul %3, %4, %cst {dimension_numbers = #tpu.dot_dimension_numbers<[1], [0], [0], [1], [0, 0, 1, 1], [], []>} : vector<16x2304xbf16>, vector<2304x384xbf16>, vector<16x384xf32> -> vector<16x384xf32>
    %c0_4 = arith.constant 0 : index
    %c0_5 = arith.constant 0 : index
    %6 = vector.load %arg5[%c0_4, %c0_5] : memref<1x384xf32, #tpu.memory_space<vmem>>, vector<1x384xf32>
    %7 = vector.broadcast %6 : vector<1x384xf32> to vector<16x384xf32>
    %8 = arith.addf %5, %7 : vector<16x384xf32>
    %cst_6 = arith.constant 0.000000e+00 : f32
    %9 = vector.broadcast %cst_6 : f32 to vector<16x384xf32>
    %10 = arith.maximumf %8, %9 : vector<16x384xf32>
    %11 = arith.truncf %10 : vector<16x384xf32> to vector<16x384xbf16>
    %c0_7 = arith.constant 0 : index
    %c0_8 = arith.constant 0 : index
    %12 = vector.load %arg10[%c0_7, %c0_8] : memref<16x128xf32, #tpu.memory_space<vmem>>, vector<16x128xf32>
    %c0_9 = arith.constant 0 : index
    %c0_10 = arith.constant 0 : index
    %13 = vector.load %arg6[%c0_9, %c0_10] : memref<384x128xbf16, #tpu.memory_space<vmem>>, vector<384x128xbf16>
    %cst_11 = arith.constant dense<0.000000e+00> : vector<16x128xf32>
    %14 = tpu.matmul %11, %13, %cst_11 {dimension_numbers = #tpu.dot_dimension_numbers<[1], [0], [0], [1], [0, 0, 1, 1], [], []>} : vector<16x384xbf16>, vector<384x128xbf16>, vector<16x128xf32> -> vector<16x128xf32>
    %15 = arith.addf %12, %14 : vector<16x128xf32>
    %c0_12 = arith.constant 0 : index
    %c0_13 = arith.constant 0 : index
    %16 = vector.load %arg10[%c0_12, %c0_13] : memref<16x128xf32, #tpu.memory_space<vmem>>, vector<16x128xf32>
    tpu.vector_store %arg10[%c0_12, %c0_13], %15 {strides = array<i32>} : memref<16x128xf32, #tpu.memory_space<vmem>>, vector<16x128xf32>,
    %c2_i32 = arith.constant 2 : i32
    %17 = arith.cmpi eq, %arg0, %c2_i32 : i32
    %18 = arith.extui %17 : i1 to i32
    %c0_i32_14 = arith.constant 0 : i32
    %19 = arith.cmpi ne, %18, %c0_i32_14 : i32
    scf.if %19 {
      %c0_15 = arith.constant 0 : index
      %c0_16 = arith.constant 0 : index
      %20 = vector.load %arg10[%c0_15, %c0_16] : memref<16x128xf32, #tpu.memory_space<vmem>>, vector<16x128xf32>
      %c0_17 = arith.constant 0 : index
      %c0_18 = arith.constant 0 : index
      %21 = vector.load %arg8[%c0_17, %c0_18] : memref<16x128xf32, #tpu.memory_space<vmem>>, vector<16x128xf32>
      tpu.vector_store %arg8[%c0_17, %c0_18], %20 {strides = array<i32>} : memref<16x128xf32, #tpu.memory_space<vmem>>, vector<16x128xf32>,
    } else {
    }
    return
  }
  func.func @transform_0(%arg0: i32) -> (i32, i32) {
    %c0_i32 = arith.constant 0 : i32
    %c0_i32_0 = arith.constant 0 : i32
    %c0_i32_1 = arith.constant 0 : i32
    return %c0_i32, %c0_i32_0 : i32, i32
  }
  func.func @transform_1(%arg0: i32) -> (i32, i32) {
    %c0_i32 = arith.constant 0 : i32
    %c0_i32_0 = arith.constant 0 : i32
    %c0_i32_1 = arith.constant 0 : i32
    return %c0_i32, %c0_i32_0 : i32, i32
  }
  func.func @transform_2(%arg0: i32) -> (i32, i32) {
    %c0_i32 = arith.constant 0 : i32
    %c0_i32_0 = arith.constant 0 : i32
    %c0_i32_1 = arith.constant 0 : i32
    return %c0_i32, %c0_i32_0 : i32, i32
  }
  func.func @transform_3(%arg0: i32) -> (i32, i32) {
    %c0_i32 = arith.constant 0 : i32
    %c0_i32_0 = arith.constant 0 : i32
    return %c0_i32, %arg0 : i32, i32
  }
  func.func @transform_4(%arg0: i32) -> (i32, i32) {
    %c0_i32 = arith.constant 0 : i32
    %c0_i32_0 = arith.constant 0 : i32
    return %c0_i32, %arg0 : i32, i32
  }
  func.func @transform_5(%arg0: i32) -> (i32, i32) {
    %c0_i32 = arith.constant 0 : i32
    %c0_i32_0 = arith.constant 0 : i32
    return %arg0, %c0_i32 : i32, i32
  }
  func.func @transform_6(%arg0: i32) -> (i32, i32) {
    %c0_i32 = arith.constant 0 : i32
    %c0_i32_0 = arith.constant 0 : i32
    %c0_i32_1 = arith.constant 0 : i32
    return %c0_i32, %c0_i32_0 : i32, i32
  }
  func.func @transform_7(%arg0: i32) -> (i32, i32) {
    %c0_i32 = arith.constant 0 : i32
    %c0_i32_0 = arith.constant 0 : i32
    %c0_i32_1 = arith.constant 0 : i32
    return %c0_i32, %c0_i32_0 : i32, i32
  }
}

</mosaic_0001>

<bundles_post_ra>
// kernel: predictor_forward.1
= control target key start
LH: loop header
LB: loop body
LE: loop exit
PB: predicated region body
PF: predicated region fallthrough
CT: control target
= control target key end

     0   :  { %12 = vsyncpa [#allocation5], 0  ;;  %s8436_s0 = inlined_call_operand.vmem [shape: bf16[16,64], index: 0, kind: input, shape index: {}]   ;;  %s8437_s1 = inlined_call_operand.hbm [shape: bf16[64,2304], index: 1, kind: input, shape index: {}]   ;;  %s8438_s2 = inlined_call_operand.hbm [shape: f32[1,2304], index: 2, kind: input, shape index: {}]   ;;  %s8439_s3 = inlined_call_operand.hbm [shape: bf16[2304,1152], index: 3, kind: input, shape index: {}]   ;;  %s8440_s4 = inlined_call_operand.hbm [shape: f32[1,1152], index: 4, kind: input, shape index: {}]   ;;  %s8441_s5 = inlined_call_operand.hbm [shape: bf16[1152,128], index: 5, kind: input, shape index: {}]   ;;  %s8442_s6 = inlined_call_operand.hbm [shape: f32[1,128], index: 6, kind: input, shape index: {}]   ;;  %s8443_s7 = inlined_call_operand.vmem [shape: f32[16,128], index: 7, kind: output, shape index: {}]  }
   0x1   :  { %13 = vsyncpa [#allocation7], 0  ;;  %s7635_s24 = smov 0   ;;  %s7637_s25 = smov 0  }
   0x2   :  { %s7639_s26 = smov 0   ;;  %s7641_s27 = smov 0  }
   0x3 LB: > { %8454 = sst [smem:[#allocation16_spill]] %s7573_s26  ;;  %s7654_s28 = sadd.s32 4294967295, %s7577_s27   ;;  %s7577_s27 = sphi %s7641_s27, %s8476_s27   ;;  %s7573_s26 = sphi %s7639_s26, %s8478_s26   ;;  %s7569_s25 = sphi %s7637_s25, %s8480_s25   ;;  %s7565_s24 = sphi %s7635_s24, %s8479_s24  }
   0x4   : > { %s7657_s29 = sadd.s32 1, %s7577_s27   ;;  %s89_s8 = sadd.s32 1, %s7573_s26 }
   0x5   : > { %8455 = sst [smem:[#allocation17_spill]] %s7657_s29  ;;  %s86_s30 = ssub.s32 %s7577_s27, %s7657_s29 }
   0x6   : > { %p87_p0 = scmp.eq.s32.totalorder %s86_s30, 0  ;;  %p96_p1 = scmp.ne.s32.totalorder %s7573_s26, %s7569_s25 }
   0x7   : > { %p97_p2 = scmp.eq.s32.totalorder %s7577_s27, 0  ;;  %p102_p3 = scmp.ne.s32.totalorder %s7569_s25, %s7565_s24 }
   0x8   : > { %s7667_s9 = scalar_select %p87_p0, %s7573_s26, %s89_s8  }
   0x9   : > { %p7669_p4 = por %p97_p2, %p96_p1  ;;  %p8444_p5 = scmp.eq.s32.totalorder %s7654_s28, 0 }
   0xa   : > { %8456 = sst [smem:[#allocation18_spill]] %s7667_s9  ;;  %p5664_p6 = scmp.ge.s32.totalorder %s7577_s27, 1 }
   0xb   : > { %p207_p7 = scmp.lt.s32.totalorder %s7577_s27, 4  ;;  %p7678_p8 = por %p8444_p5, %p102_p3 }
   0xc   : > { %s7579_s13 = smov [#allocation4]   ;;  %p6572_p13 = scmp.lt.s32.totalorder %s7577_s27, 3 }
   0xd   : > { %s8458_s11 = scalar_select %p7678_p8, 1, 0 }
   0xe   : > { %p7683_p10 = pnand %p5664_p6, %p207_p7  ;;  %s222_s14 = sshll.u32 %s7579_s13, 4  ;;  %s223_s14 = int_to_ptr.vmem [resolvable:$true] %s222_s14 }
   0xf   : > { %s258_s16 = sand.u32 1, %s7577_s27   ;;  %s7698_s17 = sand.u32 1, %s7573_s26  }
  0x10   : > { %s8459_s12 = scalar_select %p7683_p10, 1, 0 }
  0x11   : > { %p6549_p11 = pneg %p7683_p10  ;;  %p7702_p0 = pnand %p6572_p13, %p7669_p4 }
  0x12   : > { %s7380_s19 = scalar_lea.vmem %s223_s14, 9216  ;;  %p7388_p7 = scmp.lt.s32.totalorder %s223_s14, %s223_s14 }
  0x13   : > { %p7691_p12 = pnand %p6549_p11, %p8444_p5  ;;  %p7381_p2 = scmp.ne.s32.totalorder %s223_s14, %s7380_s19 }
  0x14   : > { %p7389_p11 = scmp.lt.s32.totalorder %s7380_s19, %s7380_s19 }
  0x15   : > { %s8460_s15 = scalar_select %p7691_p12, 1, 0 }
  0x16   : > { %p8448_p1 = pneg %p7691_p12  ;;  %p7390_p9 = por %p7389_p11, %p7388_p7 }
  0x18   : > { %p7383_p3 = pnand %p7381_p2, %p8448_p1 }
  0x1a   : > { %p7384_p6 = pneg %p7383_p3 }
  0x1c   : > { %p7391_p5 = pnand %p7390_p9, %p7384_p6 }
  0x1e   : > { %7394 = shalt.err (!%p7391_p5)
}
  0x1f   : > { %s7580_s20 = smov 1152   ;;  %s7581_s21 = smov 72  }
  0x20   : > { %6552 = dma.hbm_to_vmem [thread:$0]  (!%p7691_p12), %s8437_s1, 9216, %s223_s14, [#allocation5], %s7580_s20, %s7580_s20, %s7581_s21  }
  0x21   : > { %s6525_s24 = smul.u32 3456, %s7698_s17  ;;  %s7725_s26 = scalar_lea.sflag [#allocation5], %s258_s16 }
  0x22   : > { %s6255_s30 = smul.u32 192, %s7577_s27  ;;  %p7731_p5 = pneg %p7702_p0 }
  0x23   : > { %s262_s19 = scalar_lea.vmem [#allocation8], %s6525_s24  ;;  %s7400_s22 = scalar_lea.hbm %s8439_s3, 165888 }
  0x24   : > { %s7721_s13 = scalar_lea.hbm %s8439_s3, %s6255_s30  ;;  %s269_s9 = sshll.u32 %s262_s19, 4  ;;  %s7723_s9 = int_to_ptr.vmem [resolvable:$true] %s269_s9 }
  0x25   : > { %s7395_s29 = scalar_lea.hbm %s7721_s13, 55296  ;;  %p7401_p2 = scmp.lt.s32.totalorder %s7721_s13, %s8439_s3 }
  0x26   : > { %p7396_p4 = scmp.ne.s32.totalorder %s7721_s13, %s7395_s29  ;;  %p7402_p3 = scmp.lt.s32.totalorder %s7400_s22, %s7395_s29 }
  0x28   : > { %p7398_p9 = pnand %p7731_p5, %p7396_p4  ;;  %p7403_p6 = por %p7402_p3, %p7401_p2 }
  0x2a   : > { %p7399_p13 = pneg %p7398_p9 }
  0x2c   : > { %p7404_p7 = pnand %p7403_p6, %p7399_p13 }
  0x2e   : > { %7407 = shalt.err (!%p7404_p7)
}
  0x2f   : > { %s7408_s16 = scalar_lea.vmem %s7723_s9, 55296  ;;  %s7582_s30 = smov [#allocation8]  }
  0x30   : > { %p7409_p11 = scmp.ne.s32.totalorder %s7723_s9, %s7408_s16  ;;  %s7413_s8 = sshll.u32 %s7582_s30, 4  ;;  %s7414_s8 = int_to_ptr.vmem [resolvable:$false] %s7413_s8 }
  0x31   : > { %s7415_s10 = scalar_lea.vmem %s7414_s8, 110592  ;;  %p7416_p1 = scmp.lt.s32.totalorder %s7723_s9, %s7414_s8 }
  0x32   : > { %p7411_p4 = pnand %p7409_p11, %p7731_p5  ;;  %p7417_p8 = scmp.lt.s32.totalorder %s7415_s10, %s7408_s16 }
  0x34   : > { %p7412_p9 = pneg %p7411_p4  ;;  %p7418_p10 = por %p7417_p8, %p7416_p1 }
  0x36   : > { %p7419_p12 = pnand %p7418_p10, %p7412_p9 }
  0x38   : > { %7422 = shalt.err (!%p7419_p12)
}
  0x39   : > { %s7583_s29 = smov 576   ;;  %s7584_s19 = smov 192  }
  0x3a   : > { %s7585_s20 = smov 12   ;;  %s7586_s21 = smov [#allocation6]  }
  0x3b   : > { %6562 = dma.hbm_to_vmem [thread:$0]  (!%p7702_p0), %s7721_s13, 55296, %s7723_s9, %s7725_s26, %s7583_s29, %s7584_s19, %s7585_s20  }
  0x3c   : > { %s236_s22 = sshll.u32 %s7586_s21, 4  ;;  %s6526_s23 = smul.u32 3, %s7698_s17  ;;  %s237_s22 = int_to_ptr.vmem [resolvable:$true] %s236_s22 }
  0x3d   : > { %s6256_s24 = smul.u32 48, %s7577_s27  ;;  %s7434_s16 = scalar_lea.vmem %s237_s22, 288 }
  0x3e   : > { %p7435_p8 = scmp.ne.s32.totalorder %s237_s22, %s7434_s16  ;;  %p8463_p10 = scmp.ne.s32.totalorder %s8460_s15, 0 }
  0x3f   : > { %p7442_p2 = scmp.lt.s32.totalorder %s237_s22, %s237_s22  ;;  %p7443_p3 = scmp.lt.s32.totalorder %s7434_s16, %s7434_s16 }
  0x40   : > { %p8464_p12 = pneg %p8463_p10 }
  0x41   : > { %p7444_p6 = por %p7443_p3, %p7442_p2 }
  0x42   : > { %p7437_p1 = pnand %p7435_p8, %p8464_p12 }
  0x44   : > { %p7438_p13 = pneg %p7437_p1 }
  0x46   : > { %p7445_p7 = pnand %p7444_p6, %p7438_p13 }
  0x48   : > { %7448 = shalt.err (!%p7445_p7)
}
  0x49   : > { %6555 = dma.hbm_to_vmem [thread:$0]  (!%p8463_p10), %s8438_s2, 288, %s237_s22, [#allocation7]  }
  0x4a   : > { %s7767_s10 = scalar_lea.hbm %s8440_s4, %s6256_s24  ;;  %s283_s29 = scalar_lea.vmem [#allocation9], %s6526_s23 }
  0x4b   : > { %s291_s19 = sshll.u32 %s283_s29, 4  ;;  %s7587_s20 = smov [#allocation11]   ;;  %s292_s19 = int_to_ptr.vmem [resolvable:$true] %s291_s19 }
  0x4c   : > { %s247_s21 = sshll.u32 %s7587_s20, 4  ;;  %s7449_s16 = scalar_lea.hbm %s7767_s10, 48  ;;  %s248_s21 = int_to_ptr.vmem [resolvable:$true] %s247_s21 }
  0x4d   : > { %p7450_p11 = scmp.ne.s32.totalorder %s7767_s10, %s7449_s16  ;;  %s7454_s9 = scalar_lea.hbm %s8440_s4, 144 }
  0x4e   : > { %p7455_p8 = scmp.lt.s32.totalorder %s7767_s10, %s8440_s4  ;;  %p7456_p12 = scmp.lt.s32.totalorder %s7454_s9, %s7449_s16 }
  0x4f   : > { %p7452_p4 = pnand %p7450_p11, %p7731_p5 }
  0x50   : > { %p7457_p1 = por %p7456_p12, %p7455_p8 }
  0x51   : > { %p7453_p9 = pneg %p7452_p4 }
  0x53   : > { %p7458_p13 = pnand %p7457_p1, %p7453_p9 }
  0x55   : > { %7461 = shalt.err (!%p7458_p13)
}
  0x56   : > { %s7462_s23 = scalar_lea.vmem %s292_s19, 48  ;;  %s7588_s8 = smov [#allocation9]  }
  0x57   : > { %p7463_p2 = scmp.ne.s32.totalorder %s292_s19, %s7462_s23  ;;  %s7467_s29 = sshll.u32 %s7588_s8, 4  ;;  %s7468_s29 = int_to_ptr.vmem [resolvable:$false] %s7467_s29 }
  0x58   : > { %s7469_s20 = scalar_lea.vmem %s7468_s29, 96  ;;  %p7470_p7 = scmp.lt.s32.totalorder %s292_s19, %s7468_s29 }
  0x59   : > { %p7465_p3 = pnand %p7463_p2, %p7731_p5  ;;  %p7471_p11 = scmp.lt.s32.totalorder %s7469_s20, %s7462_s23 }
  0x5b   : > { %p7466_p6 = pneg %p7465_p3  ;;  %p7472_p4 = por %p7471_p11, %p7470_p7 }
  0x5d   : > { %p7473_p10 = pnand %p7472_p4, %p7466_p6 }
  0x5f   : > { %7476 = shalt.err (!%p7473_p10)
}
  0x60   : > { %6565 = dma.hbm_to_vmem [thread:$0]  (!%p7702_p0), %s7767_s10, 48, %s292_s19, %s7725_s26  }
  0x61   : > { %s6527_s16 = smul.u32 192, %s7698_s17  ;;  %s7488_s30 = scalar_lea.vmem %s248_s21, 16 }
  0x62   : > { %p7489_p9 = scmp.ne.s32.totalorder %s248_s21, %s7488_s30  ;;  %p8465_p8 = scmp.ne.s32.totalorder %s8460_s15, 0 }
  0x63   : > { %s7495_s22 = scalar_lea.vmem %s248_s21, 32  ;;  %p7496_p2 = scmp.lt.s32.totalorder %s248_s21, %s248_s21 }
  0x64   : > { %p8466_p12 = pneg %p8465_p8  ;;  %p7497_p3 = scmp.lt.s32.totalorder %s7495_s22, %s7488_s30 }
  0x66   : > { %p7491_p1 = pnand %p7489_p9, %p8466_p12  ;;  %p7498_p6 = por %p7497_p3, %p7496_p2 }
  0x68   : > { %p7492_p13 = pneg %p7491_p1 }
  0x6a   : > { %p7499_p10 = pnand %p7498_p6, %p7492_p13 }
  0x6c   : > { %7502 = shalt.err (!%p7499_p10)
}
  0x6d   : > { %6558 = dma.hbm_to_vmem [thread:$0]  (!%p8465_p8), %s8442_s6, 16, %s248_s21, [#allocation7]  }
  0x6e   : > { %s6257_s17 = smul.u32 3072, %s7577_s27  ;;  %s302_s10 = scalar_lea.vmem [#allocation10], %s6527_s16 }
  0x6f   : > { %s309_s19 = sshll.u32 %s302_s10, 4  ;;  %s7508_s27 = scalar_lea.hbm %s8441_s5, 9216  ;;  %s7801_s19 = int_to_ptr.vmem [resolvable:$true] %s309_s19 }
  0x70   : > { %s7799_s8 = scalar_lea.hbm %s8441_s5, %s6257_s17 }
  0x71   : > { %s7503_s15 = scalar_lea.hbm %s7799_s8, 3072  ;;  %p7509_p9 = scmp.lt.s32.totalorder %s7799_s8, %s8441_s5 }
  0x72   : > { %p7504_p7 = scmp.ne.s32.totalorder %s7799_s8, %s7503_s15  ;;  %p7510_p8 = scmp.lt.s32.totalorder %s7508_s27, %s7503_s15 }
  0x74   : > { %p7506_p11 = pnand %p7504_p7, %p7731_p5  ;;  %p7511_p12 = por %p7510_p8, %p7509_p9 }
  0x76   : > { %p7507_p4 = pneg %p7506_p11 }
  0x78   : > { %p7512_p1 = pnand %p7511_p12, %p7507_p4 }
  0x7a   : > { %7515 = shalt.err (!%p7512_p1)
}
  0x7b   : > { %s7516_s30 = scalar_lea.vmem %s7801_s19, 3072  ;;  %s7589_s22 = smov [#allocation10]  }
  0x7c   : > { %p7517_p13 = scmp.ne.s32.totalorder %s7801_s19, %s7516_s30  ;;  %s7521_s9 = sshll.u32 %s7589_s22, 4  ;;  %s7522_s9 = int_to_ptr.vmem [resolvable:$false] %s7521_s9 }
  0x7d   : > { %s7523_s13 = scalar_lea.vmem %s7522_s9, 6144  ;;  %p7524_p6 = scmp.lt.s32.totalorder %s7801_s19, %s7522_s9 }
  0x7e   : > { %p7519_p2 = pnand %p7517_p13, %p7731_p5  ;;  %p7525_p10 = scmp.lt.s32.totalorder %s7523_s13, %s7516_s30 }
  0x80   : > { %p7520_p3 = pneg %p7519_p2  ;;  %p7526_p7 = por %p7525_p10, %p7524_p6 }
  0x82   : > { %p7527_p11 = pnand %p7526_p7, %p7520_p3 }
  0x84   : > { %7530 = shalt.err (!%p7527_p11)
}
  0x85   : > { %s7590_s17 = smov 64   ;;  %s7591_s10 = smov 4  }
  0x86   : > { %6568 = dma.hbm_to_vmem [thread:$0]  (!%p7702_p0), %s7799_s8, 3072, %s7801_s19, %s7725_s26, %s7590_s17, %s7590_s17, %s7591_s10  }
  0x87   : > { %p8467_p5 = scmp.ne.s32.totalorder %s8459_s12, 0 }
  0x88   : > { %p8468_p4 = scmp.eq.s32.totalorder (!%p8467_p5), %s7654_s28, 0 }
  0x89   : > { %321 = sbr.rel (%p8467_p5) target bundleno = 1317 (0x525), region = 48 }
  0x8e   : > { %7548 = dma.done.wait (%p8468_p4), [#allocation5], 9216   ;;  %p8469_p9 = pmov %p8468_p4 }
  0x8f   : > { %p8470_p8 = pmov %p8468_p4 }
  0x90   : > { %7550 = vsyncadd (%p8469_p9), [#allocation5], 4294958080 }
  0x91   : > { %7552 = dma.done.wait (%p8470_p8), [#allocation7], 288   ;;  %p8471_p12 = pmov %p8468_p4 }
  0x92   : > { %s331_s18 = sand.u32 1, %s7654_s28   ;;  %s333_s26 = sand.u32 1, %s7569_s25  }
  0x93   : > { %7554 = vsyncadd (%p8471_p12), [#allocation7], 4294967008  ;;  %s6528_s14 = smul.u32 3456, %s333_s26  ;;  %s332_s12 = scalar_lea.sflag [#allocation5], %s331_s18 }
  0x94   : > { %p8472_p0 = scmp.ne.s32.totalorder %s8458_s11, 0 }
  0x95   : > { %s7836_s19 = scalar_lea.vmem [#allocation8], %s6528_s14 }
  0x96   : > { %7556 = dma.done.wait (%p8472_p0), %s332_s12, 58416  }
  0x97   : > { %7558 = vsyncadd (%p8472_p0), %s332_s12, 4294908880  ;;  %s6529_s24 = smul.u32 3, %s333_s26  ;;  %p8473_p1 = pmov %p8468_p4 }
  0x98   : > { %s6530_s23 = smul.u32 192, %s333_s26 }
  0x99   : > { %s7842_s8 = scalar_lea.vmem [#allocation9], %s6529_s24 }
  0x9a   : > { %s7844_s15 = scalar_lea.vmem [#allocation10], %s6530_s23 }
  0x9b   : > { %7560 = dma.done.wait (%p8473_p1), [#allocation7], 16   ;;  %p8474_p13 = pmov %p8473_p1 }
  0x9c   : > { %p8475_p2 = scmp.ne.s32.totalorder %s7654_s28, 0 }
  0x9d   : > { %7562 = vsyncadd (%p8474_p13), [#allocation7], 4294967280 }
  0x9e   : > { %400 = sbr.rel (%p8475_p2) target bundleno = 451 (0x1c3), region = 76 }
  0xa3   : > { %v6621_v0 = vld [vmem:[#allocation4 + $0x1b4] ss:$72 sps:$4 sm:$0xff]   ;;  %v6623_v1 = vld [vmem:[#allocation4 + $0x1b0] ss:$72 sps:$4 sm:$0xff]   ;;  %v7592_v2 = vmov 0   ;;  %v7857_v17 = vld [vmem:[%s8436_s0] sm:$0xff]  }
  0xa4   : > { %972 = vmatprep.mubr.bf16.mxu0 %v7592_v2  ;;  %1015 = vmatprep.mubr.bf16.mxu1 %v7592_v2  ;;  %v6624_v3 = vld [vmem:[#allocation4 + $0x124] ss:$72 sps:$4 sm:$0xff]   ;;  %v6626_v4 = vld [vmem:[#allocation4 + $0x120] ss:$72 sps:$4 sm:$0xff]   ;;  %v6627_v5 = vld [vmem:[#allocation4 + $0x94] ss:$72 sps:$4 sm:$0xff]  }
  0xa5   : > { %948 = vmatprep.subr.bf16.mxu0 %v6621_v0  ;;  %v6630_v6 = vld [vmem:[#allocation4 + $0x1bc] ss:$72 sps:$4 sm:$0xff]   ;;  %v6632_v7 = vld [vmem:[#allocation4 + $0x1b8] ss:$72 sps:$4 sm:$0xff]   ;;  %v6636_v9 = vld [vmem:[#allocation4 + $0x12c] ss:$72 sps:$4 sm:$0xff]  }
  0xa6   : > { %949 = vmatpush1.bf16.msra.mxu0 %v6623_v1  ;;  %v6629_v8 = vld [vmem:[#allocation4 + $0x90] ss:$72 sps:$4 sm:$0xff]   ;;  %991 = vmatprep.subr.bf16.mxu1 %v6630_v6  ;;  %v6633_v11 = vld [vmem:[#allocation4 + $0x4] ss:$72 sps:$4 sm:$0xff]   ;;  %v6635_v12 = vld [vmem:[#allocation4] ss:$72 sps:$4 sm:$0xff]  }
  0xa7   : > { %950 = vmatprep.subr.bf16.mxu0 %v6624_v3  ;;  %992 = vmatpush1.bf16.msra.mxu1 %v6632_v7  ;;  %v6638_v10 = vld [vmem:[#allocation4 + $0x128] ss:$72 sps:$4 sm:$0xff]   ;;  %v6643_v13 = vld [vmem:[#allocation4 + $0x9c] ss:$72 sps:$4 sm:$0xff]   ;;  %v6645_v14 = vld [vmem:[#allocation4 + $0x98] ss:$72 sps:$4 sm:$0xff]  }
  0xa8   : > { %993 = vmatprep.subr.bf16.mxu1 %v6636_v9  ;;  %v6642_v15 = vld [vmem:[#allocation4 + $0x1c4] ss:$72 sps:$4 sm:$0xff]   ;;  %vm936_vm0 = vcmask 523264   ;;  %v6640_v18 = vld [vmem:[#allocation4 + $0x1c0] ss:$72 sps:$4 sm:$0xff]  }
  0xa9   : > { %v6649_v16 = vld [vmem:[#allocation4 + $0xc] ss:$72 sps:$4 sm:$0xff]   ;;  %v6651_v19 = vld [vmem:[#allocation4 + $0x8] ss:$72 sps:$4 sm:$0xff]   ;;  %v6663_v25 = vld [vmem:[#allocation4 + $0x13c] ss:$72 sps:$4 sm:$0xff]  }
  0xaa   : > { %951 = vmatpush1.bf16.msra.mxu0 %v6626_v4  ;;  %v6648_v20 = vld [vmem:[#allocation4 + $0x134] ss:$72 sps:$4 sm:$0xff]   ;;  %v6646_v22 = vld [vmem:[#allocation4 + $0x130] ss:$72 sps:$4 sm:$0xff]   ;;  %v6654_v24 = vld [vmem:[#allocation4 + $0xa4] ss:$72 sps:$4 sm:$0xff]  }
  0xab   : > { %952 = vmatprep.subr.bf16.mxu0 %v6627_v5  ;;  %994 = vmatpush1.bf16.msra.mxu1 %v6638_v10  ;;  %v6657_v21 = vld [vmem:[#allocation4 + $0x1cc] ss:$72 sps:$4 sm:$0xff]   ;;  %v6655_v23 = vld [vmem:[#allocation4 + $0x1c8] ss:$72 sps:$4 sm:$0xff]   ;;  %v6661_v27 = vld [vmem:[#allocation4 + $0x138] ss:$72 sps:$4 sm:$0xff]  }
  0xac   : > { %995 = vmatprep.subr.bf16.mxu1 %v6643_v13  ;;  %v6652_v26 = vld [vmem:[#allocation4 + $0xa0] ss:$72 sps:$4 sm:$0xff]   ;;  %v6660_v28 = vld [vmem:[#allocation4 + $0x14] ss:$72 sps:$4 sm:$0xff]   ;;  %v6658_v30 = vld [vmem:[#allocation4 + $0x10] ss:$72 sps:$4 sm:$0xff]  }
  0xad   : > { %v6669_v29 = vld [vmem:[#allocation4 + $0xac] ss:$72 sps:$4 sm:$0xff]   ;;  %v6667_v31 = vld [vmem:[#allocation4 + $0xa8] ss:$72 sps:$4 sm:$0xff]   ;;  %v6675_v33 = vld [vmem:[#allocation4 + $0x1c] ss:$72 sps:$4 sm:$0xff]  }
  0xae   : > { %953 = vmatpush1.bf16.msra.mxu0 %v6629_v8  ;;  %v6666_v32 = vld [vmem:[#allocation4 + $0x1d4] ss:$72 sps:$4 sm:$0xff]   ;;  %v6664_v34 = vld [vmem:[#allocation4 + $0x1d0] ss:$72 sps:$4 sm:$0xff]   ;;  %v6672_v36 = vld [vmem:[#allocation4 + $0x144] ss:$72 sps:$4 sm:$0xff]  }
  0xaf   : > { %954 = vmatprep.subr.bf16.mxu0 %v6633_v11  ;;  %996 = vmatpush1.bf16.msra.mxu1 %v6645_v14  ;;  %v6673_v35 = vld [vmem:[#allocation4 + $0x18] ss:$72 sps:$4 sm:$0xff]   ;;  %v6681_v37 = vld [vmem:[#allocation4 + $0x1dc] ss:$72 sps:$4 sm:$0xff]   ;;  %v6687_v41 = vld [vmem:[#allocation4 + $0x14c] ss:$72 sps:$4 sm:$0xff]  }
  0xb0   : > { %997 = vmatprep.subr.bf16.mxu1 %v6649_v16  ;;  %v6670_v38 = vld [vmem:[#allocation4 + $0x140] ss:$72 sps:$4 sm:$0xff]   ;;  %v6678_v40 = vld [vmem:[#allocation4 + $0xb4] ss:$72 sps:$4 sm:$0xff]   ;;  %v6676_v42 = vld [vmem:[#allocation4 + $0xb0] ss:$72 sps:$4 sm:$0xff]  }
  0xb1   : > { %v6679_v39 = vld [vmem:[#allocation4 + $0x1d8] ss:$72 sps:$4 sm:$0xff]   ;;  %v6685_v43 = vld [vmem:[#allocation4 + $0x148] ss:$72 sps:$4 sm:$0xff]   ;;  %v6684_v44 = vld [vmem:[#allocation4 + $0x24] ss:$72 sps:$4 sm:$0xff]  }
  0xb2   : > { %955 = vmatpush1.bf16.msra.mxu0 %v6635_v12  ;;  %v6693_v45 = vld [vmem:[#allocation4 + $0xbc] ss:$72 sps:$4 sm:$0xff]   ;;  %v6682_v46 = vld [vmem:[#allocation4 + $0x20] ss:$72 sps:$4 sm:$0xff]   ;;  %v6699_v49 = vld [vmem:[#allocation4 + $0x2c] ss:$72 sps:$4 sm:$0xff]   ;;  %v481_v12 = vlaneseq }
  0xb3   : > { %1034 = vmatprep.subr.bf16.mxu0 %v6642_v15  ;;  %998 = vmatpush1.bf16.msra.mxu1 %v6651_v19  ;;  %v6691_v47 = vld [vmem:[#allocation4 + $0xb8] ss:$72 sps:$4 sm:$0xff]   ;;  %v6690_v48 = vld [vmem:[#allocation4 + $0x1e4] ss:$72 sps:$4 sm:$0xff]   ;;  %v6697_v51 = vld [vmem:[#allocation4 + $0x28] ss:$72 sps:$4 sm:$0xff]  }
  0xb4   : > { %1077 = vmatprep.subr.bf16.mxu1 %v6657_v21  ;;  %v6688_v50 = vld [vmem:[#allocation4 + $0x1e0] ss:$72 sps:$4 sm:$0xff]   ;;  %v6696_v52 = vld [vmem:[#allocation4 + $0x154] ss:$72 sps:$4 sm:$0xff]   ;;  %v6694_v54 = vld [vmem:[#allocation4 + $0x150] ss:$72 sps:$4 sm:$0xff]  }
  0xb5   : > { %5750 = vmatmul.mubr.msk.bf16.vlgmr.msra.gmra.mxu0 %vm936_vm0, %v7857_v17  ;;  %v6705_v53 = vld [vmem:[#allocation4 + $0x1ec] ss:$72 sps:$4 sm:$0xff]   ;;  %v6703_v55 = vld [vmem:[#allocation4 + $0x1e8] ss:$72 sps:$4 sm:$0xff]   ;;  %v6711_v57 = vld [vmem:[#allocation4 + $0x15c] ss:$72 sps:$4 sm:$0xff]  }
  0xb6   : > { %1035 = vmatpush1.bf16.msra.mxu0 %v6640_v18  ;;  %1058 = vmatprep.mubr.bf16.mxu0 %v7592_v2  ;;  %v6702_v56 = vld [vmem:[#allocation4 + $0xc4] ss:$72 sps:$4 sm:$0xff]   ;;  %v6700_v58 = vld [vmem:[#allocation4 + $0xc0] ss:$72 sps:$4 sm:$0xff]   ;;  %v6708_v60 = vld [vmem:[#allocation4 + $0x34] ss:$72 sps:$4 sm:$0xff]  }
  0xb7   : > { %1036 = vmatprep.subr.bf16.mxu0 %v6648_v20  ;;  %5751 = vmatmul.mubr.msk.bf16.vlgmr.msra.gmra.mxu1 %vm936_vm0, %v7857_v17  ;;  %v6709_v59 = vld [vmem:[#allocation4 + $0x158] ss:$72 sps:$4 sm:$0xff]   ;;  %v6717_v61 = vld [vmem:[#allocation4 + $0xcc] ss:$72 sps:$4 sm:$0xff]   ;;  %v6715_v63 = vld [vmem:[#allocation4 + $0xc8] ss:$72 sps:$4 sm:$0xff]  }
  0xb8   : > { %1078 = vmatpush1.bf16.msra.mxu1 %v6655_v23  ;;  %1101 = vmatprep.mubr.bf16.mxu1 %v7592_v2  ;;  %v6706_v62 = vld [vmem:[#allocation4 + $0x30] ss:$72 sps:$4 sm:$0xff]   ;;  %v6714_v0 = vld [vmem:[#allocation4 + $0x1f4] ss:$72 sps:$4 sm:$0xff]   ;;  %v6720_v5 = vld [vmem:[#allocation4 + $0x164] ss:$72 sps:$4 sm:$0xff]  }
  0xb9   : > { %1079 = vmatprep.subr.bf16.mxu1 %v6663_v25  ;;  %v6723_v1 = vld [vmem:[#allocation4 + $0x3c] ss:$72 sps:$4 sm:$0xff]   ;;  %v6712_v3 = vld [vmem:[#allocation4 + $0x1f0] ss:$72 sps:$4 sm:$0xff]   ;;  %v6718_v6 = vld [vmem:[#allocation4 + $0x160] ss:$72 sps:$4 sm:$0xff]  }
  0xba   : > { %1037 = vmatpush1.bf16.msra.mxu0 %v6646_v22  ;;  %v6721_v4 = vld [vmem:[#allocation4 + $0x38] ss:$72 sps:$4 sm:$0xff]   ;;  %v6726_v7 = vld [vmem:[#allocation4 + $0xd4] ss:$72 sps:$4 sm:$0xff]   ;;  %v6729_v9 = vld [vmem:[#allocation4 + $0x44] ss:$72 sps:$4 sm:$0xff]  }
  0xbb   : > { %1038 = vmatprep.subr.bf16.mxu0 %v6654_v24  ;;  %v6724_v8 = vld [vmem:[#allocation4 + $0xd0] ss:$72 sps:$4 sm:$0xff]   ;;  %v6727_v10 = vld [vmem:[#allocation4 + $0x40] ss:$72 sps:$4 sm:$0xff]   ;;  %v7884_v13 = vshrl.u32 %v481_v12, 7 }
  0xbc   : > { %1080 = vmatpush1.bf16.msra.mxu1 %v6661_v27  ;;  %v5777_v11 = vld [vmem:[#allocation11] ss:$0 sm:$0xff]  ;;  %v475_v14 = vld [vmem:[#allocation6] sm:$0xff] }
  0xbd   : > { %1081 = vmatprep.subr.bf16.mxu1 %v6669_v29  ;;  %1496 = vst [vmem:[#allocation3 + $0x8] sm:$0xff] %v5777_v11  ;;  %1497 = vst [vmem:[#allocation3] sm:$0xff] %v5777_v11  ;;  %v7890_v15 = vsub.s32 1, %v7884_v13  ;;  %v491_v18 = vsub.s32 2, %v7884_v13  ;;  %v495_v20 = vsub.s32 3, %v7884_v13 }
  0xbe   : > { %1039 = vmatpush1.bf16.msra.mxu0 %v6652_v26 }
  0xbf   : > { %1040 = vmatprep.subr.bf16.mxu0 %v6660_v28  ;;  %v488_v19 = vrot.slane %v475_v14, %v7890_v15  ;;  %v492_v22 = vrot.slane %v475_v14, %v491_v18  ;;  %v496_v28 = vrot.slane %v475_v14, %v495_v20 }
  0xc0   : > { %1082 = vmatpush1.bf16.msra.mxu1 %v6667_v31 }
  0xc1   : > { %1083 = vmatprep.subr.bf16.mxu1 %v6675_v33 }
  0xc2   : > { %1041 = vmatpush1.bf16.msra.mxu0 %v6658_v30 }
  0xc3   : > { %1120 = vmatprep.subr.bf16.mxu0 %v6666_v32 }
  0xc4   : > { %1084 = vmatpush1.bf16.msra.mxu1 %v6673_v35 }
  0xc5   : > { %5752 = vmatmul.mubr.msk.bf16.vlgmr.msra.gmra.mxu0 %vm936_vm0, %v7857_v17  ;;  %1163 = vmatprep.subr.bf16.mxu1 %v6681_v37 }
  0xc6   : > { %1121 = vmatpush1.bf16.msra.mxu0 %v6664_v34  ;;  %1144 = vmatprep.mubr.bf16.mxu0 %v7592_v2 }
  0xc7   : > { %1122 = vmatprep.subr.bf16.mxu0 %v6672_v36  ;;  %5753 = vmatmul.mubr.msk.bf16.vlgmr.msra.gmra.mxu1 %vm936_vm0, %v7857_v17 }
  0xc8   : > { %1164 = vmatpush1.bf16.msra.mxu1 %v6679_v39  ;;  %1187 = vmatprep.mubr.bf16.mxu1 %v7592_v2 }
  0xc9   : > { %1165 = vmatprep.subr.bf16.mxu1 %v6687_v41 }
  0xca   : > { %1123 = vmatpush1.bf16.msra.mxu0 %v6670_v38 }
  0xcb   : > { %1124 = vmatprep.subr.bf16.mxu0 %v6678_v40 }
  0xcc   : > { %1166 = vmatpush1.bf16.msra.mxu1 %v6685_v43 }
  0xcd   : > { %1167 = vmatprep.subr.bf16.mxu1 %v6693_v45 }
  0xce   : > { %1125 = vmatpush1.bf16.msra.mxu0 %v6676_v42  ;;  %v499_v42 = vsub.s32 4, %v7884_v13 }
  0xcf   : > { %1126 = vmatprep.subr.bf16.mxu0 %v6684_v44 }
  0xd0   : > { %1168 = vmatpush1.bf16.msra.mxu1 %v6691_v47 }
  0xd1   : > { %1169 = vmatprep.subr.bf16.mxu1 %v6699_v49 }
  0xd2   : > { %1127 = vmatpush1.bf16.msra.mxu0 %v6682_v46 }
  0xd3   : > { %1206 = vmatprep.subr.bf16.mxu0 %v6690_v48  ;;  %v503_v48 = vsub.s32 5, %v7884_v13 }
  0xd4   : > { %1170 = vmatpush1.bf16.msra.mxu1 %v6697_v51 }
  0xd5   : > { %5754 = vmatmul.mubr.msk.bf16.vlgmr.msra.gmra.mxu0 %vm936_vm0, %v7857_v17  ;;  %1249 = vmatprep.subr.bf16.mxu1 %v6705_v53 }
  0xd6   : > { %1207 = vmatpush1.bf16.msra.mxu0 %v6688_v50  ;;  %1230 = vmatprep.mubr.bf16.mxu0 %v7592_v2  ;;  %v500_v50 = vrot.slane %v475_v14, %v499_v42 }
  0xd7   : > { %1208 = vmatprep.subr.bf16.mxu0 %v6696_v52  ;;  %5755 = vmatmul.mubr.msk.bf16.vlgmr.msra.gmra.mxu1 %vm936_vm0, %v7857_v17  ;;  %v507_v52 = vsub.s32 6, %v7884_v13 }
  0xd8   : > { %1250 = vmatpush1.bf16.msra.mxu1 %v6703_v55  ;;  %1273 = vmatprep.mubr.bf16.mxu1 %v7592_v2 }
  0xd9   : > { %1251 = vmatprep.subr.bf16.mxu1 %v6711_v57 }
  0xda   : > { %1209 = vmatpush1.bf16.msra.mxu0 %v6694_v54  ;;  %v504_v54 = vrot.slane %v475_v14, %v503_v48 }
  0xdb   : > { %1210 = vmatprep.subr.bf16.mxu0 %v6702_v56  ;;  %v511_v56 = vsub.s32 7, %v7884_v13 }
  0xdc   : > { %1252 = vmatpush1.bf16.msra.mxu1 %v6709_v59 }
  0xdd   : > { %1253 = vmatprep.subr.bf16.mxu1 %v6717_v61 }
  0xde   : > { %1211 = vmatpush1.bf16.msra.mxu0 %v6700_v58  ;;  %v508_v58 = vrot.slane %v475_v14, %v507_v52 }
  0xdf   : > { %1212 = vmatprep.subr.bf16.mxu0 %v6708_v60 }
  0xe0   : > { %1254 = vmatpush1.bf16.msra.mxu1 %v6715_v63 }
  0xe1   : > { %1255 = vmatprep.subr.bf16.mxu1 %v6723_v1 }
  0xe2   : > { %1213 = vmatpush1.bf16.msra.mxu0 %v6706_v62 }
  0xe3   : > { %1292 = vmatprep.subr.bf16.mxu0 %v6714_v0  ;;  %v512_v0 = vrot.slane %v475_v14, %v511_v56 }
  0xe4   : > { %1256 = vmatpush1.bf16.msra.mxu1 %v6721_v4 }
  0xe5   : > { %5756 = vmatmul.mubr.msk.bf16.vlgmr.msra.gmra.mxu0 %vm936_vm0, %v7857_v17 }
  0xe6   : > { %1293 = vmatpush1.bf16.msra.mxu0 %v6712_v3  ;;  %1316 = vmatprep.mubr.bf16.mxu0 %v7592_v2  ;;  %v7887_v2 = vsub.s32 0, %v7884_v13 }
  0xe7   : > { %1294 = vmatprep.subr.bf16.mxu0 %v6720_v5  ;;  %5757 = vmatmul.mubr.msk.bf16.vlgmr.msra.gmra.mxu1 %vm936_vm0, %v7857_v17 }
  0xe8   : > { %v484_v16 = vrot.slane %v475_v14, %v7887_v2 }
  0xea   : > { %1295 = vmatpush1.bf16.msra.mxu0 %v6718_v6 }
  0xeb   : > { %1296 = vmatprep.subr.bf16.mxu0 %v6726_v7 }
  0xee   : > { %1297 = vmatpush1.bf16.msra.mxu0 %v6724_v8 }
  0xef   : > { %1298 = vmatprep.subr.bf16.mxu0 %v6729_v9 }
  0xf2   : > { %1299 = vmatpush1.bf16.msra.mxu0 %v6727_v10 }
  0xf5   : > { %5758 = vmatmul.mubr.msk.bf16.vlgmr.msra.gmra.mxu0 %vm936_vm0, %v7857_v17 }
 0x175   : > { %v974_v17 = vpop.f32.mrf.mxu0 }
 0x176   : > { %v975_v21 = vadd.f32 %v974_v17, %v484_v16 }
 0x177   : > { %v976_v23 = vpop.f32.mrf.mxu0  ;;  %v1017_v27 = vpop.f32.mrf.mxu1 }
 0x178   : > { %v1327_v24 = vmax.f32 %v975_v21, 0.0  ;;  %v977_v25 = vadd.f32 %v976_v23, %v488_v19  ;;  %v1018_v31 = vadd.f32 %v1017_v27, %v492_v22  ;;  %v476_v21 = vld [vmem:[#allocation6 + $0x8] sm:$0xff] }
 0x179   : > { %v978_v26 = vpop.f32.mrf.mxu0  ;;  %v1019_v33 = vpop.f32.mrf.mxu1 }
 0x17a   : > { %v1328_v29 = vmax.f32 %v977_v25, 0.0  ;;  %v979_v30 = vadd.f32 %v978_v26, %v484_v16  ;;  %v1329_v36 = vmax.f32 %v1018_v31, 0.0  ;;  %v1020_v37 = vadd.f32 %v1019_v33, %v496_v28 }
 0x17b   : > { %v980_v32 = vpop.f32.mrf.mxu0  ;;  %v1021_v38 = vpop.f32.mrf.mxu1  ;;  %v516_v26 = vrot.slane %v476_v21, %v7887_v2 }
 0x17c   : > { %v6258_v34 = vpack.c.bf16 %v1328_v29, %v1327_v24  ;;  %v981_v35 = vadd.f32 %v980_v32, %v488_v19  ;;  %v1345_v39 = vmax.f32 %v979_v30, 0.0  ;;  %v1022_v41 = vadd.f32 %v1021_v38, %v492_v22 }
 0x17d   : > { %v1330_v43 = vmax.f32 %v1020_v37, 0.0  ;;  %v1023_v44 = vpop.f32.mrf.mxu1  ;;  %v520_v29 = vrot.slane %v476_v21, %v7890_v15  ;;  %v524_v32 = vrot.slane %v476_v21, %v491_v18  ;;  %v528_v38 = vrot.slane %v476_v21, %v495_v20 }
 0x17e   : > { %1471 = vst [vmem:[#allocation2] sm:$0xff] %v6258_v34  ;;  %v1346_v40 = vmax.f32 %v981_v35, 0.0  ;;  %v1347_v46 = vmax.f32 %v1022_v41, 0.0  ;;  %v1024_v47 = vadd.f32 %v1023_v44, %v496_v28 }
 0x17f   : > { %v6259_v49 = vpack.c.bf16 %v1330_v43, %v1329_v36 }
 0x180   : > { %v6267_v45 = vpack.c.bf16 %v1346_v40, %v1345_v39  ;;  %v1348_v51 = vmax.f32 %v1024_v47, 0.0 }
 0x181   : > { %1472 = vst [vmem:[#allocation2 + $0x38] sm:$0xff] %v6259_v49 }
 0x182   : > { %1480 = vst [vmem:[#allocation2 + $0x40] sm:$0xff] %v6267_v45  ;;  %v6268_v53 = vpack.c.bf16 %v1348_v51, %v1347_v46 }
 0x184   : > { %1481 = vst [vmem:[#allocation2 + $0x50] sm:$0xff] %v6268_v53 }
 0x185   : > { %v1060_v55 = vpop.f32.mrf.mxu0 }
 0x186   : > { %v1061_v57 = vadd.f32 %v1060_v55, %v500_v50 }
 0x187   : > { %v1062_v59 = vpop.f32.mrf.mxu0  ;;  %v1103_v63 = vpop.f32.mrf.mxu1 }
 0x188   : > { %v1331_v60 = vmax.f32 %v1061_v57, 0.0  ;;  %v1063_v61 = vadd.f32 %v1062_v59, %v504_v54  ;;  %v1104_v4 = vadd.f32 %v1103_v63, %v508_v58  ;;  %v536_v63 = vrot.slane %v476_v21, %v503_v48 }
 0x189   : > { %v1064_v62 = vpop.f32.mrf.mxu0  ;;  %v1105_v6 = vpop.f32.mrf.mxu1 }
 0x18a   : > { %v1332_v1 = vmax.f32 %v1063_v61, 0.0  ;;  %v1065_v3 = vadd.f32 %v1064_v62, %v500_v50  ;;  %v1333_v9 = vmax.f32 %v1104_v4, 0.0  ;;  %v1106_v10 = vadd.f32 %v1105_v6, %v512_v0 }
 0x18b   : > { %v1066_v5 = vpop.f32.mrf.mxu0  ;;  %v1107_v11 = vpop.f32.mrf.mxu1 }
 0x18c   : > { %v6260_v7 = vpack.c.bf16 %v1332_v1, %v1331_v60  ;;  %v1067_v8 = vadd.f32 %v1066_v5, %v504_v54  ;;  %v1349_v12 = vmax.f32 %v1065_v3, 0.0  ;;  %v1108_v19 = vadd.f32 %v1107_v11, %v508_v58 }
 0x18d   : > { %v1334_v17 = vmax.f32 %v1106_v10, 0.0  ;;  %v1109_v22 = vpop.f32.mrf.mxu1  ;;  %v532_v60 = vrot.slane %v476_v21, %v499_v42  ;;  %v540_v3 = vrot.slane %v476_v21, %v507_v52  ;;  %v544_v42 = vrot.slane %v476_v21, %v511_v56 }
 0x18e   : > { %1473 = vst [vmem:[#allocation2 + $0x78] sm:$0xff] %v6260_v7  ;;  %v1350_v16 = vmax.f32 %v1067_v8, 0.0  ;;  %v1351_v24 = vmax.f32 %v1108_v19, 0.0  ;;  %v1110_v14 = vadd.f32 %v1109_v22, %v512_v0 }
 0x18f   : > { %v6261_v25 = vpack.c.bf16 %v1334_v17, %v1333_v9 }
 0x190   : > { %v6269_v23 = vpack.c.bf16 %v1350_v16, %v1349_v12  ;;  %v1352_v27 = vmax.f32 %v1110_v14, 0.0 }
 0x191   : > { %1474 = vst [vmem:[#allocation2 + $0x58] sm:$0xff] %v6261_v25 }
 0x192   : > { %1482 = vst [vmem:[#allocation2 + $0x28] sm:$0xff] %v6269_v23  ;;  %v6270_v28 = vpack.c.bf16 %v1352_v27, %v1351_v24  ;;  %v477_v27 = vld [vmem:[#allocation6 + $0x10] sm:$0x3] }
 0x194   : > { %1483 = vst [vmem:[#allocation2 + $0x10] sm:$0xff] %v6270_v28 }
 0x195   : > { %v1146_v30 = vpop.f32.mrf.mxu0 }
 0x196   : > { %v1147_v31 = vadd.f32 %v1146_v30, %v516_v26  ;;  %v548_v30 = vrot.slane %v477_v27, %v7887_v2 }
 0x197   : > { %v1148_v33 = vpop.f32.mrf.mxu0  ;;  %v1189_v37 = vpop.f32.mrf.mxu1 }
 0x198   : > { %v1335_v34 = vmax.f32 %v1147_v31, 0.0  ;;  %v1149_v35 = vadd.f32 %v1148_v33, %v520_v29  ;;  %v1190_v41 = vadd.f32 %v1189_v37, %v524_v32 }
 0x199   : > { %v1150_v36 = vpop.f32.mrf.mxu0  ;;  %v1191_v44 = vpop.f32.mrf.mxu1 }
 0x19a   : > { %v1336_v39 = vmax.f32 %v1149_v35, 0.0  ;;  %v1151_v40 = vadd.f32 %v1150_v36, %v516_v26  ;;  %v1337_v47 = vmax.f32 %v1190_v41, 0.0  ;;  %v1192_v49 = vadd.f32 %v1191_v44, %v528_v38 }
 0x19b   : > { %v1152_v43 = vpop.f32.mrf.mxu0  ;;  %v1193_v50 = vpop.f32.mrf.mxu1 }
 0x19c   : > { %v6262_v45 = vpack.c.bf16 %v1336_v39, %v1335_v34  ;;  %v1153_v46 = vadd.f32 %v1152_v43, %v520_v29  ;;  %v1353_v18 = vmax.f32 %v1151_v40, 0.0  ;;  %v1194_v53 = vadd.f32 %v1193_v50, %v524_v32 }
 0x19d   : > { %v1338_v54 = vmax.f32 %v1192_v49, 0.0  ;;  %v1195_v55 = vpop.f32.mrf.mxu1  ;;  %v552_v32 = vrot.slane %v477_v27, %v7890_v15 }
 0x19e   : > { %1475 = vst [vmem:[#allocation2 + $0x20] sm:$0xff] %v6262_v45  ;;  %v1354_v51 = vmax.f32 %v1153_v46, 0.0  ;;  %v1355_v58 = vmax.f32 %v1194_v53, 0.0  ;;  %v1196_v59 = vadd.f32 %v1195_v55, %v528_v38 }
 0x19f   : > { %v6263_v20 = vpack.c.bf16 %v1338_v54, %v1337_v47 }
 0x1a0   : > { %v6271_v57 = vpack.c.bf16 %v1354_v51, %v1353_v18  ;;  %v1356_v61 = vmax.f32 %v1196_v59, 0.0 }
 0x1a1   : > { %1476 = vst [vmem:[#allocation2 + $0x8] sm:$0xff] %v6263_v20 }
 0x1a2   : > { %1484 = vst [vmem:[#allocation2 + $0x48] sm:$0xff] %v6271_v57  ;;  %v6272_v62 = vpack.c.bf16 %v1356_v61, %v1355_v58 }
 0x1a4   : > { %1485 = vst [vmem:[#allocation2 + $0x30] sm:$0xff] %v6272_v62 }
 0x1a5   : > { %v1232_v0 = vpop.f32.mrf.mxu0 }
 0x1a6   : > { %v1233_v1 = vadd.f32 %v1232_v0, %v532_v60 }
 0x1a7   : > { %v1234_v4 = vpop.f32.mrf.mxu0  ;;  %v1275_v8 = vpop.f32.mrf.mxu1 }
 0x1a8   : > { %v1339_v5 = vmax.f32 %v1233_v1, 0.0  ;;  %v1235_v6 = vadd.f32 %v1234_v4, %v536_v63  ;;  %v1276_v11 = vadd.f32 %v1275_v8, %v540_v3 }
 0x1a9   : > { %v1236_v7 = vpop.f32.mrf.mxu0  ;;  %v1277_v16 = vpop.f32.mrf.mxu1 }
 0x1aa   : > { %v1340_v9 = vmax.f32 %v1235_v6, 0.0  ;;  %v1237_v10 = vadd.f32 %v1236_v7, %v532_v60  ;;  %v1341_v17 = vmax.f32 %v1276_v11, 0.0  ;;  %v1278_v22 = vadd.f32 %v1277_v16, %v544_v42 }
 0x1ab   : > { %v1238_v12 = vpop.f32.mrf.mxu0  ;;  %v1279_v23 = vpop.f32.mrf.mxu1 }
 0x1ac   : > { %v6264_v48 = vpack.c.bf16 %v1340_v9, %v1339_v5  ;;  %v1239_v19 = vadd.f32 %v1238_v12, %v536_v63  ;;  %v1357_v52 = vmax.f32 %v1237_v10, 0.0  ;;  %v1280_v14 = vadd.f32 %v1279_v23, %v540_v3 }
 0x1ad   : > { %v1342_v25 = vmax.f32 %v1278_v22, 0.0  ;;  %v1281_v26 = vpop.f32.mrf.mxu1 }
 0x1ae   : > { %1477 = vst [vmem:[#allocation2 + $0x70] sm:$0xff] %v6264_v48  ;;  %v1358_v24 = vmax.f32 %v1239_v19, 0.0  ;;  %v1359_v13 = vmax.f32 %v1280_v14, 0.0  ;;  %v1282_v56 = vadd.f32 %v1281_v26, %v544_v42 }
 0x1af   : > { %v6265_v21 = vpack.c.bf16 %v1342_v25, %v1341_v17 }
 0x1b0   : > { %v6273_v28 = vpack.c.bf16 %v1358_v24, %v1357_v52  ;;  %v1360_v29 = vmax.f32 %v1282_v56, 0.0 }
 0x1b1   : > { %1478 = vst [vmem:[#allocation2 + $0x80] sm:$0xff] %v6265_v21 }
 0x1b2   : > { %1486 = vst [vmem:[#allocation2 + $0x18] sm:$0xff] %v6273_v28  ;;  %v6274_v31 = vpack.c.bf16 %v1360_v29, %v1359_v13 }
 0x1b4   : > { %1487 = vst [vmem:[#allocation2 + $0x68] sm:$0xff] %v6274_v31 }
 0x1b5   : > { %v1318_v33 = vpop.f32.mrf.mxu0 }
 0x1b6   : > { %v1319_v34 = vadd.f32 %v1318_v33, %v548_v30 }
 0x1b7   : > { %v1320_v35 = vpop.f32.mrf.mxu0 }
 0x1b8   : > { %v1321_v36 = vadd.f32 %v1320_v35, %v552_v32  ;;  %v1343_v38 = vmax.f32 %v1319_v34, 0.0 }
 0x1b9   : > { %v1322_v37 = vpop.f32.mrf.mxu0 }
 0x1ba   : > { %v1344_v39 = vmax.f32 %v1321_v36, 0.0  ;;  %v1323_v40 = vadd.f32 %v1322_v37, %v548_v30 }
 0x1bb   : > { %v1324_v41 = vpop.f32.mrf.mxu0 }
 0x1bc   : > { %v6266_v43 = vpack.c.bf16 %v1344_v39, %v1343_v38  ;;  %v1325_v44 = vadd.f32 %v1324_v41, %v552_v32  ;;  %v1361_v45 = vmax.f32 %v1323_v40, 0.0 }
 0x1be   : > { %1479 = vst [vmem:[#allocation2 + $0x88] sm:$0xff] %v6266_v43  ;;  %v1362_v46 = vmax.f32 %v1325_v44, 0.0 }
 0x1c0   : > { %v6275_v2 = vpack.c.bf16 %v1362_v46, %v1361_v45 }
 0x1c2   : > { %1488 = vst [vmem:[#allocation2 + $0x60] sm:$0xff] %v6275_v2 }
 0x1c3 PF: > { %v6730_v15 = vld [vmem:[%s7836_s19 + $0xac] ss:$12 sps:$4 sm:$0xff]   ;;  %v6734_v49 = vld [vmem:[%s7836_s19 + $0xa8] ss:$12 sps:$4 sm:$0xff]   ;;  %v6740_v53 = vld [vmem:[%s7836_s19 + $0x90] ss:$12 sps:$4 sm:$0xff]  }
 0x1c4   : > { %v6732_v47 = vld [vmem:[%s7836_s19 + $0x22c] ss:$12 sps:$4 sm:$0xff]   ;;  %4503 = vmatprep.subr.bf16.mxu0 %v6730_v15  ;;  %v6735_v50 = vld [vmem:[%s7836_s19 + $0x228] ss:$12 sps:$4 sm:$0xff]   ;;  %v6741_v54 = vld [vmem:[%s7836_s19 + $0x210] ss:$12 sps:$4 sm:$0xff]  }
 0x1c5   : > { %4546 = vmatprep.subr.bf16.mxu1 %v6732_v47  ;;  %v6736_v18 = vld [vmem:[%s7836_s19 + $0x94] ss:$12 sps:$4 sm:$0xff]   ;;  %4504 = vmatpush1.bf16.msra.mxu0 %v6734_v49  ;;  %v6742_v55 = vld [vmem:[%s7836_s19 + $0x7c] ss:$12 sps:$4 sm:$0xff]   ;;  %v6746_v58 = vld [vmem:[%s7836_s19 + $0x78] ss:$12 sps:$4 sm:$0xff]  }
 0x1c6   : > { %4547 = vmatpush1.bf16.msra.mxu1 %v6735_v50  ;;  %v6738_v51 = vld [vmem:[%s7836_s19 + $0x214] ss:$12 sps:$4 sm:$0xff]   ;;  %4505 = vmatprep.subr.bf16.mxu0 %v6736_v18  ;;  %v6744_v57 = vld [vmem:[%s7836_s19 + $0x1fc] ss:$12 sps:$4 sm:$0xff]   ;;  %v6747_v59 = vld [vmem:[%s7836_s19 + $0x1f8] ss:$12 sps:$4 sm:$0xff]  }
 0x1c7   : > { %4548 = vmatprep.subr.bf16.mxu1 %v6738_v51  ;;  %v6748_v20 = vld [vmem:[%s7836_s19 + $0x64] ss:$12 sps:$4 sm:$0xff]   ;;  %v6752_v61 = vld [vmem:[%s7836_s19 + $0x60] ss:$12 sps:$4 sm:$0xff]   ;;  %v6758_v1 = vld [vmem:[%s7836_s19 + $0x48] ss:$12 sps:$4 sm:$0xff]  }
 0x1c8   : > { %v6750_v60 = vld [vmem:[%s7836_s19 + $0x1e4] ss:$12 sps:$4 sm:$0xff]   ;;  %v6753_v62 = vld [vmem:[%s7836_s19 + $0x1e0] ss:$12 sps:$4 sm:$0xff]   ;;  %v6759_v3 = vld [vmem:[%s7836_s19 + $0x1c8] ss:$12 sps:$4 sm:$0xff]  }
 0x1c9   : > { %4506 = vmatpush1.bf16.msra.mxu0 %v6740_v53  ;;  %v6754_v63 = vld [vmem:[%s7836_s19 + $0x4c] ss:$12 sps:$4 sm:$0xff]   ;;  %v6760_v4 = vld [vmem:[%s7836_s19 + $0x34] ss:$12 sps:$4 sm:$0xff]   ;;  %v6764_v6 = vld [vmem:[%s7836_s19 + $0x30] ss:$12 sps:$4 sm:$0xff]  }
 0x1ca   : > { %4549 = vmatpush1.bf16.msra.mxu1 %v6741_v54  ;;  %4507 = vmatprep.subr.bf16.mxu0 %v6742_v55  ;;  %v6756_v0 = vld [vmem:[%s7836_s19 + $0x1cc] ss:$12 sps:$4 sm:$0xff]   ;;  %v6762_v5 = vld [vmem:[%s7836_s19 + $0x1b4] ss:$12 sps:$4 sm:$0xff]   ;;  %v6765_v7 = vld [vmem:[%s7836_s19 + $0x1b0] ss:$12 sps:$4 sm:$0xff]  }
 0x1cb   : > { %4550 = vmatprep.subr.bf16.mxu1 %v6744_v57  ;;  %v6766_v8 = vld [vmem:[%s7836_s19 + $0x1c] ss:$12 sps:$4 sm:$0xff]   ;;  %v6770_v9 = vld [vmem:[%s7836_s19 + $0x18] ss:$12 sps:$4 sm:$0xff]   ;;  %v6776_v16 = vld [vmem:[%s7836_s19] ss:$12 sps:$4 sm:$0xff]  }
 0x1cc   : > { %v6768_v42 = vld [vmem:[%s7836_s19 + $0x19c] ss:$12 sps:$4 sm:$0xff]   ;;  %v6771_v10 = vld [vmem:[%s7836_s19 + $0x198] ss:$12 sps:$4 sm:$0xff]   ;;  %v6777_v48 = vld [vmem:[%s7836_s19 + $0x180] ss:$12 sps:$4 sm:$0xff]  }
 0x1cd   : > { %4508 = vmatpush1.bf16.msra.mxu0 %v6746_v58  ;;  %v6772_v11 = vld [vmem:[%s7836_s19 + $0x4] ss:$12 sps:$4 sm:$0xff]   ;;  %v6778_v19 = vld [vmem:[%s7836_s19 + $0x16c] ss:$12 sps:$4 sm:$0xff]   ;;  %v6782_v22 = vld [vmem:[%s7836_s19 + $0x168] ss:$12 sps:$4 sm:$0xff]  }
 0x1ce   : > { %4551 = vmatpush1.bf16.msra.mxu1 %v6747_v59  ;;  %4509 = vmatprep.subr.bf16.mxu0 %v6748_v20  ;;  %v6774_v12 = vld [vmem:[%s7836_s19 + $0x184] ss:$12 sps:$4 sm:$0xff]   ;;  %v6780_v17 = vld [vmem:[%s7836_s19 + $0x2ec] ss:$12 sps:$4 sm:$0xff]   ;;  %v6783_v23 = vld [vmem:[%s7836_s19 + $0x2e8] ss:$12 sps:$4 sm:$0xff]  }
 0x1cf   : > { %4552 = vmatprep.subr.bf16.mxu1 %v6750_v60  ;;  %v6784_v52 = vld [vmem:[%s7836_s19 + $0x154] ss:$12 sps:$4 sm:$0xff]   ;;  %v6788_v14 = vld [vmem:[%s7836_s19 + $0x150] ss:$12 sps:$4 sm:$0xff]   ;;  %v6794_v28 = vld [vmem:[%s7836_s19 + $0x138] ss:$12 sps:$4 sm:$0xff]  }
 0x1d0   : > { %v6786_v24 = vld [vmem:[%s7836_s19 + $0x2d4] ss:$12 sps:$4 sm:$0xff]   ;;  %v6789_v25 = vld [vmem:[%s7836_s19 + $0x2d0] ss:$12 sps:$4 sm:$0xff]   ;;  %v6795_v13 = vld [vmem:[%s7836_s19 + $0x2b8] ss:$12 sps:$4 sm:$0xff]  }
 0x1d1   : > { %4510 = vmatpush1.bf16.msra.mxu0 %v6752_v61  ;;  %v6790_v26 = vld [vmem:[%s7836_s19 + $0x13c] ss:$12 sps:$4 sm:$0xff]   ;;  %v6796_v56 = vld [vmem:[%s7836_s19 + $0x124] ss:$12 sps:$4 sm:$0xff]   ;;  %v6800_v29 = vld [vmem:[%s7836_s19 + $0x120] ss:$12 sps:$4 sm:$0xff]  }
 0x1d2   : > { %4553 = vmatpush1.bf16.msra.mxu1 %v6753_v62  ;;  %4511 = vmatprep.subr.bf16.mxu0 %v6754_v63  ;;  %v6792_v27 = vld [vmem:[%s7836_s19 + $0x2bc] ss:$12 sps:$4 sm:$0xff]   ;;  %v6798_v21 = vld [vmem:[%s7836_s19 + $0x2a4] ss:$12 sps:$4 sm:$0xff]   ;;  %v6801_v32 = vld [vmem:[%s7836_s19 + $0x2a0] ss:$12 sps:$4 sm:$0xff]  }
 0x1d3   : > { %4554 = vmatprep.subr.bf16.mxu1 %v6756_v0  ;;  %v1498_v30 = vld [vmem:[#allocation2] sm:$0xff]  ;;  %v6828_v34 = vld [vmem:[#allocation2 + $0x3c] ss:$24 sps:$4 sm:$0xff]   ;;  %v6826_v54 = vld [vmem:[#allocation2 + $0x38] ss:$24 sps:$4 sm:$0xff]   ;;  %vm7594_vm1 = vmmov 0  }
 0x1d4   : > { %v1507_v31 = vld [vmem:[#allocation2 + $0x40] sm:$0xff]  ;;  %4578 = vmatprep.mubr.bf16.mxu1 %v6828_v34  ;;  %v6814_v44 = vld [vmem:[%s7836_s19 + $0xdc] ss:$12 sps:$4 sm:$0xff]   ;;  %v6818_v46 = vld [vmem:[%s7836_s19 + $0xd8] ss:$12 sps:$4 sm:$0xff]   ;;  %p6252_p3 = scmp.ne.s32.totalorder %s7654_s28, 2 }
 0x1d5   : > { %4512 = vmatpush1.bf16.msra.mxu0 %v6758_v1  ;;  %v7976_v33 = vcombine.high %v1498_v30, %v1507_v31  ;;  %v6802_v35 = vld [vmem:[%s7836_s19 + $0x10c] ss:$12 sps:$4 sm:$0xff]   ;;  %v6806_v37 = vld [vmem:[%s7836_s19 + $0x108] ss:$12 sps:$4 sm:$0xff]   ;;  %v6812_v41 = vld [vmem:[%s7836_s19 + $0xf0] ss:$12 sps:$4 sm:$0xff]   ;;  %v7997_v53 = vcombine.low %v1498_v30, %v1507_v31 }
 0x1d6   : > { %4555 = vmatpush1.bf16.msra.mxu1 %v6759_v3  ;;  %4513 = vmatprep.subr.bf16.mxu0 %v6760_v4  ;;  %v6804_v36 = vld [vmem:[%s7836_s19 + $0x28c] ss:$12 sps:$4 sm:$0xff]   ;;  %v6807_v38 = vld [vmem:[%s7836_s19 + $0x288] ss:$12 sps:$4 sm:$0xff]   ;;  %v6813_v43 = vld [vmem:[%s7836_s19 + $0x270] ss:$12 sps:$4 sm:$0xff]  }
 0x1d7   : > { %4556 = vmatprep.subr.bf16.mxu1 %v6762_v5  ;;  %4535 = vmatprep.mubr.bf16.mxu0 %v7976_v33  ;;  %v6808_v39 = vld [vmem:[%s7836_s19 + $0xf4] ss:$12 sps:$4 sm:$0xff]   ;;  %v6816_v45 = vld [vmem:[%s7836_s19 + $0x25c] ss:$12 sps:$4 sm:$0xff]   ;;  %v6819_v2 = vld [vmem:[%s7836_s19 + $0x258] ss:$12 sps:$4 sm:$0xff]  }
 0x1d8   : > { %v6810_v40 = vld [vmem:[%s7836_s19 + $0x274] ss:$12 sps:$4 sm:$0xff]   ;;  %v6820_v15 = vld [vmem:[%s7836_s19 + $0xc4] ss:$12 sps:$4 sm:$0xff]   ;;  %v6831_v18 = vld [vmem:[%s7836_s19 + $0x3ac] ss:$12 sps:$4 sm:$0xff]  }
 0x1d9   : > { %4514 = vmatpush1.bf16.msra.mxu0 %v6764_v6  ;;  %v6822_v47 = vld [vmem:[%s7836_s19 + $0x244] ss:$12 sps:$4 sm:$0xff]   ;;  %v6824_v49 = vld [vmem:[%s7836_s19 + $0xc0] ss:$12 sps:$4 sm:$0xff]   ;;  %v6829_v55 = vld [vmem:[%s7836_s19 + $0x3a8] ss:$12 sps:$4 sm:$0xff]  }
 0x1da   : > { %4557 = vmatpush1.bf16.msra.mxu1 %v6765_v7  ;;  %4515 = vmatprep.subr.bf16.mxu0 %v6766_v8  ;;  %v6825_v50 = vld [vmem:[%s7836_s19 + $0x240] ss:$12 sps:$4 sm:$0xff]   ;;  %v6832_v57 = vld [vmem:[%s7836_s19 + $0x528] ss:$12 sps:$4 sm:$0xff]   ;;  %v6835_v20 = vld [vmem:[%s7836_s19 + $0x390] ss:$12 sps:$4 sm:$0xff]  }
 0x1db   : > { %4558 = vmatprep.subr.bf16.mxu1 %v6768_v42  ;;  %v6834_v51 = vld [vmem:[%s7836_s19 + $0x52c] ss:$12 sps:$4 sm:$0xff]   ;;  %v6837_v58 = vld [vmem:[%s7836_s19 + $0x394] ss:$12 sps:$4 sm:$0xff]   ;;  %v6838_v60 = vld [vmem:[%s7836_s19 + $0x510] ss:$12 sps:$4 sm:$0xff]  }
 0x1dc   : > { %v6840_v59 = vld [vmem:[%s7836_s19 + $0x514] ss:$12 sps:$4 sm:$0xff]   ;;  %v6843_v61 = vld [vmem:[%s7836_s19 + $0x37c] ss:$12 sps:$4 sm:$0xff]   ;;  %v6841_v63 = vld [vmem:[%s7836_s19 + $0x378] ss:$12 sps:$4 sm:$0xff]  }
 0x1dd   : > { %4516 = vmatpush1.bf16.msra.mxu0 %v6770_v9  ;;  %v6846_v62 = vld [vmem:[%s7836_s19 + $0x4fc] ss:$12 sps:$4 sm:$0xff]   ;;  %v6844_v0 = vld [vmem:[%s7836_s19 + $0x4f8] ss:$12 sps:$4 sm:$0xff]   ;;  %v6847_v4 = vld [vmem:[%s7836_s19 + $0x360] ss:$12 sps:$4 sm:$0xff]  }
 0x1de   : > { %4559 = vmatpush1.bf16.msra.mxu1 %v6771_v10  ;;  %4517 = vmatprep.subr.bf16.mxu0 %v6772_v11  ;;  %v6849_v1 = vld [vmem:[%s7836_s19 + $0x364] ss:$12 sps:$4 sm:$0xff]   ;;  %v6850_v5 = vld [vmem:[%s7836_s19 + $0x4e0] ss:$12 sps:$4 sm:$0xff]   ;;  %v6853_v8 = vld [vmem:[%s7836_s19 + $0x348] ss:$12 sps:$4 sm:$0xff]  }
 0x1df   : > { %4560 = vmatprep.subr.bf16.mxu1 %v6774_v12  ;;  %v6852_v3 = vld [vmem:[%s7836_s19 + $0x4e4] ss:$12 sps:$4 sm:$0xff]   ;;  %v6855_v6 = vld [vmem:[%s7836_s19 + $0x34c] ss:$12 sps:$4 sm:$0xff]   ;;  %v6856_v42 = vld [vmem:[%s7836_s19 + $0x4c8] ss:$12 sps:$4 sm:$0xff]  }
 0x1e0   : > { %v6858_v7 = vld [vmem:[%s7836_s19 + $0x4cc] ss:$12 sps:$4 sm:$0xff]   ;;  %v6861_v9 = vld [vmem:[%s7836_s19 + $0x334] ss:$12 sps:$4 sm:$0xff]   ;;  %v6859_v11 = vld [vmem:[%s7836_s19 + $0x330] ss:$12 sps:$4 sm:$0xff]  }
 0x1e1   : > { %4518 = vmatpush1.bf16.msra.mxu0 %v6776_v16  ;;  %v6864_v10 = vld [vmem:[%s7836_s19 + $0x4b4] ss:$12 sps:$4 sm:$0xff]   ;;  %v6862_v12 = vld [vmem:[%s7836_s19 + $0x4b0] ss:$12 sps:$4 sm:$0xff]   ;;  %v6889_v34 = vld [vmem:[%s7836_s19 + $0x438] ss:$12 sps:$4 sm:$0xff]  }
 0x1e2   : > { %4561 = vmatpush1.bf16.msra.mxu1 %v6777_v48  ;;  %4519 = vmatprep.subr.bf16.mxu0 %v6778_v19  ;;  %v6867_v16 = vld [vmem:[%s7836_s19 + $0x31c] ss:$12 sps:$4 sm:$0xff]   ;;  %v6865_v19 = vld [vmem:[%s7836_s19 + $0x318] ss:$12 sps:$4 sm:$0xff]  }
 0x1e3   : > { %4562 = vmatprep.subr.bf16.mxu1 %v6780_v17  ;;  %v6870_v48 = vld [vmem:[%s7836_s19 + $0x49c] ss:$12 sps:$4 sm:$0xff]   ;;  %v6868_v17 = vld [vmem:[%s7836_s19 + $0x498] ss:$12 sps:$4 sm:$0xff]  }
 0x1e4   : > { %v6886_v30 = vld [vmem:[%s7836_s19 + $0x5d0] ss:$12 sps:$4 sm:$0xff]  }
 0x1e5   : > { %4520 = vmatpush2.bf16.msra.mxu0 %v6782_v22  ;;  %v6873_v22 = vld [vmem:[%s7836_s19 + $0x304] ss:$12 sps:$4 sm:$0xff]   ;;  %v6891_v31 = vld [vmem:[%s7836_s19 + $0x43c] ss:$12 sps:$4 sm:$0xff]  }
 0x1e6   : > { %4563 = vmatpush2.bf16.msra.mxu1 %v6783_v23  ;;  %4521 = vmatprep.subr.bf16.mxu0 %v6784_v52  ;;  %v6927_v23 = vld [vmem:[#allocation2 + $0x7c] ss:$-80 sps:$4 sm:$0xff]   ;;  %v6876_v52 = vld [vmem:[%s7836_s19 + $0x484] ss:$12 sps:$4 sm:$0xff]  }
 0x1e7   : > { %4564 = vmatprep.subr.bf16.mxu1 %v6786_v24  ;;  %v6930_v24 = vld [vmem:[#allocation2 + $0x5c] ss:$-72 sps:$4 sm:$0xff]  }
 0x1e9   : > { %4522 = vmatpush2.bf16.msra.mxu0 %v6788_v14  ;;  %v6871_v14 = vld [vmem:[%s7836_s19 + $0x300] ss:$12 sps:$4 sm:$0xff]  }
 0x1ea   : > { %4565 = vmatpush2.bf16.msra.mxu1 %v6789_v25  ;;  %4523 = vmatprep.subr.bf16.mxu0 %v6790_v26  ;;  %v6874_v25 = vld [vmem:[%s7836_s19 + $0x480] ss:$12 sps:$4 sm:$0xff]  }
 0x1eb   : > { %4566 = vmatprep.subr.bf16.mxu1 %v6792_v27  ;;  %v6879_v26 = vld [vmem:[%s7836_s19 + $0x46c] ss:$12 sps:$4 sm:$0xff]  }
 0x1ec   : > { %v6882_v27 = vld [vmem:[%s7836_s19 + $0x5ec] ss:$12 sps:$4 sm:$0xff]  }
 0x1ed   : > { %4524 = vmatpush2.bf16.msra.mxu0 %v6794_v28  ;;  %v6877_v28 = vld [vmem:[%s7836_s19 + $0x468] ss:$12 sps:$4 sm:$0xff]  }
 0x1ee   : > { %4567 = vmatpush2.bf16.msra.mxu1 %v6795_v13  ;;  %4525 = vmatprep.subr.bf16.mxu0 %v6796_v56  ;;  %v6880_v13 = vld [vmem:[%s7836_s19 + $0x5e8] ss:$12 sps:$4 sm:$0xff]  }
 0x1ef   : > { %4568 = vmatprep.subr.bf16.mxu1 %v6798_v21  ;;  %v6885_v56 = vld [vmem:[%s7836_s19 + $0x454] ss:$12 sps:$4 sm:$0xff]  }
 0x1f0   : > { %v6888_v21 = vld [vmem:[%s7836_s19 + $0x5d4] ss:$12 sps:$4 sm:$0xff]  }
 0x1f1   : > { %4526 = vmatpush2.bf16.msra.mxu0 %v6800_v29  ;;  %v6883_v29 = vld [vmem:[%s7836_s19 + $0x450] ss:$12 sps:$4 sm:$0xff]  }
 0x1f2   : > { %4569 = vmatpush2.bf16.msra.mxu1 %v6801_v32  ;;  %4527 = vmatprep.subr.bf16.mxu0 %v6802_v35  ;;  %v6894_v32 = vld [vmem:[%s7836_s19 + $0x5bc] ss:$12 sps:$4 sm:$0xff]   ;;  %v6892_v35 = vld [vmem:[%s7836_s19 + $0x5b8] ss:$12 sps:$4 sm:$0xff]  }
 0x1f3   : > { %4570 = vmatprep.subr.bf16.mxu1 %v6804_v36  ;;  %v6897_v36 = vld [vmem:[%s7836_s19 + $0x424] ss:$12 sps:$4 sm:$0xff]  }
 0x1f5   : > { %4528 = vmatpush2.bf16.msra.mxu0 %v6806_v37  ;;  %v6900_v37 = vld [vmem:[%s7836_s19 + $0x5a4] ss:$12 sps:$4 sm:$0xff]  }
 0x1f6   : > { %4571 = vmatpush2.bf16.msra.mxu1 %v6807_v38  ;;  %4529 = vmatprep.subr.bf16.mxu0 %v6808_v39  ;;  %v6895_v38 = vld [vmem:[%s7836_s19 + $0x420] ss:$12 sps:$4 sm:$0xff]  }
 0x1f7   : > { %4572 = vmatprep.subr.bf16.mxu1 %v6810_v40  ;;  %v6898_v39 = vld [vmem:[%s7836_s19 + $0x5a0] ss:$12 sps:$4 sm:$0xff]  }
 0x1f8   : > { %v6903_v40 = vld [vmem:[%s7836_s19 + $0x40c] ss:$12 sps:$4 sm:$0xff]  }
 0x1f9   : > { %4530 = vmatpush2.bf16.msra.mxu0 %v6812_v41  ;;  %v6906_v41 = vld [vmem:[%s7836_s19 + $0x58c] ss:$12 sps:$4 sm:$0xff]  }
 0x1fa   : > { %4573 = vmatpush2.bf16.msra.mxu1 %v6813_v43  ;;  %4531 = vmatprep.subr.bf16.mxu0 %v6814_v44  ;;  %v6901_v43 = vld [vmem:[%s7836_s19 + $0x408] ss:$12 sps:$4 sm:$0xff]  }
 0x1fb   : > { %4574 = vmatprep.subr.bf16.mxu1 %v6816_v45  ;;  %v6904_v44 = vld [vmem:[%s7836_s19 + $0x588] ss:$12 sps:$4 sm:$0xff]  }
 0x1fc   : > { %v6909_v45 = vld [vmem:[%s7836_s19 + $0x3f4] ss:$12 sps:$4 sm:$0xff]  }
 0x1fd   : > { %4532 = vmatpush2.bf16.msra.mxu0 %v6818_v46  ;;  %v6912_v46 = vld [vmem:[%s7836_s19 + $0x574] ss:$12 sps:$4 sm:$0xff]  }
 0x1fe   : > { %4575 = vmatpush2.bf16.msra.mxu1 %v6819_v2  ;;  %4533 = vmatprep.subr.bf16.mxu0 %v6820_v15  ;;  %v6907_v2 = vld [vmem:[%s7836_s19 + $0x3f0] ss:$12 sps:$4 sm:$0xff]  }
 0x1ff   : > { %4576 = vmatprep.subr.bf16.mxu1 %v6822_v47  ;;  %v6910_v15 = vld [vmem:[%s7836_s19 + $0x570] ss:$12 sps:$4 sm:$0xff]  }
 0x200   : > { %v6915_v47 = vld [vmem:[%s7836_s19 + $0x3dc] ss:$12 sps:$4 sm:$0xff]  }
 0x201   : > { %4534 = vmatpush2.bf16.msra.mxu0 %v6824_v49  ;;  %v6918_v49 = vld [vmem:[%s7836_s19 + $0x55c] ss:$12 sps:$4 sm:$0xff]  }
 0x202   : > { %4577 = vmatpush2.bf16.msra.mxu1 %v6825_v50  ;;  %4589 = vmatprep.subr.bf16.mxu0 %v6831_v18  ;;  %v6913_v50 = vld [vmem:[%s7836_s19 + $0x3d8] ss:$12 sps:$4 sm:$0xff]  }
 0x203   : > { %4632 = vmatprep.subr.bf16.mxu1 %v6834_v51  ;;  %v6916_v18 = vld [vmem:[%s7836_s19 + $0x558] ss:$12 sps:$4 sm:$0xff]  }
 0x204   : > { %4536 = vmatmul.mubr.bf16.vlgmr.msra.gmra.mxu0 %v7997_v53  ;;  %v6921_v51 = vld [vmem:[%s7836_s19 + $0x3c4] ss:$12 sps:$4 sm:$0xff]  }
 0x205   : > { %4579 = vmatmul.mubr.bf16.vlgmr.msra.gmra.mxu1 %v6826_v54  ;;  %4590 = vmatpush1.bf16.msra.mxu0 %v6829_v55  ;;  %v6924_v54 = vld [vmem:[%s7836_s19 + $0x544] ss:$12 sps:$4 sm:$0xff]   ;;  %v6919_v55 = vld [vmem:[%s7836_s19 + $0x3c0] ss:$12 sps:$4 sm:$0xff]  }
 0x206   : > { %4633 = vmatpush1.bf16.msra.mxu1 %v6832_v57  ;;  %4591 = vmatprep.subr.bf16.mxu0 %v6837_v58  ;;  %v6922_v57 = vld [vmem:[%s7836_s19 + $0x540] ss:$12 sps:$4 sm:$0xff]  }
 0x207   : > { %4634 = vmatprep.subr.bf16.mxu1 %v6840_v59  ;;  %4621 = vmatprep.mubr.bf16.mxu0 %v6927_v23  ;;  %v6933_v58 = vld [vmem:[%s7836_s19 + $0x6ac] ss:$12 sps:$4 sm:$0xff]   ;;  %v6966_v23 = vld [vmem:[%s7836_s19 + $0x7b4] ss:$12 sps:$4 sm:$0xff]  }
 0x208   : > { %4664 = vmatprep.mubr.bf16.mxu1 %v6930_v24  ;;  %v6936_v59 = vld [vmem:[%s7836_s19 + $0x82c] ss:$12 sps:$4 sm:$0xff]   ;;  %v6964_v24 = vld [vmem:[%s7836_s19 + $0x7b0] ss:$12 sps:$4 sm:$0xff]  }
 0x209   : > { %4592 = vmatpush1.bf16.msra.mxu0 %v6835_v20  ;;  %v6925_v20 = vld [vmem:[#allocation2 + $0x78] ss:$-80 sps:$4 sm:$0xff]  }
 0x20a   : > { %4635 = vmatpush1.bf16.msra.mxu1 %v6838_v60  ;;  %4593 = vmatprep.subr.bf16.mxu0 %v6843_v61  ;;  %v6928_v60 = vld [vmem:[#allocation2 + $0x58] ss:$-72 sps:$4 sm:$0xff]  }
 0x20b   : > { %4636 = vmatprep.subr.bf16.mxu1 %v6846_v62  ;;  %v6931_v61 = vld [vmem:[%s7836_s19 + $0x6a8] ss:$12 sps:$4 sm:$0xff]  }
 0x20c   : > { %v6934_v62 = vld [vmem:[%s7836_s19 + $0x828] ss:$12 sps:$4 sm:$0xff]  }
 0x20d   : > { %4594 = vmatpush1.bf16.msra.mxu0 %v6841_v63  ;;  %v6939_v63 = vld [vmem:[%s7836_s19 + $0x694] ss:$12 sps:$4 sm:$0xff]  }
 0x20e   : > { %4637 = vmatpush1.bf16.msra.mxu1 %v6844_v0  ;;  %4595 = vmatprep.subr.bf16.mxu0 %v6849_v1  ;;  %v6942_v0 = vld [vmem:[%s7836_s19 + $0x814] ss:$12 sps:$4 sm:$0xff]   ;;  %v6937_v1 = vld [vmem:[%s7836_s19 + $0x690] ss:$12 sps:$4 sm:$0xff]  }
 0x20f   : > { %4638 = vmatprep.subr.bf16.mxu1 %v6852_v3  ;;  %v6940_v3 = vld [vmem:[%s7836_s19 + $0x810] ss:$12 sps:$4 sm:$0xff]  }
 0x211   : > { %4596 = vmatpush1.bf16.msra.mxu0 %v6847_v4  ;;  %v6945_v4 = vld [vmem:[%s7836_s19 + $0x67c] ss:$12 sps:$4 sm:$0xff]  }
 0x212   : > { %4639 = vmatpush1.bf16.msra.mxu1 %v6850_v5  ;;  %4597 = vmatprep.subr.bf16.mxu0 %v6855_v6  ;;  %v6948_v5 = vld [vmem:[%s7836_s19 + $0x7fc] ss:$12 sps:$4 sm:$0xff]  }
 0x213   : > { %4640 = vmatprep.subr.bf16.mxu1 %v6858_v7  ;;  %v7029_v6 = vld [vmem:[#allocation2 + $0x24] ss:$40 sps:$4 sm:$0xff]  }
 0x214   : > { %v7032_v7 = vld [vmem:[#allocation2 + $0xc] ss:$40 sps:$4 sm:$0xff]  }
 0x215   : > { %4598 = vmatpush1.bf16.msra.mxu0 %v6853_v8  ;;  %v6943_v8 = vld [vmem:[%s7836_s19 + $0x678] ss:$12 sps:$4 sm:$0xff]  }
 0x216   : > { %4641 = vmatpush1.bf16.msra.mxu1 %v6856_v42  ;;  %4599 = vmatprep.subr.bf16.mxu0 %v6861_v9  ;;  %v6946_v42 = vld [vmem:[%s7836_s19 + $0x7f8] ss:$12 sps:$4 sm:$0xff]  }
 0x217   : > { %4642 = vmatprep.subr.bf16.mxu1 %v6864_v10  ;;  %v6951_v9 = vld [vmem:[%s7836_s19 + $0x664] ss:$12 sps:$4 sm:$0xff]  }
 0x218   : > { %v6954_v10 = vld [vmem:[%s7836_s19 + $0x7e4] ss:$12 sps:$4 sm:$0xff]  }
 0x219   : > { %4600 = vmatpush1.bf16.msra.mxu0 %v6859_v11  ;;  %v6949_v11 = vld [vmem:[%s7836_s19 + $0x660] ss:$12 sps:$4 sm:$0xff]  }
 0x21a   : > { %4643 = vmatpush1.bf16.msra.mxu1 %v6862_v12  ;;  %4601 = vmatprep.subr.bf16.mxu0 %v6867_v16  ;;  %v6952_v12 = vld [vmem:[%s7836_s19 + $0x7e0] ss:$12 sps:$4 sm:$0xff]  }
 0x21b   : > { %4644 = vmatprep.subr.bf16.mxu1 %v6870_v48  ;;  %v6957_v16 = vld [vmem:[%s7836_s19 + $0x64c] ss:$12 sps:$4 sm:$0xff]  }
 0x21c   : > { %v6960_v48 = vld [vmem:[%s7836_s19 + $0x7cc] ss:$12 sps:$4 sm:$0xff]  }
 0x21d   : > { %4602 = vmatpush1.bf16.msra.mxu0 %v6865_v19  ;;  %v6955_v19 = vld [vmem:[%s7836_s19 + $0x648] ss:$12 sps:$4 sm:$0xff]  }
 0x21e   : > { %4645 = vmatpush1.bf16.msra.mxu1 %v6868_v17  ;;  %4603 = vmatprep.subr.bf16.mxu0 %v6873_v22  ;;  %v6958_v17 = vld [vmem:[%s7836_s19 + $0x7c8] ss:$12 sps:$4 sm:$0xff]  }
 0x21f   : > { %4646 = vmatprep.subr.bf16.mxu1 %v6876_v52  ;;  %v6963_v22 = vld [vmem:[%s7836_s19 + $0x634] ss:$12 sps:$4 sm:$0xff]   ;;  %v6961_v52 = vld [vmem:[%s7836_s19 + $0x630] ss:$12 sps:$4 sm:$0xff]  }
 0x221   : > { %4604 = vmatpush1.bf16.msra.mxu0 %v6871_v14  ;;  %v6969_v14 = vld [vmem:[%s7836_s19 + $0x61c] ss:$12 sps:$4 sm:$0xff]  }
 0x222   : > { %4647 = vmatpush1.bf16.msra.mxu1 %v6874_v25  ;;  %4605 = vmatprep.subr.bf16.mxu0 %v6879_v26  ;;  %v6972_v25 = vld [vmem:[%s7836_s19 + $0x79c] ss:$12 sps:$4 sm:$0xff]   ;;  %v6967_v26 = vld [vmem:[%s7836_s19 + $0x618] ss:$12 sps:$4 sm:$0xff]  }
 0x223   : > { %4648 = vmatprep.subr.bf16.mxu1 %v6882_v27  ;;  %v6970_v27 = vld [vmem:[%s7836_s19 + $0x798] ss:$12 sps:$4 sm:$0xff]  }
 0x225   : > { %4606 = vmatpush2.bf16.msra.mxu0 %v6877_v28  ;;  %v6975_v28 = vld [vmem:[%s7836_s19 + $0x604] ss:$12 sps:$4 sm:$0xff]  }
 0x226   : > { %4649 = vmatpush2.bf16.msra.mxu1 %v6880_v13  ;;  %4607 = vmatprep.subr.bf16.mxu0 %v6885_v56  ;;  %v6978_v13 = vld [vmem:[%s7836_s19 + $0x784] ss:$12 sps:$4 sm:$0xff]   ;;  %v6973_v56 = vld [vmem:[%s7836_s19 + $0x600] ss:$12 sps:$4 sm:$0xff]  }
 0x227   : > { %4650 = vmatprep.subr.bf16.mxu1 %v6888_v21  ;;  %v6976_v21 = vld [vmem:[%s7836_s19 + $0x780] ss:$12 sps:$4 sm:$0xff]  }
 0x229   : > { %4608 = vmatpush2.bf16.msra.mxu0 %v6883_v29  ;;  %v6981_v29 = vld [vmem:[%s7836_s19 + $0x76c] ss:$12 sps:$4 sm:$0xff]  }
 0x22a   : > { %4651 = vmatpush2.bf16.msra.mxu1 %v6886_v30  ;;  %4609 = vmatprep.subr.bf16.mxu0 %v6891_v31  ;;  %v6984_v30 = vld [vmem:[%s7836_s19 + $0x8ec] ss:$12 sps:$4 sm:$0xff]   ;;  %v6979_v31 = vld [vmem:[%s7836_s19 + $0x768] ss:$12 sps:$4 sm:$0xff]  }
 0x22b   : > { %4652 = vmatprep.subr.bf16.mxu1 %v6894_v32  ;;  %v6982_v32 = vld [vmem:[%s7836_s19 + $0x8e8] ss:$12 sps:$4 sm:$0xff]  }
 0x22d   : > { %4610 = vmatpush2.bf16.msra.mxu0 %v6889_v34  ;;  %v6987_v34 = vld [vmem:[%s7836_s19 + $0x754] ss:$12 sps:$4 sm:$0xff]  }
 0x22e   : > { %4653 = vmatpush2.bf16.msra.mxu1 %v6892_v35  ;;  %4611 = vmatprep.subr.bf16.mxu0 %v6897_v36  ;;  %v6990_v35 = vld [vmem:[%s7836_s19 + $0x8d4] ss:$12 sps:$4 sm:$0xff]   ;;  %v6985_v36 = vld [vmem:[%s7836_s19 + $0x750] ss:$12 sps:$4 sm:$0xff]  }
 0x22f   : > { %4654 = vmatprep.subr.bf16.mxu1 %v6900_v37  ;;  %v6988_v37 = vld [vmem:[%s7836_s19 + $0x8d0] ss:$12 sps:$4 sm:$0xff]  }
 0x231   : > { %4612 = vmatpush2.bf16.msra.mxu0 %v6895_v38  ;;  %v6993_v38 = vld [vmem:[%s7836_s19 + $0x73c] ss:$12 sps:$4 sm:$0xff]  }
 0x232   : > { %4655 = vmatpush2.bf16.msra.mxu1 %v6898_v39  ;;  %4613 = vmatprep.subr.bf16.mxu0 %v6903_v40  ;;  %v6996_v39 = vld [vmem:[%s7836_s19 + $0x8bc] ss:$12 sps:$4 sm:$0xff]   ;;  %v6991_v40 = vld [vmem:[%s7836_s19 + $0x738] ss:$12 sps:$4 sm:$0xff]  }
 0x233   : > { %4656 = vmatprep.subr.bf16.mxu1 %v6906_v41  ;;  %v6994_v41 = vld [vmem:[%s7836_s19 + $0x8b8] ss:$12 sps:$4 sm:$0xff]  }
 0x235   : > { %4614 = vmatpush2.bf16.msra.mxu0 %v6901_v43  ;;  %v6999_v43 = vld [vmem:[%s7836_s19 + $0x724] ss:$12 sps:$4 sm:$0xff]  }
 0x236   : > { %4657 = vmatpush2.bf16.msra.mxu1 %v6904_v44  ;;  %4615 = vmatprep.subr.bf16.mxu0 %v6909_v45  ;;  %v7002_v44 = vld [vmem:[%s7836_s19 + $0x8a4] ss:$12 sps:$4 sm:$0xff]   ;;  %v6997_v45 = vld [vmem:[%s7836_s19 + $0x720] ss:$12 sps:$4 sm:$0xff]  }
 0x237   : > { %4658 = vmatprep.subr.bf16.mxu1 %v6912_v46  ;;  %v7000_v46 = vld [vmem:[%s7836_s19 + $0x8a0] ss:$12 sps:$4 sm:$0xff]  }
 0x239   : > { %4616 = vmatpush2.bf16.msra.mxu0 %v6907_v2  ;;  %v7005_v2 = vld [vmem:[%s7836_s19 + $0x70c] ss:$12 sps:$4 sm:$0xff]  }
 0x23a   : > { %4659 = vmatpush2.bf16.msra.mxu1 %v6910_v15  ;;  %4617 = vmatprep.subr.bf16.mxu0 %v6915_v47  ;;  %v7008_v15 = vld [vmem:[%s7836_s19 + $0x88c] ss:$12 sps:$4 sm:$0xff]   ;;  %v7003_v47 = vld [vmem:[%s7836_s19 + $0x708] ss:$12 sps:$4 sm:$0xff]  }
 0x23b   : > { %4660 = vmatprep.subr.bf16.mxu1 %v6918_v49  ;;  %v7006_v49 = vld [vmem:[%s7836_s19 + $0x888] ss:$12 sps:$4 sm:$0xff]  }
 0x23d   : > { %4618 = vmatpush2.bf16.msra.mxu0 %v6913_v50  ;;  %v7011_v50 = vld [vmem:[%s7836_s19 + $0x6f4] ss:$12 sps:$4 sm:$0xff]  }
 0x23e   : > { %4661 = vmatpush2.bf16.msra.mxu1 %v6916_v18  ;;  %4619 = vmatprep.subr.bf16.mxu0 %v6921_v51  ;;  %v7014_v18 = vld [vmem:[%s7836_s19 + $0x874] ss:$12 sps:$4 sm:$0xff]   ;;  %v7009_v51 = vld [vmem:[%s7836_s19 + $0x6f0] ss:$12 sps:$4 sm:$0xff]  }
 0x23f   : > { %4662 = vmatprep.subr.bf16.mxu1 %v6924_v54  ;;  %v7012_v54 = vld [vmem:[%s7836_s19 + $0x870] ss:$12 sps:$4 sm:$0xff]  }
 0x241   : > { %4620 = vmatpush2.bf16.msra.mxu0 %v6919_v55  ;;  %v7017_v55 = vld [vmem:[%s7836_s19 + $0x6dc] ss:$12 sps:$4 sm:$0xff]  }
 0x242   : > { %4663 = vmatpush2.bf16.msra.mxu1 %v6922_v57  ;;  %4675 = vmatprep.subr.bf16.mxu0 %v6933_v58  ;;  %v7020_v57 = vld [vmem:[%s7836_s19 + $0x85c] ss:$12 sps:$4 sm:$0xff]   ;;  %v7015_v58 = vld [vmem:[%s7836_s19 + $0x6d8] ss:$12 sps:$4 sm:$0xff]  }
 0x243   : > { %4718 = vmatprep.subr.bf16.mxu1 %v6936_v59  ;;  %v7018_v59 = vld [vmem:[%s7836_s19 + $0x858] ss:$12 sps:$4 sm:$0xff]  }
 0x244   : > { %4622 = vmatmul.mubr.bf16.vlgmr.msra.gmra.mxu0 %v6925_v20  ;;  %v7023_v20 = vld [vmem:[%s7836_s19 + $0x6c4] ss:$12 sps:$4 sm:$0xff]  }
 0x245   : > { %4665 = vmatmul.mubr.bf16.vlgmr.msra.gmra.mxu1 %v6928_v60  ;;  %4676 = vmatpush1.bf16.msra.mxu0 %v6931_v61  ;;  %v7026_v60 = vld [vmem:[%s7836_s19 + $0x844] ss:$12 sps:$4 sm:$0xff]   ;;  %v7021_v61 = vld [vmem:[%s7836_s19 + $0x6c0] ss:$12 sps:$4 sm:$0xff]  }
 0x246   : > { %4719 = vmatpush1.bf16.msra.mxu1 %v6934_v62  ;;  %4677 = vmatprep.subr.bf16.mxu0 %v6939_v63  ;;  %v7024_v62 = vld [vmem:[%s7836_s19 + $0x840] ss:$12 sps:$4 sm:$0xff]  }
 0x247   : > { %4720 = vmatprep.subr.bf16.mxu1 %v6942_v0  ;;  %4707 = vmatprep.mubr.bf16.mxu0 %v7029_v6  ;;  %v7035_v63 = vld [vmem:[%s7836_s19 + $0x9ac] ss:$12 sps:$4 sm:$0xff]   ;;  %v7041_v6 = vld [vmem:[%s7836_s19 + $0x994] ss:$12 sps:$4 sm:$0xff]  }
 0x248   : > { %4750 = vmatprep.mubr.bf16.mxu1 %v7032_v7  ;;  %v7027_v0 = vld [vmem:[#allocation2 + $0x20] ss:$40 sps:$4 sm:$0xff]  }
 0x249   : > { %4678 = vmatpush1.bf16.msra.mxu0 %v6937_v1  ;;  %v7030_v1 = vld [vmem:[#allocation2 + $0x8] ss:$40 sps:$4 sm:$0xff]  }
 0x24a   : > { %4721 = vmatpush1.bf16.msra.mxu1 %v6940_v3  ;;  %4679 = vmatprep.subr.bf16.mxu0 %v6945_v4  ;;  %v7038_v3 = vld [vmem:[%s7836_s19 + $0xb2c] ss:$12 sps:$4 sm:$0xff]   ;;  %v7033_v4 = vld [vmem:[%s7836_s19 + $0x9a8] ss:$12 sps:$4 sm:$0xff]  }
 0x24b   : > { %4722 = vmatprep.subr.bf16.mxu1 %v6948_v5  ;;  %v7036_v5 = vld [vmem:[%s7836_s19 + $0xb28] ss:$12 sps:$4 sm:$0xff]  }
 0x24c   : > { %v7044_v7 = vld [vmem:[%s7836_s19 + $0xb14] ss:$12 sps:$4 sm:$0xff]  }
 0x24d   : > { %4680 = vmatpush1.bf16.msra.mxu0 %v6943_v8  ;;  %v7131_v8 = vld [vmem:[#allocation2 + $0x74] ss:$-88 sps:$4 sm:$0xff]  }
 0x24e   : > { %4723 = vmatpush1.bf16.msra.mxu1 %v6946_v42  ;;  %4681 = vmatprep.subr.bf16.mxu0 %v6951_v9  ;;  %v7134_v42 = vld [vmem:[#allocation2 + $0x84] ss:$-24 sps:$4 sm:$0xff]  }
 0x24f   : > { %4724 = vmatprep.subr.bf16.mxu1 %v6954_v10  ;;  %v7039_v9 = vld [vmem:[%s7836_s19 + $0x990] ss:$12 sps:$4 sm:$0xff]  }
 0x250   : > { %v7042_v10 = vld [vmem:[%s7836_s19 + $0xb10] ss:$12 sps:$4 sm:$0xff]  }
 0x251   : > { %4682 = vmatpush1.bf16.msra.mxu0 %v6949_v11  ;;  %v7047_v11 = vld [vmem:[%s7836_s19 + $0x97c] ss:$12 sps:$4 sm:$0xff]  }
 0x252   : > { %4725 = vmatpush1.bf16.msra.mxu1 %v6952_v12  ;;  %4683 = vmatprep.subr.bf16.mxu0 %v6957_v16  ;;  %v7050_v12 = vld [vmem:[%s7836_s19 + $0xafc] ss:$12 sps:$4 sm:$0xff]   ;;  %v7045_v16 = vld [vmem:[%s7836_s19 + $0x978] ss:$12 sps:$4 sm:$0xff]  }
 0x253   : > { %4726 = vmatprep.subr.bf16.mxu1 %v6960_v48  ;;  %v7048_v48 = vld [vmem:[%s7836_s19 + $0xaf8] ss:$12 sps:$4 sm:$0xff]  }
 0x255   : > { %4684 = vmatpush1.bf16.msra.mxu0 %v6955_v19  ;;  %v7053_v19 = vld [vmem:[%s7836_s19 + $0x964] ss:$12 sps:$4 sm:$0xff]  }
 0x256   : > { %4727 = vmatpush1.bf16.msra.mxu1 %v6958_v17  ;;  %4685 = vmatprep.subr.bf16.mxu0 %v6963_v22  ;;  %v7056_v17 = vld [vmem:[%s7836_s19 + $0xae4] ss:$12 sps:$4 sm:$0xff]   ;;  %v7051_v22 = vld [vmem:[%s7836_s19 + $0x960] ss:$12 sps:$4 sm:$0xff]  }
 0x257   : > { %4728 = vmatprep.subr.bf16.mxu1 %v6966_v23  ;;  %v7054_v23 = vld [vmem:[%s7836_s19 + $0xae0] ss:$12 sps:$4 sm:$0xff]  }
 0x259   : > { %4686 = vmatpush1.bf16.msra.mxu0 %v6961_v52  ;;  %v7059_v52 = vld [vmem:[%s7836_s19 + $0x94c] ss:$12 sps:$4 sm:$0xff]  }
 0x25a   : > { %4729 = vmatpush1.bf16.msra.mxu1 %v6964_v24  ;;  %4687 = vmatprep.subr.bf16.mxu0 %v6969_v14  ;;  %v7062_v24 = vld [vmem:[%s7836_s19 + $0xacc] ss:$12 sps:$4 sm:$0xff]   ;;  %v7057_v14 = vld [vmem:[%s7836_s19 + $0x948] ss:$12 sps:$4 sm:$0xff]  }
 0x25b   : > { %4730 = vmatprep.subr.bf16.mxu1 %v6972_v25  ;;  %v7060_v25 = vld [vmem:[%s7836_s19 + $0xac8] ss:$12 sps:$4 sm:$0xff]  }
 0x25d   : > { %4688 = vmatpush1.bf16.msra.mxu0 %v6967_v26  ;;  %v7065_v26 = vld [vmem:[%s7836_s19 + $0x934] ss:$12 sps:$4 sm:$0xff]  }
 0x25e   : > { %4731 = vmatpush1.bf16.msra.mxu1 %v6970_v27  ;;  %4689 = vmatprep.subr.bf16.mxu0 %v6975_v28  ;;  %v7068_v27 = vld [vmem:[%s7836_s19 + $0xab4] ss:$12 sps:$4 sm:$0xff]   ;;  %v7063_v28 = vld [vmem:[%s7836_s19 + $0x930] ss:$12 sps:$4 sm:$0xff]  }
 0x25f   : > { %4732 = vmatprep.subr.bf16.mxu1 %v6978_v13  ;;  %v7066_v13 = vld [vmem:[%s7836_s19 + $0xab0] ss:$12 sps:$4 sm:$0xff]  }
 0x261   : > { %4690 = vmatpush1.bf16.msra.mxu0 %v6973_v56  ;;  %v7071_v56 = vld [vmem:[%s7836_s19 + $0x91c] ss:$12 sps:$4 sm:$0xff]  }
 0x262   : > { %4733 = vmatpush1.bf16.msra.mxu1 %v6976_v21  ;;  %4691 = vmatprep.subr.bf16.mxu0 %v6981_v29  ;;  %v7074_v21 = vld [vmem:[%s7836_s19 + $0xa9c] ss:$12 sps:$4 sm:$0xff]   ;;  %v7069_v29 = vld [vmem:[%s7836_s19 + $0x918] ss:$12 sps:$4 sm:$0xff]  }
 0x263   : > { %4734 = vmatprep.subr.bf16.mxu1 %v6984_v30  ;;  %v7072_v30 = vld [vmem:[%s7836_s19 + $0xa98] ss:$12 sps:$4 sm:$0xff]  }
 0x265   : > { %4692 = vmatpush2.bf16.msra.mxu0 %v6979_v31  ;;  %v7077_v31 = vld [vmem:[%s7836_s19 + $0x904] ss:$12 sps:$4 sm:$0xff]  }
 0x266   : > { %4735 = vmatpush2.bf16.msra.mxu1 %v6982_v32  ;;  %4693 = vmatprep.subr.bf16.mxu0 %v6987_v34  ;;  %v7080_v32 = vld [vmem:[%s7836_s19 + $0xa84] ss:$12 sps:$4 sm:$0xff]   ;;  %v7075_v34 = vld [vmem:[%s7836_s19 + $0x900] ss:$12 sps:$4 sm:$0xff]  }
 0x267   : > { %4736 = vmatprep.subr.bf16.mxu1 %v6990_v35  ;;  %v7078_v35 = vld [vmem:[%s7836_s19 + $0xa80] ss:$12 sps:$4 sm:$0xff]  }
 0x269   : > { %4694 = vmatpush2.bf16.msra.mxu0 %v6985_v36  ;;  %v7083_v36 = vld [vmem:[%s7836_s19 + $0xa6c] ss:$12 sps:$4 sm:$0xff]  }
 0x26a   : > { %4737 = vmatpush2.bf16.msra.mxu1 %v6988_v37  ;;  %4695 = vmatprep.subr.bf16.mxu0 %v6993_v38  ;;  %v7086_v37 = vld [vmem:[%s7836_s19 + $0xbec] ss:$12 sps:$4 sm:$0xff]   ;;  %v7081_v38 = vld [vmem:[%s7836_s19 + $0xa68] ss:$12 sps:$4 sm:$0xff]  }
 0x26b   : > { %4738 = vmatprep.subr.bf16.mxu1 %v6996_v39  ;;  %v7084_v39 = vld [vmem:[%s7836_s19 + $0xbe8] ss:$12 sps:$4 sm:$0xff]  }
 0x26d   : > { %4696 = vmatpush2.bf16.msra.mxu0 %v6991_v40  ;;  %v7089_v40 = vld [vmem:[%s7836_s19 + $0xa54] ss:$12 sps:$4 sm:$0xff]  }
 0x26e   : > { %4739 = vmatpush2.bf16.msra.mxu1 %v6994_v41  ;;  %4697 = vmatprep.subr.bf16.mxu0 %v6999_v43  ;;  %v7092_v41 = vld [vmem:[%s7836_s19 + $0xbd4] ss:$12 sps:$4 sm:$0xff]   ;;  %v7087_v43 = vld [vmem:[%s7836_s19 + $0xa50] ss:$12 sps:$4 sm:$0xff]  }
 0x26f   : > { %4740 = vmatprep.subr.bf16.mxu1 %v7002_v44  ;;  %v7090_v44 = vld [vmem:[%s7836_s19 + $0xbd0] ss:$12 sps:$4 sm:$0xff]  }
 0x271   : > { %4698 = vmatpush2.bf16.msra.mxu0 %v6997_v45  ;;  %v7095_v45 = vld [vmem:[%s7836_s19 + $0xa3c] ss:$12 sps:$4 sm:$0xff]  }
 0x272   : > { %4741 = vmatpush2.bf16.msra.mxu1 %v7000_v46  ;;  %4699 = vmatprep.subr.bf16.mxu0 %v7005_v2  ;;  %v7098_v46 = vld [vmem:[%s7836_s19 + $0xbbc] ss:$12 sps:$4 sm:$0xff]   ;;  %v7093_v2 = vld [vmem:[%s7836_s19 + $0xa38] ss:$12 sps:$4 sm:$0xff]  }
 0x273   : > { %4742 = vmatprep.subr.bf16.mxu1 %v7008_v15  ;;  %v7096_v15 = vld [vmem:[%s7836_s19 + $0xbb8] ss:$12 sps:$4 sm:$0xff]  }
 0x275   : > { %4700 = vmatpush2.bf16.msra.mxu0 %v7003_v47  ;;  %v7101_v47 = vld [vmem:[%s7836_s19 + $0xa24] ss:$12 sps:$4 sm:$0xff]  }
 0x276   : > { %4743 = vmatpush2.bf16.msra.mxu1 %v7006_v49  ;;  %4701 = vmatprep.subr.bf16.mxu0 %v7011_v50  ;;  %v7104_v49 = vld [vmem:[%s7836_s19 + $0xba4] ss:$12 sps:$4 sm:$0xff]   ;;  %v7099_v50 = vld [vmem:[%s7836_s19 + $0xa20] ss:$12 sps:$4 sm:$0xff]  }
 0x277   : > { %4744 = vmatprep.subr.bf16.mxu1 %v7014_v18  ;;  %v7102_v18 = vld [vmem:[%s7836_s19 + $0xba0] ss:$12 sps:$4 sm:$0xff]  }
 0x279   : > { %4702 = vmatpush2.bf16.msra.mxu0 %v7009_v51  ;;  %v7107_v51 = vld [vmem:[%s7836_s19 + $0xa0c] ss:$12 sps:$4 sm:$0xff]  }
 0x27a   : > { %4745 = vmatpush2.bf16.msra.mxu1 %v7012_v54  ;;  %4703 = vmatprep.subr.bf16.mxu0 %v7017_v55  ;;  %v7110_v54 = vld [vmem:[%s7836_s19 + $0xb8c] ss:$12 sps:$4 sm:$0xff]   ;;  %v7105_v55 = vld [vmem:[%s7836_s19 + $0xa08] ss:$12 sps:$4 sm:$0xff]  }
 0x27b   : > { %4746 = vmatprep.subr.bf16.mxu1 %v7020_v57  ;;  %v7108_v57 = vld [vmem:[%s7836_s19 + $0xb88] ss:$12 sps:$4 sm:$0xff]  }
 0x27d   : > { %4704 = vmatpush2.bf16.msra.mxu0 %v7015_v58  ;;  %v7113_v58 = vld [vmem:[%s7836_s19 + $0x9f4] ss:$12 sps:$4 sm:$0xff]  }
 0x27e   : > { %4747 = vmatpush2.bf16.msra.mxu1 %v7018_v59  ;;  %4705 = vmatprep.subr.bf16.mxu0 %v7023_v20  ;;  %v7116_v59 = vld [vmem:[%s7836_s19 + $0xb74] ss:$12 sps:$4 sm:$0xff]   ;;  %v7111_v20 = vld [vmem:[%s7836_s19 + $0x9f0] ss:$12 sps:$4 sm:$0xff]  }
 0x27f   : > { %4748 = vmatprep.subr.bf16.mxu1 %v7026_v60  ;;  %v7114_v60 = vld [vmem:[%s7836_s19 + $0xb70] ss:$12 sps:$4 sm:$0xff]  }
 0x281   : > { %4706 = vmatpush2.bf16.msra.mxu0 %v7021_v61  ;;  %v7119_v61 = vld [vmem:[%s7836_s19 + $0x9dc] ss:$12 sps:$4 sm:$0xff]  }
 0x282   : > { %4749 = vmatpush2.bf16.msra.mxu1 %v7024_v62  ;;  %4761 = vmatprep.subr.bf16.mxu0 %v7035_v63  ;;  %v7122_v62 = vld [vmem:[%s7836_s19 + $0xb5c] ss:$12 sps:$4 sm:$0xff]   ;;  %v7117_v63 = vld [vmem:[%s7836_s19 + $0x9d8] ss:$12 sps:$4 sm:$0xff]  }
 0x283   : > { %4804 = vmatprep.subr.bf16.mxu1 %v7038_v3  ;;  %v7128_v3 = vld [vmem:[%s7836_s19 + $0xb44] ss:$12 sps:$4 sm:$0xff]  }
 0x284   : > { %4708 = vmatmul.mubr.bf16.vlgmr.msra.gmra.mxu0 %v7027_v0  ;;  %v7120_v0 = vld [vmem:[%s7836_s19 + $0xb58] ss:$12 sps:$4 sm:$0xff]  }
 0x285   : > { %4751 = vmatmul.mubr.bf16.vlgmr.msra.gmra.mxu1 %v7030_v1  ;;  %4762 = vmatpush1.bf16.msra.mxu0 %v7033_v4  ;;  %v7125_v1 = vld [vmem:[%s7836_s19 + $0x9c4] ss:$12 sps:$4 sm:$0xff]   ;;  %v7123_v4 = vld [vmem:[%s7836_s19 + $0x9c0] ss:$12 sps:$4 sm:$0xff]  }
 0x286   : > { %4805 = vmatpush1.bf16.msra.mxu1 %v7036_v5  ;;  %4763 = vmatprep.subr.bf16.mxu0 %v7041_v6  ;;  %v7126_v5 = vld [vmem:[%s7836_s19 + $0xb40] ss:$12 sps:$4 sm:$0xff]  }
 0x287   : > { %4806 = vmatprep.subr.bf16.mxu1 %v7044_v7  ;;  %4793 = vmatprep.mubr.bf16.mxu0 %v7131_v8  ;;  %v7137_v6 = vld [vmem:[%s7836_s19 + $0xcac] ss:$12 sps:$4 sm:$0xff]   ;;  %v7129_v7 = vld [vmem:[#allocation2 + $0x70] ss:$-88 sps:$4 sm:$0xff]  }
 0x288   : > { %4836 = vmatprep.mubr.bf16.mxu1 %v7134_v42  ;;  %v7132_v8 = vld [vmem:[#allocation2 + $0x80] ss:$-24 sps:$4 sm:$0xff]  }
 0x289   : > { %4764 = vmatpush1.bf16.msra.mxu0 %v7039_v9  ;;  %v7138_v42 = vld [vmem:[%s7836_s19 + $0x170] ss:$12 sps:$4 sm:$0xff]   ;;  %v7135_v9 = vld [vmem:[%s7836_s19 + $0xca8] ss:$12 sps:$4 sm:$0xff]  }
 0x28a   : > { %4807 = vmatpush1.bf16.msra.mxu1 %v7042_v10  ;;  %4765 = vmatprep.subr.bf16.mxu0 %v7047_v11  ;;  %v7139_v10 = vld [vmem:[%s7836_s19 + $0xb0] ss:$12 sps:$4 sm:$0xff]   ;;  %v7142_v11 = vld [vmem:[%s7836_s19 + $0xc94] ss:$12 sps:$4 sm:$0xff]  }
 0x28b   : > { %4808 = vmatprep.subr.bf16.mxu1 %v7050_v12  ;;  %v7143_v12 = vld [vmem:[%s7836_s19 + $0x158] ss:$12 sps:$4 sm:$0xff]  }
 0x28d   : > { %4766 = vmatpush1.bf16.msra.mxu0 %v7045_v16  ;;  %v7140_v16 = vld [vmem:[%s7836_s19 + $0xc90] ss:$12 sps:$4 sm:$0xff]  }
 0x28e   : > { %4809 = vmatpush1.bf16.msra.mxu1 %v7048_v48  ;;  %4767 = vmatprep.subr.bf16.mxu0 %v7053_v19  ;;  %v7217_v48 = vld [vmem:[#allocation2 + $0x8c] ss:$-40 sps:$4 sm:$0xff]  }
 0x28f   : > { %4810 = vmatprep.subr.bf16.mxu1 %v7056_v17  ;;  %v7144_v19 = vld [vmem:[%s7836_s19 + $0x98] ss:$12 sps:$4 sm:$0xff]   ;;  %v7147_v17 = vld [vmem:[%s7836_s19 + $0xc7c] ss:$12 sps:$4 sm:$0xff]  }
 0x291   : > { %4768 = vmatpush1.bf16.msra.mxu0 %v7051_v22  ;;  %v7148_v22 = vld [vmem:[%s7836_s19 + $0x140] ss:$12 sps:$4 sm:$0xff]  }
 0x292   : > { %4811 = vmatpush1.bf16.msra.mxu1 %v7054_v23  ;;  %4769 = vmatprep.subr.bf16.mxu0 %v7059_v52  ;;  %v7145_v23 = vld [vmem:[%s7836_s19 + $0xc78] ss:$12 sps:$4 sm:$0xff]   ;;  %v7149_v52 = vld [vmem:[%s7836_s19 + $0x80] ss:$12 sps:$4 sm:$0xff]  }
 0x293   : > { %4812 = vmatprep.subr.bf16.mxu1 %v7062_v24  ;;  %v7152_v24 = vld [vmem:[%s7836_s19 + $0xc64] ss:$12 sps:$4 sm:$0xff]  }
 0x295   : > { %4770 = vmatpush1.bf16.msra.mxu0 %v7057_v14  ;;  %v7153_v14 = vld [vmem:[%s7836_s19 + $0x128] ss:$12 sps:$4 sm:$0xff]  }
 0x296   : > { %4813 = vmatpush1.bf16.msra.mxu1 %v7060_v25  ;;  %4771 = vmatprep.subr.bf16.mxu0 %v7065_v26  ;;  %v7150_v25 = vld [vmem:[%s7836_s19 + $0xc60] ss:$12 sps:$4 sm:$0xff]   ;;  %v7154_v26 = vld [vmem:[%s7836_s19 + $0x68] ss:$12 sps:$4 sm:$0xff]  }
 0x297   : > { %4814 = vmatprep.subr.bf16.mxu1 %v7068_v27  ;;  %v7158_v27 = vld [vmem:[%s7836_s19 + $0x110] ss:$12 sps:$4 sm:$0xff]  }
 0x299   : > { %4772 = vmatpush1.bf16.msra.mxu0 %v7063_v28  ;;  %v7155_v28 = vld [vmem:[%s7836_s19 + $0xc48] ss:$12 sps:$4 sm:$0xff]  }
 0x29a   : > { %4815 = vmatpush1.bf16.msra.mxu1 %v7066_v13  ;;  %4773 = vmatprep.subr.bf16.mxu0 %v7071_v56  ;;  %v7159_v13 = vld [vmem:[%s7836_s19 + $0x50] ss:$12 sps:$4 sm:$0xff]   ;;  %v7162_v56 = vld [vmem:[%s7836_s19 + $0xc34] ss:$12 sps:$4 sm:$0xff]  }
 0x29b   : > { %4816 = vmatprep.subr.bf16.mxu1 %v7074_v21  ;;  %v7163_v21 = vld [vmem:[%s7836_s19 + $0xf8] ss:$12 sps:$4 sm:$0xff]  }
 0x29d   : > { %4774 = vmatpush1.bf16.msra.mxu0 %v7069_v29  ;;  %v7160_v29 = vld [vmem:[%s7836_s19 + $0xc30] ss:$12 sps:$4 sm:$0xff]  }
 0x29e   : > { %4817 = vmatpush1.bf16.msra.mxu1 %v7072_v30  ;;  %4775 = vmatprep.subr.bf16.mxu0 %v7077_v31  ;;  %v7164_v30 = vld [vmem:[%s7836_s19 + $0x38] ss:$12 sps:$4 sm:$0xff]   ;;  %v7167_v31 = vld [vmem:[%s7836_s19 + $0xc1c] ss:$12 sps:$4 sm:$0xff]  }
 0x29f   : > { %4818 = vmatprep.subr.bf16.mxu1 %v7080_v32  ;;  %v7168_v32 = vld [vmem:[%s7836_s19 + $0xe0] ss:$12 sps:$4 sm:$0xff]  }
 0x2a1   : > { %4776 = vmatpush1.bf16.msra.mxu0 %v7075_v34  ;;  %v7165_v34 = vld [vmem:[%s7836_s19 + $0xc18] ss:$12 sps:$4 sm:$0xff]  }
 0x2a2   : > { %4819 = vmatpush1.bf16.msra.mxu1 %v7078_v35  ;;  %4777 = vmatprep.subr.bf16.mxu0 %v7083_v36  ;;  %v7169_v35 = vld [vmem:[%s7836_s19 + $0x20] ss:$12 sps:$4 sm:$0xff]   ;;  %v7172_v36 = vld [vmem:[%s7836_s19 + $0xc04] ss:$12 sps:$4 sm:$0xff]  }
 0x2a3   : > { %4820 = vmatprep.subr.bf16.mxu1 %v7086_v37  ;;  %v7173_v37 = vld [vmem:[%s7836_s19 + $0xc8] ss:$12 sps:$4 sm:$0xff]  }
 0x2a5   : > { %4778 = vmatpush2.bf16.msra.mxu0 %v7081_v38  ;;  %v7170_v38 = vld [vmem:[%s7836_s19 + $0xc00] ss:$12 sps:$4 sm:$0xff]  }
 0x2a6   : > { %4821 = vmatpush2.bf16.msra.mxu1 %v7084_v39  ;;  %4779 = vmatprep.subr.bf16.mxu0 %v7089_v40  ;;  %v7174_v39 = vld [vmem:[%s7836_s19 + $0x8] ss:$12 sps:$4 sm:$0xff]   ;;  %v7177_v40 = vld [vmem:[%s7836_s19 + $0xd6c] ss:$12 sps:$4 sm:$0xff]  }
 0x2a7   : > { %4822 = vmatprep.subr.bf16.mxu1 %v7092_v41  ;;  %v7178_v41 = vld [vmem:[%s7836_s19 + $0x2f0] ss:$12 sps:$4 sm:$0xff]  }
 0x2a9   : > { %4780 = vmatpush2.bf16.msra.mxu0 %v7087_v43  ;;  %v7175_v43 = vld [vmem:[%s7836_s19 + $0xd68] ss:$12 sps:$4 sm:$0xff]  }
 0x2aa   : > { %4823 = vmatpush2.bf16.msra.mxu1 %v7090_v44  ;;  %4781 = vmatprep.subr.bf16.mxu0 %v7095_v45  ;;  %v7179_v44 = vld [vmem:[%s7836_s19 + $0x230] ss:$12 sps:$4 sm:$0xff]   ;;  %v7182_v45 = vld [vmem:[%s7836_s19 + $0xd54] ss:$12 sps:$4 sm:$0xff]  }
 0x2ab   : > { %4824 = vmatprep.subr.bf16.mxu1 %v7098_v46  ;;  %v7183_v46 = vld [vmem:[%s7836_s19 + $0x2d8] ss:$12 sps:$4 sm:$0xff]  }
 0x2ad   : > { %4782 = vmatpush2.bf16.msra.mxu0 %v7093_v2  ;;  %v7180_v2 = vld [vmem:[%s7836_s19 + $0xd50] ss:$12 sps:$4 sm:$0xff]  }
 0x2ae   : > { %4825 = vmatpush2.bf16.msra.mxu1 %v7096_v15  ;;  %4783 = vmatprep.subr.bf16.mxu0 %v7101_v47  ;;  %v7184_v15 = vld [vmem:[%s7836_s19 + $0x218] ss:$12 sps:$4 sm:$0xff]   ;;  %v7187_v47 = vld [vmem:[%s7836_s19 + $0xd3c] ss:$12 sps:$4 sm:$0xff]  }
 0x2af   : > { %4826 = vmatprep.subr.bf16.mxu1 %v7104_v49  ;;  %v7188_v49 = vld [vmem:[%s7836_s19 + $0x2c0] ss:$12 sps:$4 sm:$0xff]  }
 0x2b1   : > { %4784 = vmatpush2.bf16.msra.mxu0 %v7099_v50  ;;  %v7185_v50 = vld [vmem:[%s7836_s19 + $0xd38] ss:$12 sps:$4 sm:$0xff]  }
 0x2b2   : > { %4827 = vmatpush2.bf16.msra.mxu1 %v7102_v18  ;;  %4785 = vmatprep.subr.bf16.mxu0 %v7107_v51  ;;  %v7354_v18 = vld [vmem:[#allocation2 + $0x3c] ss:$24 sps:$4 sm:$0xff]  }
 0x2b3   : > { %4828 = vmatprep.subr.bf16.mxu1 %v7110_v54  ;;  %v7189_v51 = vld [vmem:[%s7836_s19 + $0x200] ss:$12 sps:$4 sm:$0xff]   ;;  %v7193_v54 = vld [vmem:[%s7836_s19 + $0x2a8] ss:$12 sps:$4 sm:$0xff]  }
 0x2b5   : > { %4786 = vmatpush2.bf16.msra.mxu0 %v7105_v55  ;;  %v7190_v55 = vld [vmem:[%s7836_s19 + $0xd20] ss:$12 sps:$4 sm:$0xff]  }
 0x2b6   : > { %4829 = vmatpush2.bf16.msra.mxu1 %v7108_v57  ;;  %4787 = vmatprep.subr.bf16.mxu0 %v7113_v58  ;;  %v7194_v57 = vld [vmem:[%s7836_s19 + $0x1e8] ss:$12 sps:$4 sm:$0xff]   ;;  %v7197_v58 = vld [vmem:[%s7836_s19 + $0xd0c] ss:$12 sps:$4 sm:$0xff]  }
 0x2b7   : > { %4830 = vmatprep.subr.bf16.mxu1 %v7116_v59  ;;  %v7198_v59 = vld [vmem:[%s7836_s19 + $0x290] ss:$12 sps:$4 sm:$0xff]  }
 0x2b9   : > { %4788 = vmatpush2.bf16.msra.mxu0 %v7111_v20  ;;  %v7195_v20 = vld [vmem:[%s7836_s19 + $0xd08] ss:$12 sps:$4 sm:$0xff]  }
 0x2ba   : > { %4831 = vmatpush2.bf16.msra.mxu1 %v7114_v60  ;;  %4789 = vmatprep.subr.bf16.mxu0 %v7119_v61  ;;  %v7199_v60 = vld [vmem:[%s7836_s19 + $0x1d0] ss:$12 sps:$4 sm:$0xff]   ;;  %v7202_v61 = vld [vmem:[%s7836_s19 + $0xcf4] ss:$12 sps:$4 sm:$0xff]  }
 0x2bb   : > { %4832 = vmatprep.subr.bf16.mxu1 %v7122_v62  ;;  %v7203_v62 = vld [vmem:[%s7836_s19 + $0x278] ss:$12 sps:$4 sm:$0xff]  }
 0x2bd   : > { %4790 = vmatpush2.bf16.msra.mxu0 %v7117_v63  ;;  %v7200_v63 = vld [vmem:[%s7836_s19 + $0xcf0] ss:$12 sps:$4 sm:$0xff]  }
 0x2be   : > { %4833 = vmatpush2.bf16.msra.mxu1 %v7120_v0  ;;  %4791 = vmatprep.subr.bf16.mxu0 %v7125_v1  ;;  %v7204_v0 = vld [vmem:[%s7836_s19 + $0x1b8] ss:$12 sps:$4 sm:$0xff]   ;;  %v7207_v1 = vld [vmem:[%s7836_s19 + $0xcdc] ss:$12 sps:$4 sm:$0xff]  }
 0x2bf   : > { %4834 = vmatprep.subr.bf16.mxu1 %v7128_v3  ;;  %v7208_v3 = vld [vmem:[%s7836_s19 + $0x260] ss:$12 sps:$4 sm:$0xff]  }
 0x2c1   : > { %4792 = vmatpush2.bf16.msra.mxu0 %v7123_v4  ;;  %v7205_v4 = vld [vmem:[%s7836_s19 + $0xcd8] ss:$12 sps:$4 sm:$0xff]  }
 0x2c2   : > { %4835 = vmatpush2.bf16.msra.mxu1 %v7126_v5  ;;  %4847 = vmatprep.subr.bf16.mxu0 %v7137_v6  ;;  %v7209_v5 = vld [vmem:[%s7836_s19 + $0x1a0] ss:$12 sps:$4 sm:$0xff]   ;;  %v7212_v6 = vld [vmem:[%s7836_s19 + $0xcc4] ss:$12 sps:$4 sm:$0xff]  }
 0x2c3   : > { %6276 = vmatprep.subr.bf16.mxu1 %v7138_v42  ;;  %v7214_v42 = vld [vmem:[%s7836_s19 + $0x188] ss:$12 sps:$4 sm:$0xff]  }
 0x2c4   : > { %4794 = vmatmul.mubr.bf16.vlgmr.msra.gmra.mxu0 %v7129_v7  ;;  %v7213_v7 = vld [vmem:[%s7836_s19 + $0x248] ss:$12 sps:$4 sm:$0xff]  }
 0x2c5   : > { %4837 = vmatmul.mubr.bf16.vlgmr.msra.gmra.mxu1 %v7132_v8  ;;  %4848 = vmatpush1.bf16.msra.mxu0 %v7135_v9  ;;  %v7210_v8 = vld [vmem:[%s7836_s19 + $0xcc0] ss:$12 sps:$4 sm:$0xff]   ;;  %v7218_v9 = vld [vmem:[%s7836_s19 + $0x470] ss:$12 sps:$4 sm:$0xff]  }
 0x2c6   : > { %6277 = vmatpush3.bf16.msra.mxu1 %v7139_v10  ;;  %4849 = vmatprep.subr.bf16.mxu0 %v7142_v11  ;;  %v8257_v10 = vld [vmem:[#allocation2 + $0x88] ss:$-40 sps:$4 sm:$0xff]  }
 0x2c7   : > { %6278 = vmatprep.subr.bf16.mxu1 %v7143_v12  ;;  %4922 = vmatprep.mubr.bf16.mxu1 %v7976_v33  ;;  %v7157_v33 = vld [vmem:[%s7836_s19 + $0xc4c] ss:$12 sps:$4 sm:$0xff]   ;;  %v7220_v11 = vld [vmem:[%s7836_s19 + $0x5f0] ss:$12 sps:$4 sm:$0xff]  }
 0x2c8   : > { %4879 = vmatprep.mubr.bf16.mxu0 %v7217_v48  ;;  %v7219_v12 = vld [vmem:[%s7836_s19 + $0x3b0] ss:$12 sps:$4 sm:$0xff]   ;;  %v7222_v48 = vld [vmem:[%s7836_s19 + $0x458] ss:$12 sps:$4 sm:$0xff]  }
 0x2c9   : > { %4850 = vmatpush1.bf16.msra.mxu0 %v7140_v16  ;;  %v7221_v16 = vld [vmem:[%s7836_s19 + $0x530] ss:$12 sps:$4 sm:$0xff]  }
 0x2ca   : > { %6279 = vmatpush3.bf16.msra.mxu1 %v7144_v19  ;;  %4851 = vmatprep.subr.bf16.mxu0 %v7147_v17  ;;  %v7224_v19 = vld [vmem:[%s7836_s19 + $0x5d8] ss:$12 sps:$4 sm:$0xff]  }
 0x2cb   : > { %6280 = vmatprep.subr.bf16.mxu1 %v7148_v22  ;;  %v7223_v17 = vld [vmem:[%s7836_s19 + $0x398] ss:$12 sps:$4 sm:$0xff]  }
 0x2cc   : > { %v7355_v22 = vld [vmem:[#allocation2 + $0x38] ss:$24 sps:$4 sm:$0xff]  }
 0x2cd   : > { %4852 = vmatpush1.bf16.msra.mxu0 %v7145_v23  ;;  %v7225_v23 = vld [vmem:[%s7836_s19 + $0x518] ss:$12 sps:$4 sm:$0xff]  }
 0x2ce   : > { %6281 = vmatpush3.bf16.msra.mxu1 %v7149_v52  ;;  %4853 = vmatprep.subr.bf16.mxu0 %v7152_v24  ;;  %v7226_v52 = vld [vmem:[%s7836_s19 + $0x440] ss:$12 sps:$4 sm:$0xff]  }
 0x2cf   : > { %6282 = vmatprep.subr.bf16.mxu1 %v7153_v14  ;;  %v7228_v24 = vld [vmem:[%s7836_s19 + $0x5c0] ss:$12 sps:$4 sm:$0xff]  }
 0x2d0   : > { %v7227_v14 = vld [vmem:[%s7836_s19 + $0x380] ss:$12 sps:$4 sm:$0xff]  }
 0x2d1   : > { %4854 = vmatpush1.bf16.msra.mxu0 %v7150_v25  ;;  %v7356_v25 = vld [vmem:[#allocation2 + $0x7c] ss:$-80 sps:$4 sm:$0xff]  }
 0x2d2   : > { %6283 = vmatpush3.bf16.msra.mxu1 %v7154_v26  ;;  %4855 = vmatprep.subr.bf16.mxu0 %v7157_v33  ;;  %v7357_v26 = vld [vmem:[#allocation2 + $0x5c] ss:$-72 sps:$4 sm:$0xff]  }
 0x2d3   : > { %6284 = vmatprep.subr.bf16.mxu1 %v7158_v27  ;;  %v7229_v33 = vld [vmem:[%s7836_s19 + $0x500] ss:$12 sps:$4 sm:$0xff]   ;;  %v7230_v27 = vld [vmem:[%s7836_s19 + $0x428] ss:$12 sps:$4 sm:$0xff]  }
 0x2d5   : > { %4856 = vmatpush1.bf16.msra.mxu0 %v7155_v28  ;;  %v7232_v28 = vld [vmem:[%s7836_s19 + $0x5a8] ss:$12 sps:$4 sm:$0xff]  }
 0x2d6   : > { %6285 = vmatpush3.bf16.msra.mxu1 %v7159_v13  ;;  %4857 = vmatprep.subr.bf16.mxu0 %v7162_v56  ;;  %v7231_v13 = vld [vmem:[%s7836_s19 + $0x368] ss:$12 sps:$4 sm:$0xff]  }
 0x2d7   : > { %6286 = vmatprep.subr.bf16.mxu1 %v7163_v21  ;;  %v7233_v56 = vld [vmem:[%s7836_s19 + $0x4e8] ss:$12 sps:$4 sm:$0xff]   ;;  %v7234_v21 = vld [vmem:[%s7836_s19 + $0x410] ss:$12 sps:$4 sm:$0xff]  }
 0x2d9   : > { %4858 = vmatpush1.bf16.msra.mxu0 %v7160_v29  ;;  %v7236_v29 = vld [vmem:[%s7836_s19 + $0x590] ss:$12 sps:$4 sm:$0xff]  }
 0x2da   : > { %6287 = vmatpush3.bf16.msra.mxu1 %v7164_v30  ;;  %4859 = vmatprep.subr.bf16.mxu0 %v7167_v31  ;;  %v7235_v30 = vld [vmem:[%s7836_s19 + $0x350] ss:$12 sps:$4 sm:$0xff]  }
 0x2db   : > { %6288 = vmatprep.subr.bf16.mxu1 %v7168_v32  ;;  %v7237_v31 = vld [vmem:[%s7836_s19 + $0x4d0] ss:$12 sps:$4 sm:$0xff]   ;;  %v7238_v32 = vld [vmem:[%s7836_s19 + $0x3f8] ss:$12 sps:$4 sm:$0xff]  }
 0x2dd   : > { %4860 = vmatpush1.bf16.msra.mxu0 %v7165_v34  ;;  %v7240_v34 = vld [vmem:[%s7836_s19 + $0x578] ss:$12 sps:$4 sm:$0xff]  }
 0x2de   : > { %6289 = vmatpush3.bf16.msra.mxu1 %v7169_v35  ;;  %4861 = vmatprep.subr.bf16.mxu0 %v7172_v36  ;;  %v7239_v35 = vld [vmem:[%s7836_s19 + $0x338] ss:$12 sps:$4 sm:$0xff]  }
 0x2df   : > { %6290 = vmatprep.subr.bf16.mxu1 %v7173_v37  ;;  %v7241_v36 = vld [vmem:[%s7836_s19 + $0x4b8] ss:$12 sps:$4 sm:$0xff]   ;;  %v7242_v37 = vld [vmem:[%s7836_s19 + $0x3e0] ss:$12 sps:$4 sm:$0xff]  }
 0x2e1   : > { %4862 = vmatpush1.bf16.msra.mxu0 %v7170_v38  ;;  %v7244_v38 = vld [vmem:[%s7836_s19 + $0x560] ss:$12 sps:$4 sm:$0xff]  }
 0x2e2   : > { %6291 = vmatpush3.bf16.msra.mxu1 %v7174_v39  ;;  %4863 = vmatprep.subr.bf16.mxu0 %v7177_v40  ;;  %v7243_v39 = vld [vmem:[%s7836_s19 + $0x320] ss:$12 sps:$4 sm:$0xff]  }
 0x2e3   : > { %6298 = vmatprep.subr.bf16.mxu1 %v7178_v41  ;;  %v7245_v40 = vld [vmem:[%s7836_s19 + $0x4a0] ss:$12 sps:$4 sm:$0xff]   ;;  %v7246_v41 = vld [vmem:[%s7836_s19 + $0x3c8] ss:$12 sps:$4 sm:$0xff]  }
 0x2e5   : > { %4923 = vmatmul.mubr.bf16.vlgmr.msra.gmra.mxu1 %v7997_v53  ;;  %4864 = vmatpush2.bf16.msra.mxu0 %v7175_v43  ;;  %v7192_v53 = vld [vmem:[%s7836_s19 + $0xd24] ss:$12 sps:$4 sm:$0xff]   ;;  %v7248_v43 = vld [vmem:[%s7836_s19 + $0x548] ss:$12 sps:$4 sm:$0xff]  }
 0x2e6   : > { %6299 = vmatpush3.bf16.msra.mxu1 %v7179_v44  ;;  %4865 = vmatprep.subr.bf16.mxu0 %v7182_v45  ;;  %v7247_v44 = vld [vmem:[%s7836_s19 + $0x308] ss:$12 sps:$4 sm:$0xff]  }
 0x2e7   : > { %6300 = vmatprep.subr.bf16.mxu1 %v7183_v46  ;;  %4963 = vmatprep.mubr.bf16.mxu1 %v7354_v18  ;;  %v7249_v45 = vld [vmem:[%s7836_s19 + $0x488] ss:$12 sps:$4 sm:$0xff]   ;;  %v7250_v46 = vld [vmem:[%s7836_s19 + $0x770] ss:$12 sps:$4 sm:$0xff]   ;;  %v7255_v18 = vld [vmem:[%s7836_s19 + $0x698] ss:$12 sps:$4 sm:$0xff]  }
 0x2e9   : > { %4866 = vmatpush2.bf16.msra.mxu0 %v7180_v2  ;;  %v7252_v2 = vld [vmem:[%s7836_s19 + $0x8f0] ss:$12 sps:$4 sm:$0xff]  }
 0x2ea   : > { %6301 = vmatpush3.bf16.msra.mxu1 %v7184_v15  ;;  %4867 = vmatprep.subr.bf16.mxu0 %v7187_v47  ;;  %v7251_v15 = vld [vmem:[%s7836_s19 + $0x6b0] ss:$12 sps:$4 sm:$0xff]  }
 0x2eb   : > { %6302 = vmatprep.subr.bf16.mxu1 %v7188_v49  ;;  %v7253_v47 = vld [vmem:[%s7836_s19 + $0x830] ss:$12 sps:$4 sm:$0xff]   ;;  %v7254_v49 = vld [vmem:[%s7836_s19 + $0x758] ss:$12 sps:$4 sm:$0xff]  }
 0x2ed   : > { %4868 = vmatpush2.bf16.msra.mxu0 %v7185_v50  ;;  %v7256_v50 = vld [vmem:[%s7836_s19 + $0x8d8] ss:$12 sps:$4 sm:$0xff]  }
 0x2ee   : > { %6303 = vmatpush3.bf16.msra.mxu1 %v7189_v51  ;;  %4869 = vmatprep.subr.bf16.mxu0 %v7192_v53  ;;  %v7257_v51 = vld [vmem:[%s7836_s19 + $0x818] ss:$12 sps:$4 sm:$0xff]  }
 0x2ef   : > { %6304 = vmatprep.subr.bf16.mxu1 %v7193_v54  ;;  %v7358_v53 = vld [vmem:[#allocation2 + $0x78] ss:$-80 sps:$4 sm:$0xff]  }
 0x2f0   : > { %v7359_v54 = vld [vmem:[#allocation2 + $0x58] ss:$-72 sps:$4 sm:$0xff]  }
 0x2f1   : > { %4870 = vmatpush2.bf16.msra.mxu0 %v7190_v55  ;;  %v7258_v55 = vld [vmem:[%s7836_s19 + $0x740] ss:$12 sps:$4 sm:$0xff]  }
 0x2f2   : > { %6305 = vmatpush3.bf16.msra.mxu1 %v7194_v57  ;;  %4871 = vmatprep.subr.bf16.mxu0 %v7197_v58  ;;  %v7260_v57 = vld [vmem:[%s7836_s19 + $0x8c0] ss:$12 sps:$4 sm:$0xff]  }
 0x2f3   : > { %6306 = vmatprep.subr.bf16.mxu1 %v7198_v59  ;;  %v7259_v58 = vld [vmem:[%s7836_s19 + $0x680] ss:$12 sps:$4 sm:$0xff]  }
 0x2f4   : > { %v7261_v59 = vld [vmem:[%s7836_s19 + $0x800] ss:$12 sps:$4 sm:$0xff]  }
 0x2f5   : > { %4872 = vmatpush2.bf16.msra.mxu0 %v7195_v20  ;;  %v7360_v20 = vld [vmem:[#allocation2 + $0x24] ss:$40 sps:$4 sm:$0xff]  }
 0x2f6   : > { %6307 = vmatpush3.bf16.msra.mxu1 %v7199_v60  ;;  %4873 = vmatprep.subr.bf16.mxu0 %v7202_v61  ;;  %v7361_v60 = vld [vmem:[#allocation2 + $0xc] ss:$40 sps:$4 sm:$0xff]   ;;  %v7262_v61 = vld [vmem:[%s7836_s19 + $0x728] ss:$12 sps:$4 sm:$0xff]  }
 0x2f7   : > { %6308 = vmatprep.subr.bf16.mxu1 %v7203_v62  ;;  %v7264_v62 = vld [vmem:[%s7836_s19 + $0x8a8] ss:$12 sps:$4 sm:$0xff]  }
 0x2f9   : > { %4874 = vmatpush2.bf16.msra.mxu0 %v7200_v63  ;;  %v7263_v63 = vld [vmem:[%s7836_s19 + $0x668] ss:$12 sps:$4 sm:$0xff]  }
 0x2fa   : > { %6309 = vmatpush3.bf16.msra.mxu1 %v7204_v0  ;;  %4875 = vmatprep.subr.bf16.mxu0 %v7207_v1  ;;  %v7265_v0 = vld [vmem:[%s7836_s19 + $0x7e8] ss:$12 sps:$4 sm:$0xff]   ;;  %v7266_v1 = vld [vmem:[%s7836_s19 + $0x710] ss:$12 sps:$4 sm:$0xff]  }
 0x2fb   : > { %6310 = vmatprep.subr.bf16.mxu1 %v7208_v3  ;;  %v7268_v3 = vld [vmem:[%s7836_s19 + $0x890] ss:$12 sps:$4 sm:$0xff]  }
 0x2fd   : > { %4876 = vmatpush2.bf16.msra.mxu0 %v7205_v4  ;;  %v7267_v4 = vld [vmem:[%s7836_s19 + $0x650] ss:$12 sps:$4 sm:$0xff]  }
 0x2fe   : > { %6311 = vmatpush3.bf16.msra.mxu1 %v7209_v5  ;;  %4877 = vmatprep.subr.bf16.mxu0 %v7212_v6  ;;  %v7269_v5 = vld [vmem:[%s7836_s19 + $0x7d0] ss:$12 sps:$4 sm:$0xff]   ;;  %v7270_v6 = vld [vmem:[%s7836_s19 + $0x6f8] ss:$12 sps:$4 sm:$0xff]  }
 0x2ff   : > { %6312 = vmatprep.subr.bf16.mxu1 %v7213_v7  ;;  %v7272_v7 = vld [vmem:[%s7836_s19 + $0x878] ss:$12 sps:$4 sm:$0xff]  }
 0x301   : > { %4878 = vmatpush2.bf16.msra.mxu0 %v7210_v8  ;;  %v7271_v8 = vld [vmem:[%s7836_s19 + $0x638] ss:$12 sps:$4 sm:$0xff]  }
 0x302   : > { %6313 = vmatpush3.bf16.msra.mxu1 %v7214_v42  ;;  %6320 = vmatprep.subr.bf16.mxu0 %v7218_v9  ;;  %v7273_v42 = vld [vmem:[%s7836_s19 + $0x7b8] ss:$12 sps:$4 sm:$0xff]   ;;  %v7274_v9 = vld [vmem:[%s7836_s19 + $0x6e0] ss:$12 sps:$4 sm:$0xff]  }
 0x303   : > { %6342 = vmatprep.subr.bf16.mxu1 %v7220_v11  ;;  %v7276_v11 = vld [vmem:[%s7836_s19 + $0x860] ss:$12 sps:$4 sm:$0xff]  }
 0x304   : > { %4880 = vmatmul.mubr.bf16.vlgmr.msra.gmra.mxu0 %v8257_v10 }
 0x305   : > { %4964 = vmatmul.mubr.bf16.vlgmr.msra.gmra.mxu1 %v7355_v22  ;;  %6321 = vmatpush3.bf16.msra.mxu0 %v7219_v12  ;;  %v7275_v12 = vld [vmem:[%s7836_s19 + $0x620] ss:$12 sps:$4 sm:$0xff]   ;;  %v7281_v22 = vld [vmem:[%s7836_s19 + $0x788] ss:$12 sps:$4 sm:$0xff]  }
 0x306   : > { %6343 = vmatpush3.bf16.msra.mxu1 %v7221_v16  ;;  %6322 = vmatprep.subr.bf16.mxu0 %v7222_v48  ;;  %v7277_v16 = vld [vmem:[%s7836_s19 + $0x7a0] ss:$12 sps:$4 sm:$0xff]   ;;  %v7278_v48 = vld [vmem:[%s7836_s19 + $0x6c8] ss:$12 sps:$4 sm:$0xff]  }
 0x307   : > { %6344 = vmatprep.subr.bf16.mxu1 %v7224_v19  ;;  %5004 = vmatprep.mubr.bf16.mxu0 %v7356_v25  ;;  %v7280_v19 = vld [vmem:[%s7836_s19 + $0x848] ss:$12 sps:$4 sm:$0xff]   ;;  %v7286_v25 = vld [vmem:[%s7836_s19 + $0xa58] ss:$12 sps:$4 sm:$0xff]  }
 0x308   : > { %5045 = vmatprep.mubr.bf16.mxu1 %v7357_v26  ;;  %v7288_v26 = vld [vmem:[%s7836_s19 + $0xbd8] ss:$12 sps:$4 sm:$0xff]  }
 0x309   : > { %6323 = vmatpush3.bf16.msra.mxu0 %v7223_v17  ;;  %v7279_v17 = vld [vmem:[%s7836_s19 + $0x608] ss:$12 sps:$4 sm:$0xff]  }
 0x30a   : > { %6345 = vmatpush3.bf16.msra.mxu1 %v7225_v23  ;;  %6324 = vmatprep.subr.bf16.mxu0 %v7226_v52  ;;  %v7282_v23 = vld [vmem:[%s7836_s19 + $0xa70] ss:$12 sps:$4 sm:$0xff]  }
 0x30b   : > { %6346 = vmatprep.subr.bf16.mxu1 %v7228_v24  ;;  %v7284_v52 = vld [vmem:[%s7836_s19 + $0xbf0] ss:$12 sps:$4 sm:$0xff]  }
 0x30c   : > { %v7283_v24 = vld [vmem:[%s7836_s19 + $0x9b0] ss:$12 sps:$4 sm:$0xff]  }
 0x30d   : > { %6325 = vmatpush3.bf16.msra.mxu0 %v7227_v14  ;;  %v7285_v14 = vld [vmem:[%s7836_s19 + $0xb30] ss:$12 sps:$4 sm:$0xff]  }
 0x30e   : > { %6347 = vmatpush3.bf16.msra.mxu1 %v7229_v33  ;;  %6326 = vmatprep.subr.bf16.mxu0 %v7230_v27  ;;  %v7362_v33 = vld [vmem:[#allocation2 + $0x20] ss:$40 sps:$4 sm:$0xff]  }
 0x30f   : > { %6348 = vmatprep.subr.bf16.mxu1 %v7232_v28  ;;  %v7363_v27 = vld [vmem:[#allocation2 + $0x8] ss:$40 sps:$4 sm:$0xff]  }
 0x310   : > { %v7287_v28 = vld [vmem:[%s7836_s19 + $0x998] ss:$12 sps:$4 sm:$0xff]  }
 0x311   : > { %6327 = vmatpush3.bf16.msra.mxu0 %v7231_v13  ;;  %v7289_v13 = vld [vmem:[%s7836_s19 + $0xb18] ss:$12 sps:$4 sm:$0xff]  }
 0x312   : > { %6349 = vmatpush3.bf16.msra.mxu1 %v7233_v56  ;;  %6328 = vmatprep.subr.bf16.mxu0 %v7234_v21  ;;  %v7290_v56 = vld [vmem:[%s7836_s19 + $0xa40] ss:$12 sps:$4 sm:$0xff]  }
 0x313   : > { %6350 = vmatprep.subr.bf16.mxu1 %v7236_v29  ;;  %v7292_v21 = vld [vmem:[%s7836_s19 + $0xbc0] ss:$12 sps:$4 sm:$0xff]  }
 0x314   : > { %v7364_v29 = vld [vmem:[#allocation2 + $0x74] ss:$-88 sps:$4 sm:$0xff]  }
 0x315   : > { %6329 = vmatpush3.bf16.msra.mxu0 %v7235_v30  ;;  %v7365_v30 = vld [vmem:[#allocation2 + $0x84] ss:$-24 sps:$4 sm:$0xff]  }
 0x316   : > { %6351 = vmatpush3.bf16.msra.mxu1 %v7237_v31  ;;  %6330 = vmatprep.subr.bf16.mxu0 %v7238_v32  ;;  %v7291_v31 = vld [vmem:[%s7836_s19 + $0x980] ss:$12 sps:$4 sm:$0xff]  }
 0x317   : > { %6352 = vmatprep.subr.bf16.mxu1 %v7240_v34  ;;  %v7293_v32 = vld [vmem:[%s7836_s19 + $0xb00] ss:$12 sps:$4 sm:$0xff]   ;;  %v7294_v34 = vld [vmem:[%s7836_s19 + $0xa28] ss:$12 sps:$4 sm:$0xff]  }
 0x319   : > { %6331 = vmatpush3.bf16.msra.mxu0 %v7239_v35  ;;  %v7296_v35 = vld [vmem:[%s7836_s19 + $0xba8] ss:$12 sps:$4 sm:$0xff]  }
 0x31a   : > { %6353 = vmatpush3.bf16.msra.mxu1 %v7241_v36  ;;  %6332 = vmatprep.subr.bf16.mxu0 %v7242_v37  ;;  %v7295_v36 = vld [vmem:[%s7836_s19 + $0x968] ss:$12 sps:$4 sm:$0xff]  }
 0x31b   : > { %6354 = vmatprep.subr.bf16.mxu1 %v7244_v38  ;;  %v7297_v37 = vld [vmem:[%s7836_s19 + $0xae8] ss:$12 sps:$4 sm:$0xff]   ;;  %v7298_v38 = vld [vmem:[%s7836_s19 + $0xa10] ss:$12 sps:$4 sm:$0xff]  }
 0x31d   : > { %6333 = vmatpush3.bf16.msra.mxu0 %v7243_v39  ;;  %v7300_v39 = vld [vmem:[%s7836_s19 + $0xb90] ss:$12 sps:$4 sm:$0xff]  }
 0x31e   : > { %6355 = vmatpush3.bf16.msra.mxu1 %v7245_v40  ;;  %6334 = vmatprep.subr.bf16.mxu0 %v7246_v41  ;;  %v7299_v40 = vld [vmem:[%s7836_s19 + $0x950] ss:$12 sps:$4 sm:$0xff]  }
 0x31f   : > { %6356 = vmatprep.subr.bf16.mxu1 %v7248_v43  ;;  %v7301_v41 = vld [vmem:[%s7836_s19 + $0xad0] ss:$12 sps:$4 sm:$0xff]   ;;  %v7302_v43 = vld [vmem:[%s7836_s19 + $0x9f8] ss:$12 sps:$4 sm:$0xff]  }
 0x321   : > { %6335 = vmatpush3.bf16.msra.mxu0 %v7247_v44  ;;  %v7304_v44 = vld [vmem:[%s7836_s19 + $0xb78] ss:$12 sps:$4 sm:$0xff]  }
 0x322   : > { %6357 = vmatpush3.bf16.msra.mxu1 %v7249_v45  ;;  %6364 = vmatprep.subr.bf16.mxu0 %v7250_v46  ;;  %v7303_v45 = vld [vmem:[%s7836_s19 + $0x938] ss:$12 sps:$4 sm:$0xff]  }
 0x323   : > { %6386 = vmatprep.subr.bf16.mxu1 %v7252_v2  ;;  %v7305_v46 = vld [vmem:[%s7836_s19 + $0xab8] ss:$12 sps:$4 sm:$0xff]   ;;  %v7306_v2 = vld [vmem:[%s7836_s19 + $0x9e0] ss:$12 sps:$4 sm:$0xff]  }
 0x324   : > { %5005 = vmatmul.mubr.bf16.vlgmr.msra.gmra.mxu0 %v7358_v53  ;;  %v7313_v53 = vld [vmem:[%s7836_s19 + $0xa88] ss:$12 sps:$4 sm:$0xff]  }
 0x325   : > { %5046 = vmatmul.mubr.bf16.vlgmr.msra.gmra.mxu1 %v7359_v54  ;;  %6365 = vmatpush3.bf16.msra.mxu0 %v7251_v15  ;;  %v7308_v15 = vld [vmem:[%s7836_s19 + $0xb60] ss:$12 sps:$4 sm:$0xff]   ;;  %v7314_v54 = vld [vmem:[%s7836_s19 + $0xd70] ss:$12 sps:$4 sm:$0xff]  }
 0x326   : > { %6387 = vmatpush3.bf16.msra.mxu1 %v7253_v47  ;;  %6366 = vmatprep.subr.bf16.mxu0 %v7254_v49  ;;  %v7307_v47 = vld [vmem:[%s7836_s19 + $0x920] ss:$12 sps:$4 sm:$0xff]  }
 0x327   : > { %6388 = vmatprep.subr.bf16.mxu1 %v7256_v50  ;;  %5086 = vmatprep.mubr.bf16.mxu0 %v7360_v20  ;;  %v7309_v49 = vld [vmem:[%s7836_s19 + $0xaa0] ss:$12 sps:$4 sm:$0xff]   ;;  %v7310_v50 = vld [vmem:[%s7836_s19 + $0x9c8] ss:$12 sps:$4 sm:$0xff]  }
 0x328   : > { %5127 = vmatprep.mubr.bf16.mxu1 %v7361_v60  ;;  %v7332_v20 = vld [vmem:[%s7844_s15 + $0x70] sm:$0xff]   ;;  %v7366_v60 = vld [vmem:[#allocation2 + $0x70] ss:$-88 sps:$4 sm:$0xff]  }
 0x329   : > { %6367 = vmatpush3.bf16.msra.mxu0 %v7255_v18  ;;  %v7312_v18 = vld [vmem:[%s7836_s19 + $0xb48] ss:$12 sps:$4 sm:$0xff]  }
 0x32a   : > { %6389 = vmatpush3.bf16.msra.mxu1 %v7257_v51  ;;  %6368 = vmatprep.subr.bf16.mxu0 %v7258_v55  ;;  %v7311_v51 = vld [vmem:[%s7836_s19 + $0x908] ss:$12 sps:$4 sm:$0xff]   ;;  %v7330_v55 = vld [vmem:[%s7844_s15 + $0x78] sm:$0xff]  }
 0x32b   : > { %6390 = vmatprep.subr.bf16.mxu1 %v7260_v57  ;;  %v7315_v57 = vld [vmem:[%s7836_s19 + $0xcb0] ss:$12 sps:$4 sm:$0xff]  }
 0x32d   : > { %6369 = vmatpush3.bf16.msra.mxu0 %v7259_v58  ;;  %v7316_v58 = vld [vmem:[%s7836_s19 + $0xd58] ss:$12 sps:$4 sm:$0xff]  }
 0x32e   : > { %6391 = vmatpush3.bf16.msra.mxu1 %v7261_v59  ;;  %6370 = vmatprep.subr.bf16.mxu0 %v7262_v61  ;;  %v7331_v59 = vld [vmem:[%s7844_s15 + $0x38] sm:$0xff]   ;;  %v7367_v61 = vld [vmem:[#allocation2 + $0x80] ss:$-24 sps:$4 sm:$0xff]  }
 0x32f   : > { %6392 = vmatprep.subr.bf16.mxu1 %v7264_v62  ;;  %v7317_v62 = vld [vmem:[%s7836_s19 + $0xc98] ss:$12 sps:$4 sm:$0xff]  }
 0x331   : > { %6371 = vmatpush3.bf16.msra.mxu0 %v7263_v63  ;;  %v7368_v63 = vld [vmem:[#allocation2 + $0x8c] ss:$-40 sps:$4 sm:$0xff]  }
 0x332   : > { %6393 = vmatpush3.bf16.msra.mxu1 %v7265_v0  ;;  %6372 = vmatprep.subr.bf16.mxu0 %v7266_v1  ;;  %v7318_v0 = vld [vmem:[%s7836_s19 + $0xd40] ss:$12 sps:$4 sm:$0xff]   ;;  %v7333_v1 = vld [vmem:[%s7844_s15 + $0x30] sm:$0xff]  }
 0x333   : > { %6394 = vmatprep.subr.bf16.mxu1 %v7268_v3  ;;  %v7334_v3 = vld [vmem:[%s7844_s15 + $0x68] sm:$0xff]  }
 0x335   : > { %6373 = vmatpush3.bf16.msra.mxu0 %v7267_v4  ;;  %v7319_v4 = vld [vmem:[%s7836_s19 + $0xc80] ss:$12 sps:$4 sm:$0xff]  }
 0x336   : > { %6395 = vmatpush3.bf16.msra.mxu1 %v7269_v5  ;;  %6374 = vmatprep.subr.bf16.mxu0 %v7270_v6  ;;  %v7320_v5 = vld [vmem:[%s7836_s19 + $0xd28] ss:$12 sps:$4 sm:$0xff]  }
 0x337   : > { %6396 = vmatprep.subr.bf16.mxu1 %v7272_v7  ;;  %v7335_v6 = vld [vmem:[%s7844_s15 + $0x28] sm:$0xff]   ;;  %v7336_v7 = vld [vmem:[%s7844_s15 + $0x60] sm:$0xff]  }
 0x339   : > { %6375 = vmatpush3.bf16.msra.mxu0 %v7271_v8  ;;  %v7321_v8 = vld [vmem:[%s7836_s19 + $0xc68] ss:$12 sps:$4 sm:$0xff]  }
 0x33a   : > { %6397 = vmatpush3.bf16.msra.mxu1 %v7273_v42  ;;  %6376 = vmatprep.subr.bf16.mxu0 %v7274_v9  ;;  %v7322_v42 = vld [vmem:[%s7836_s19 + $0xd10] ss:$12 sps:$4 sm:$0xff]   ;;  %v7337_v9 = vld [vmem:[%s7844_s15 + $0x20] sm:$0xff]  }
 0x33b   : > { %6398 = vmatprep.subr.bf16.mxu1 %v7276_v11  ;;  %v7338_v11 = vld [vmem:[%s7844_s15 + $0x58] sm:$0xff]  }
 0x33d   : > { %6377 = vmatpush3.bf16.msra.mxu0 %v7275_v12  ;;  %v7323_v12 = vld [vmem:[%s7836_s19 + $0xc50] ss:$12 sps:$4 sm:$0xff]  }
 0x33e   : > { %6399 = vmatpush3.bf16.msra.mxu1 %v7277_v16  ;;  %6378 = vmatprep.subr.bf16.mxu0 %v7278_v48  ;;  %v7324_v16 = vld [vmem:[%s7836_s19 + $0xcf8] ss:$12 sps:$4 sm:$0xff]  }
 0x33f   : > { %6400 = vmatprep.subr.bf16.mxu1 %v7280_v19  ;;  %v7339_v48 = vld [vmem:[%s7844_s15 + $0x18] sm:$0xff]   ;;  %v7340_v19 = vld [vmem:[%s7844_s15 + $0x50] sm:$0xff]  }
 0x341   : > { %6379 = vmatpush3.bf16.msra.mxu0 %v7279_v17  ;;  %v7325_v17 = vld [vmem:[%s7836_s19 + $0xc38] ss:$12 sps:$4 sm:$0xff]  }
 0x342   : > { %6401 = vmatpush3.bf16.msra.mxu1 %v7281_v22  ;;  %6408 = vmatprep.subr.bf16.mxu0 %v7282_v23  ;;  %v7326_v22 = vld [vmem:[%s7836_s19 + $0xce0] ss:$12 sps:$4 sm:$0xff]   ;;  %v7341_v23 = vld [vmem:[%s7844_s15 + $0x10] sm:$0xff]  }
 0x343   : > { %6430 = vmatprep.subr.bf16.mxu1 %v7284_v52  ;;  %v7342_v52 = vld [vmem:[%s7844_s15 + $0x48] sm:$0xff]  }
 0x344   : > { %5087 = vmatmul.mubr.bf16.vlgmr.msra.gmra.mxu0 %v7362_v33  ;;  %v7329_v33 = vld [vmem:[%s7836_s19 + $0xc08] ss:$12 sps:$4 sm:$0xff]  }
 0x345   : > { %5128 = vmatmul.mubr.bf16.vlgmr.msra.gmra.mxu1 %v7363_v27  ;;  %6409 = vmatpush3.bf16.msra.mxu0 %v7283_v24  ;;  %v7327_v24 = vld [vmem:[%s7836_s19 + $0xc20] ss:$12 sps:$4 sm:$0xff]  }
 0x346   : > { %6431 = vmatpush3.bf16.msra.mxu1 %v7285_v14  ;;  %6410 = vmatprep.subr.bf16.mxu0 %v7286_v25  ;;  %v7328_v14 = vld [vmem:[%s7836_s19 + $0xcc8] ss:$12 sps:$4 sm:$0xff]  }
 0x347   : > { %6432 = vmatprep.subr.bf16.mxu1 %v7288_v26  ;;  %5168 = vmatprep.mubr.bf16.mxu0 %v7364_v29  ;;  %v7343_v25 = vld [vmem:[%s7844_s15 + $0x8] sm:$0xff]   ;;  %v7344_v26 = vld [vmem:[%s7844_s15 + $0x40] sm:$0xff]  }
 0x348   : > { %5209 = vmatprep.mubr.bf16.mxu1 %v7365_v30  ;;  %v7345_v27 = vld [vmem:[%s7844_s15] sm:$0xff]  }
 0x349   : > { %6411 = vmatpush3.bf16.msra.mxu0 %v7287_v28  ;;  %v4537_v28 = vpop.f32.mrf.mxu0 }
 0x34a   : > { %6433 = vmatpush3.bf16.msra.mxu1 %v7289_v13  ;;  %6412 = vmatprep.subr.bf16.mxu0 %v7290_v56  ;;  %v4580_v56 = vpop.f32.mrf.mxu1 }
 0x34b   : > { %6434 = vmatprep.subr.bf16.mxu1 %v7292_v21  ;;  %v4539_v13 = vpop.f32.mrf.mxu0 }
 0x34c   : > { %v4582_v29 = vpop.f32.mrf.mxu1 }
 0x34d   : > { %6413 = vmatpush3.bf16.msra.mxu0 %v7291_v31  ;;  %v4541_v21 = vpop.f32.mrf.mxu0 }
 0x34e   : > { %6435 = vmatpush3.bf16.msra.mxu1 %v7293_v32  ;;  %6414 = vmatprep.subr.bf16.mxu0 %v7294_v34  ;;  %v4584_v31 = vpop.f32.mrf.mxu1 }
 0x34f   : > { %6436 = vmatprep.subr.bf16.mxu1 %v7296_v35  ;;  %v4543_v30 = vpop.f32.mrf.mxu0 }
 0x350   : > { %v4586_v34 = vpop.f32.mrf.mxu1 }
 0x351   : > { %6415 = vmatpush3.bf16.msra.mxu0 %v7295_v36  ;;  %v4623_v32 = vpop.f32.mrf.mxu0 }
 0x352   : > { %6437 = vmatpush3.bf16.msra.mxu1 %v7297_v37  ;;  %6416 = vmatprep.subr.bf16.mxu0 %v7298_v38  ;;  %v4666_v36 = vpop.f32.mrf.mxu1  ;;  %v2094_v37 = vlaneseq }
 0x353   : > { %6438 = vmatprep.subr.bf16.mxu1 %v7300_v39  ;;  %v4625_v35 = vpop.f32.mrf.mxu0 }
 0x354   : > { %v4668_v39 = vpop.f32.mrf.mxu1 }
 0x355   : > { %6417 = vmatpush3.bf16.msra.mxu0 %v7299_v40  ;;  %v4627_v38 = vpop.f32.mrf.mxu0  ;;  %v8388_v40 = vshrl.u32 %v2094_v37, 7  ;;  %v7351_v37 = vld [vmem:[%s7844_s15 + $0x90] sm:$0xff]  }
 0x356   : > { %6439 = vmatpush3.bf16.msra.mxu1 %v7301_v41  ;;  %6418 = vmatprep.subr.bf16.mxu0 %v7302_v43 }
 0x357   : > { %6440 = vmatprep.subr.bf16.mxu1 %v7304_v44  ;;  %v4629_v41 = vpop.f32.mrf.mxu0  ;;  %v2100_v44 = vsub.s32 1, %v8388_v40 }
 0x359   : > { %6419 = vmatpush3.bf16.msra.mxu0 %v7303_v45  ;;  %v4709_v43 = vpop.f32.mrf.mxu0  ;;  %v8392_v45 = vld [vmem:[%s7842_s8] sm:$0x7] }
 0x35a   : > { %6441 = vmatpush3.bf16.msra.mxu1 %v7305_v46  ;;  %6420 = vmatprep.subr.bf16.mxu0 %v7306_v2  ;;  %v2096_v46 = vsub.s32 0, %v8388_v40 }
 0x35b   : > { %6442 = vmatprep.subr.bf16.mxu1 %v7308_v15  ;;  %v4711_v15 = vpop.f32.mrf.mxu0 }
 0x35d   : > { %6421 = vmatpush3.bf16.msra.mxu0 %v7307_v47 }
 0x35e   : > { %6443 = vmatpush3.bf16.msra.mxu1 %v7309_v49  ;;  %6422 = vmatprep.subr.bf16.mxu0 %v7310_v50  ;;  %v2101_v49 = vrot.slane %v8392_v45, %v2100_v44  ;;  %v2097_v50 = vrot.slane %v8392_v45, %v2096_v46 }
 0x35f   : > { %6444 = vmatprep.subr.bf16.mxu1 %v7312_v18  ;;  %v7346_v18 = vld [vmem:[%s7844_s15 + $0xb8] sm:$0xff]  }
 0x361   : > { %6423 = vmatpush3.bf16.msra.mxu0 %v7311_v51  ;;  %v4713_v51 = vpop.f32.mrf.mxu0 }
 0x362   : > { %6445 = vmatpush3.bf16.msra.mxu1 %v7313_v53  ;;  %6452 = vmatprep.subr.bf16.mxu0 %v7314_v54  ;;  %v7593_v54 = vmov 0.0  }
 0x363   : > { %6474 = vmatprep.subr.bf16.mxu1 %v7330_v55  ;;  %v4540_v55 = vadd.f32 %v4539_v13, %v2101_v49 }
 0x364   : > { %5169 = vmatmul.mubr.bf16.vlgmr.msra.gmra.mxu0 %v7366_v60  ;;  %v4715_v60 = vpop.f32.mrf.mxu0 }
 0x365   : > { %5210 = vmatmul.mubr.bf16.vlgmr.msra.gmra.mxu1 %v7367_v61  ;;  %6453 = vmatpush3.bf16.msra.mxu0 %v7315_v57  ;;  %v4542_v57 = vadd.f32 %v4541_v21, %v2097_v50 }
 0x366   : > { %5250 = vmatprep.mubr.bf16.mxu0 %v7368_v63  ;;  %6454 = vmatprep.subr.bf16.mxu0 %v7316_v58  ;;  %v7347_v58 = vld [vmem:[%s7844_s15 + $0xb0] sm:$0xff]  }
 0x367   : > { %6475 = vmatpush3.bf16.msra.mxu1 %v7331_v59  ;;  %v4538_v59 = vadd.f32 %v4537_v28, %v2097_v50  ;;  %v4585_v63 = vadd.f32 %v4584_v31, %v4542_v57 }
 0x368   : > { %6476 = vmatprep.subr.bf16.mxu1 %v7332_v20  ;;  %v4544_v20 = vadd.f32 %v4543_v30, %v2101_v49 }
 0x369   : > { %6455 = vmatpush3.bf16.msra.mxu0 %v7317_v62  ;;  %v4583_v62 = vadd.f32 %v4582_v29, %v4540_v55  ;;  %v7353_v55 = vld [vmem:[%s7844_s15 + $0x80] sm:$0xff]  }
 0x36a   : > { %6456 = vmatprep.subr.bf16.mxu0 %v7318_v0  ;;  %v7348_v0 = vld [vmem:[%s7844_s15 + $0xa8] sm:$0xff]  }
 0x36b   : > { %6477 = vmatpush3.bf16.msra.mxu1 %v7333_v1  ;;  %v4581_v1 = vadd.f32 %v4580_v56, %v4538_v59  ;;  %v7350_v56 = vld [vmem:[%s7844_s15 + $0x98] sm:$0xff]  }
 0x36c   : > { %6478 = vmatprep.subr.bf16.mxu1 %v7334_v3 }
 0x36d   : > { %6457 = vmatpush3.bf16.msra.mxu0 %v7319_v4  ;;  %v4587_v4 = vadd.f32 %v4586_v34, %v4544_v20 }
 0x36e   : > { %6458 = vmatprep.subr.bf16.mxu0 %v7320_v5  ;;  %v4626_v5 = vadd.f32 %v4625_v35, %v4583_v62 }
 0x36f   : > { %6479 = vmatpush3.bf16.msra.mxu1 %v7335_v6  ;;  %v4628_v6 = vadd.f32 %v4627_v38, %v4585_v63 }
 0x370   : > { %6480 = vmatprep.subr.bf16.mxu1 %v7336_v7  ;;  %v4624_v7 = vadd.f32 %v4623_v32, %v4581_v1 }
 0x371   : > { %6459 = vmatpush3.bf16.msra.mxu0 %v7321_v8 }
 0x372   : > { %6460 = vmatprep.subr.bf16.mxu0 %v7322_v42  ;;  %v4630_v42 = vadd.f32 %v4629_v41, %v4587_v4 }
 0x373   : > { %6481 = vmatpush3.bf16.msra.mxu1 %v7337_v9  ;;  %v7349_v9 = vld [vmem:[%s7844_s15 + $0xa0] sm:$0xff]  }
 0x374   : > { %6482 = vmatprep.subr.bf16.mxu1 %v7338_v11 }
 0x375   : > { %6461 = vmatpush3.bf16.msra.mxu0 %v7323_v12 }
 0x376   : > { %6462 = vmatprep.subr.bf16.mxu0 %v7324_v16  ;;  %v4669_v16 = vadd.f32 %v4668_v39, %v4626_v5 }
 0x377   : > { %6483 = vmatpush3.bf16.msra.mxu1 %v7339_v48 }
 0x378   : > { %6484 = vmatprep.subr.bf16.mxu1 %v7340_v19  ;;  %v4667_v19 = vadd.f32 %v4666_v36, %v4624_v7 }
 0x379   : > { %6463 = vmatpush3.bf16.msra.mxu0 %v7325_v17 }
 0x37a   : > { %6464 = vmatprep.subr.bf16.mxu0 %v7326_v22  ;;  %v4712_v22 = vadd.f32 %v4711_v15, %v4669_v16 }
 0x37b   : > { %6485 = vmatpush3.bf16.msra.mxu1 %v7341_v23 }
 0x37c   : > { %6486 = vmatprep.subr.bf16.mxu1 %v7342_v52  ;;  %v4710_v52 = vadd.f32 %v4709_v43, %v4667_v19 }
 0x37d   : > { %6465 = vmatpush3.bf16.msra.mxu0 %v7327_v24 }
 0x37e   : > { %6466 = vmatprep.subr.bf16.mxu0 %v7328_v14 }
 0x37f   : > { %6487 = vmatpush3.bf16.msra.mxu1 %v7343_v25 }
 0x380   : > { %6488 = vmatprep.subr.bf16.mxu1 %v7344_v26 }
 0x381   : > { %6467 = vmatpush3.bf16.msra.mxu0 %v7329_v33 }
 0x382   : > { %6505 = vmatprep.subr.bf16.mxu0 %v7593_v54 }
 0x383   : > { %6489 = vmatpush3.bf16.msra.mxu1 %v7345_v27 }
 0x384   : > { %5251 = vmatmul.mubr.bf16.vlgmr.msra.gmra.mxu0 %v8257_v10  ;;  %v4670_v10 = vpop.f32.mrf.mxu1  ;;  %v4795_v3 = vpop.f32.mrf.mxu0 }
 0x385   : > { %6506 = vmatpush3.bf16.msra.mxu0 %v7346_v18  ;;  %v4671_v48 = vadd.f32 %v4670_v10, %v4628_v6  ;;  %6521 = vmatprep.mubr.msk.bf16.mxu0 %vm7594_vm1, %v7593_v54 }
 0x386   : > { %v4672_v2 = vpop.f32.mrf.mxu1  ;;  %6507 = vmatprep.subr.bf16.mxu0 %v7593_v54  ;;  %v4797_v11 = vpop.f32.mrf.mxu0 }
 0x387   : > { %v4673_v17 = vadd.f32 %v4672_v2, %v4630_v42  ;;  %v4714_v23 = vadd.f32 %v4713_v51, %v4671_v48 }
 0x388   : > { %v4752_v47 = vpop.f32.mrf.mxu1  ;;  %v4799_v24 = vpop.f32.mrf.mxu0 }
 0x389   : > { %6508 = vmatpush3.bf16.msra.mxu0 %v7347_v58  ;;  %v4716_v25 = vadd.f32 %v4715_v60, %v4673_v17  ;;  %v4753_v27 = vadd.f32 %v4752_v47, %v4710_v52  ;;  %v7352_v47 = vld [vmem:[%s7844_s15 + $0x88] sm:$0xff]  }
 0x38a   : > { %v4754_v53 = vpop.f32.mrf.mxu1  ;;  %6509 = vmatprep.subr.bf16.mxu0 %v7593_v54  ;;  %v4801_v28 = vpop.f32.mrf.mxu0 }
 0x38b   : > { %v4755_v26 = vadd.f32 %v4754_v53, %v4712_v22  ;;  %v4796_v31 = vadd.f32 %v4795_v3, %v4753_v27 }
 0x38c   : > { %v4756_v61 = vpop.f32.mrf.mxu1 }
 0x38d   : > { %6510 = vmatpush3.bf16.msra.mxu0 %v7348_v0  ;;  %v4757_v33 = vadd.f32 %v4756_v61, %v4714_v23  ;;  %v4798_v29 = vadd.f32 %v4797_v11, %v4755_v26 }
 0x38e   : > { %v4758_v8 = vpop.f32.mrf.mxu1  ;;  %6511 = vmatprep.subr.bf16.mxu0 %v7593_v54 }
 0x38f   : > { %v4759_v21 = vadd.f32 %v4758_v8, %v4716_v25  ;;  %v4800_v30 = vadd.f32 %v4799_v24, %v4757_v33 }
 0x390   : > { %v4838_v12 = vpop.f32.mrf.mxu1 }
 0x391   : > { %6512 = vmatpush3.bf16.msra.mxu0 %v7349_v9  ;;  %v4802_v34 = vadd.f32 %v4801_v28, %v4759_v21  ;;  %v4839_v41 = vadd.f32 %v4838_v12, %v4796_v31 }
 0x392   : > { %v4840_v14 = vpop.f32.mrf.mxu1  ;;  %6513 = vmatprep.subr.bf16.mxu0 %v7593_v54 }
 0x393   : > { %v4841_v38 = vadd.f32 %v4840_v14, %v4798_v29 }
 0x394   : > { %v4842_v13 = vpop.f32.mrf.mxu1 }
 0x395   : > { %6514 = vmatpush3.bf16.msra.mxu0 %v7350_v56  ;;  %v4843_v39 = vadd.f32 %v4842_v13, %v4800_v30 }
 0x396   : > { %6515 = vmatprep.subr.bf16.mxu0 %v7593_v54  ;;  %v4844_v35 = vpop.f32.mrf.mxu1 }
 0x397   : > { %v4845_v43 = vadd.f32 %v4844_v35, %v4802_v34 }
 0x399   : > { %6516 = vmatpush3.bf16.msra.mxu0 %v7351_v37 }
 0x39a   : > { %6517 = vmatprep.subr.bf16.mxu0 %v7593_v54 }
 0x39d   : > { %6518 = vmatpush3.bf16.msra.mxu0 %v7352_v47 }
 0x39e   : > { %6519 = vmatprep.subr.bf16.mxu0 %v7593_v54  ;;  %v2104_v54 = vsub.s32 2, %v8388_v40 }
 0x3a0   : > { %v2105_v17 = vrot.slane %v8392_v45, %v2104_v54 }
 0x3a1   : > { %6520 = vmatpush3.bf16.msra.mxu0 %v7353_v55 }
 0x3a5   : > { %v6292_v59 = vpop.f32.mrf.mxu1 }
 0x3a7   : > { %v6293_v20 = vpop.f32.mrf.mxu1 }
 0x3a8   : > { %v6294_v22 = vadd.f32 %v6293_v20, %v6292_v59 }
 0x3a9   : > { %v6295_v60 = vpop.f32.mrf.mxu1 }
 0x3aa   : > { %v4925_v24 = vadd.f32 %v6294_v22, %v2105_v17 }
 0x3ab   : > { %v6296_v61 = vpop.f32.mrf.mxu1 }
 0x3ac   : > { %v6297_v14 = vadd.f32 %v6296_v61, %v6295_v60 }
 0x3ae   : > { %v4928_v13 = vadd.f32 %v6297_v14, %v2105_v17 }
 0x3c4   : > { %v4881_v32 = vpop.f32.mrf.mxu0 }
 0x3c5   : > { %v4882_v2 = vadd.f32 %v4881_v32, %v4839_v41  ;;  %v6314_v62 = vpop.f32.mrf.mxu1 }
 0x3c6   : > { %v4883_v36 = vpop.f32.mrf.mxu0 }
 0x3c7   : > { %v4884_v44 = vadd.f32 %v4883_v36, %v4841_v38  ;;  %v5259_v53 = vmax.f32 %v4882_v2, 0.0  ;;  %v6315_v63 = vpop.f32.mrf.mxu1 }
 0x3c8   : > { %v4885_v10 = vpop.f32.mrf.mxu0  ;;  %v6316_v25 = vadd.f32 %v6315_v63, %v6314_v62 }
 0x3c9   : > { %v4886_v46 = vadd.f32 %v4885_v10, %v4843_v39  ;;  %v5260_v18 = vmax.f32 %v4884_v44, 0.0  ;;  %v6317_v0 = vpop.f32.mrf.mxu1 }
 0x3ca   : > { %v4887_v15 = vpop.f32.mrf.mxu0  ;;  %v4966_v56 = vadd.f32 %v6316_v25, %v4925_v24 }
 0x3cb   : > { %v4888_v49 = vadd.f32 %v4887_v15, %v4845_v43  ;;  %v5262_v50 = vmax.f32 %v4886_v46, 0.0  ;;  %v6318_v3 = vpop.f32.mrf.mxu1 }
 0x3cc   : > { %v6319_v33 = vadd.f32 %v6318_v3, %v6317_v0 }
 0x3cd   : > { %v5263_v51 = vmax.f32 %v4888_v49, 0.0  ;;  %v5265_v58 = vpack.c.bf16 %v5262_v50, %v5259_v53 }
 0x3ce   : > { %v4969_v40 = vadd.f32 %v6319_v33, %v4928_v13 }
 0x3cf   : > { %v5266_v57 = vpack.c.bf16 %v5263_v51, %v5260_v18 }
 0x3d1   : > { %5494 = vmatprep.mubr.bf16.mxu1 %v5266_v57 }
 0x3d2   : > { %5495 = vmatmul.mubr.bf16.vlgmr.msra.gmra.mxu1 %v5265_v58 }
 0x3e4   : > { %v6336_v1 = vpop.f32.mrf.mxu0 }
 0x3e5   : > { %v6358_v5 = vpop.f32.mrf.mxu1 }
 0x3e6   : > { %v6337_v4 = vpop.f32.mrf.mxu0 }
 0x3e7   : > { %v6359_v7 = vpop.f32.mrf.mxu1  ;;  %v6338_v27 = vadd.f32 %v6337_v4, %v6336_v1 }
 0x3e8   : > { %v6339_v6 = vpop.f32.mrf.mxu0  ;;  %v6360_v32 = vadd.f32 %v6359_v7, %v6358_v5 }
 0x3e9   : > { %v6361_v42 = vpop.f32.mrf.mxu1  ;;  %v5007_v31 = vadd.f32 %v6338_v27, %v4966_v56 }
 0x3ea   : > { %v6340_v8 = vpop.f32.mrf.mxu0 }
 0x3eb   : > { %v6362_v11 = vpop.f32.mrf.mxu1  ;;  %v6341_v21 = vadd.f32 %v6340_v8, %v6339_v6  ;;  %v5048_v38 = vadd.f32 %v6360_v32, %v5007_v31 }
 0x3ec   : > { %v6363_v45 = vadd.f32 %v6362_v11, %v6361_v42 }
 0x3ed   : > { %v5010_v34 = vadd.f32 %v6341_v21, %v4969_v40 }
 0x3ef   : > { %v5051_v41 = vadd.f32 %v6363_v45, %v5010_v34 }
 0x404   : > { %v6380_v9 = vpop.f32.mrf.mxu0 }
 0x405   : > { %v6402_v16 = vpop.f32.mrf.mxu1 }
 0x406   : > { %v6381_v12 = vpop.f32.mrf.mxu0 }
 0x407   : > { %v6403_v19 = vpop.f32.mrf.mxu1  ;;  %v6382_v35 = vadd.f32 %v6381_v12, %v6380_v9 }
 0x408   : > { %v6383_v48 = vpop.f32.mrf.mxu0  ;;  %v6404_v43 = vadd.f32 %v6403_v19, %v6402_v16  ;;  %v5268_v16 = vld [vmem:[#allocation3 + $0x8] sm:$0xff] }
 0x409   : > { %v6405_v52 = vpop.f32.mrf.mxu1  ;;  %v5089_v10 = vadd.f32 %v6382_v35, %v5048_v38 }
 0x40a   : > { %v6384_v23 = vpop.f32.mrf.mxu0 }
 0x40b   : > { %v6406_v28 = vpop.f32.mrf.mxu1  ;;  %v6385_v39 = vadd.f32 %v6384_v23, %v6383_v48  ;;  %v5130_v49 = vadd.f32 %v6404_v43, %v5089_v10  ;;  %v5269_v23 = vld [vmem:[#allocation3] sm:$0xff] }
 0x40c   : > { %v6407_v15 = vadd.f32 %v6406_v28, %v6405_v52 }
 0x40d   : > { %v5092_v2 = vadd.f32 %v6385_v39, %v5051_v41 }
 0x40f   : > { %v5133_v53 = vadd.f32 %v6407_v15, %v5092_v2 }
 0x424   : > { %v6424_v26 = vpop.f32.mrf.mxu0 }
 0x425   : > { %v6446_v30 = vpop.f32.mrf.mxu1 }
 0x426   : > { %v6425_v29 = vpop.f32.mrf.mxu0 }
 0x427   : > { %v6447_v37 = vpop.f32.mrf.mxu1  ;;  %v6426_v47 = vadd.f32 %v6425_v29, %v6424_v26 }
 0x428   : > { %v6427_v36 = vpop.f32.mrf.mxu0  ;;  %v6448_v57 = vadd.f32 %v6447_v37, %v6446_v30 }
 0x429   : > { %v6449_v46 = vpop.f32.mrf.mxu1  ;;  %v5171_v55 = vadd.f32 %v6426_v47, %v5130_v49 }
 0x42a   : > { %v6428_v44 = vpop.f32.mrf.mxu0 }
 0x42b   : > { %v6429_v50 = vadd.f32 %v6428_v44, %v6427_v36  ;;  %v6450_v18 = vpop.f32.mrf.mxu1  ;;  %v5212_v62 = vadd.f32 %v6448_v57, %v5171_v55 }
 0x42c   : > { %v6451_v20 = vadd.f32 %v6450_v18, %v6449_v46 }
 0x42d   : > { %v5174_v59 = vadd.f32 %v6429_v50, %v5133_v53 }
 0x42f   : > { %v5215_v0 = vadd.f32 %v6451_v20, %v5174_v59 }
 0x444   : > { %v6468_v51 = vpop.f32.mrf.mxu0 }
 0x446   : > { %v6469_v58 = vpop.f32.mrf.mxu0 }
 0x447   : > { %v6470_v60 = vadd.f32 %v6469_v58, %v6468_v51 }
 0x448   : > { %v6471_v61 = vpop.f32.mrf.mxu0 }
 0x449   : > { %v5253_v1 = vadd.f32 %v6470_v60, %v5212_v62 }
 0x44a   : > { %v6472_v63 = vpop.f32.mrf.mxu0 }
 0x44b   : > { %v6473_v3 = vadd.f32 %v6472_v63, %v6471_v61  ;;  %v5261_v5 = vmax.f32 %v5253_v1, 0.0 }
 0x44d   : > { %v5256_v4 = vadd.f32 %v6473_v3, %v5215_v0 }
 0x44f   : > { %v5264_v6 = vmax.f32 %v5256_v4, 0.0 }
 0x451   : > { %v5267_v7 = vpack.c.bf16 %v5264_v6, %v5261_v5 }
 0x453   : > { %6522 = vmatmul.mubr.bf16.vlgmr.msra.gmra.mxu0 %v5267_v7 }
 0x492   : > { %v6490_v8 = vpop.f32.mrf.mxu1 }
 0x494   : > { %v6491_v42 = vpop.f32.mrf.mxu1 }
 0x495   : > { %v6492_v11 = vadd.f32 %v6491_v42, %v6490_v8 }
 0x496   : > { %v6493_v9 = vpop.f32.mrf.mxu1 }
 0x498   : > { %v6494_v12 = vpop.f32.mrf.mxu1 }
 0x499   : > { %v6495_v17 = vadd.f32 %v6494_v12, %v6493_v9 }
 0x513   : > { %v5537_v54 = vpop.f32.mrf.mxu0 }
 0x514   : > { %v5538_v48 = vadd.f32 %v6492_v11, %v5537_v54 }
 0x515   : > { %v6523_v19 = vpop.f32.mrf.mxu0 }
 0x516   : > { %v5544_v22 = vadd.f32 %v5538_v48, %v5268_v16 }
 0x517   : > { %v5540_v52 = vpop.f32.mrf.mxu0 }
 0x518   : > { %5546 = vst [vmem:[#allocation3 + $0x8] sm:$0xff] %v5544_v22  ;;  %v5541_v24 = vadd.f32 %v6495_v17, %v5540_v52  ;;  %5551 = sbr.rel (%p6252_p3) target bundleno = 1317 (0x525), region = 80 }
 0x519   : > { %v6524_v14 = vpop.f32.mrf.mxu0 }
 0x51a   : > { %v5545_v25 = vadd.f32 %v5541_v24, %v5269_v23 }
 0x51c   : > { %5547 = vst [vmem:[#allocation3] sm:$0xff] %v5545_v25 }
 0x51f   : > { %v5552_v26 = vld [vmem:[#allocation3 + $0x8] sm:$0xff] }
 0x520   : > { %5554 = vst [vmem:[%s8443_s7] sm:$0xff] %v5552_v26 }
 0x523   : > { %v5553_v33 = vld [vmem:[#allocation3] sm:$0xff] }
 0x524   : > { %5555 = vst [vmem:[%s8443_s7 + $0x8] sm:$0xff] %v5553_v33 }
 0x525 PF: > { %s8476_s27 = sld [smem:[#allocation17_spill]]  ;;  %s8479_s24 = smov %s7569_s25 }
 0x526   : > { %s8477_s30 = sld [smem:[#allocation16_spill]] }
 0x527   : > { %s8478_s26 = sld [smem:[#allocation18_spill]] }
 0x52b   : > { %p16_p6 = scmp.ge.s32.totalorder %s8476_s27, 5  }
 0x52c   : > { %s8480_s25 = smov %s8477_s30 }
 0x52d   :  { %18 = sbr.rel (!%p16_p6) target bundleno = 3 (0x3), region = 125 }
 0x532   :  { %5567 = vsyncpa [#allocation5], 1 }
 0x533   :  { %5569 = vsyncpa [#allocation5 + $0x1], 1 }
 0x534   :  { %5570 = vsyncpa [#allocation7], 1 }

</bundles_post_ra>
